<compile_context>
chip_gen: v7x
topology: tpu7x:2x2x1
jax: 0.10.0
libtpu: 0.0.40
codegen_flags: <defaults>
</compile_context>

<pallas_src>
import functools

import numpy as np
import jax
import jax.numpy as jnp
from jax.experimental import pallas as pl
from jax.experimental.pallas import tpu as pltpu


# ----------------------------------------------------------------------------
# Fused forward kernel: one grid step == one image, everything stays in VMEM.
# ----------------------------------------------------------------------------
def _fused_net_kernel(x_ref, a1_ref, c1b_ref, a2_ref, c2b_ref, f1_ref, b1_ref,
                      w2_ref, b2_ref, w3_ref, b3_ref, o_ref, *,
                      cin, k, ho1, wo1, c1, ho2, wo2, c2, hp2):
    f32 = jnp.float32

    # ---- conv1: banded matmuls, one per (in-channel, row-tap); bias as acc init.
    acc1 = jnp.broadcast_to(c1b_ref[...], (ho1, wo1 * c1)).astype(f32)
    for ci in range(cin):
        for ky in range(k):
            rows = x_ref[0, ci, ky:ky + ho1, :]                     # (ho1, W)
            acc1 = acc1 + jnp.dot(rows, a1_ref[ci * k + ky],
                                  preferred_element_type=f32)       # (ho1, wo1*c1)

    # ---- relu(max_pool2d(., 2)) #1: neighbour-row / neighbour-col-block max.
    # Valid pooled values land at even rows and even col-blocks; the interleaved
    # "garbage" positions get zero weights in a2/f1, so they are never read.
    rmax1 = jnp.maximum(acc1[0:ho1 - 1, :], acc1[1:ho1, :])          # (ho1-1, wo1*c1)
    cmax1 = jnp.maximum(rmax1[:, 0:(wo1 - 1) * c1], rmax1[:, c1:wo1 * c1])
    p1 = jnp.maximum(cmax1, 0.0)                                     # (ho1-1, (wo1-1)*c1)

    # ---- conv2: banded matmuls over the 3 row taps.
    # TODO(synk): nn.Dropout2d is identity in eval mode; training-mode channel
    # dropout (pltpu.prng_*) is not implemented.
    n2 = 2 * ho2 - 1                                                 # 25
    acc2 = jnp.broadcast_to(c2b_ref[...], (n2, wo2 * c2)).astype(f32)
    for ky in range(k):
        acc2 = acc2 + jnp.dot(p1[2 * ky:2 * ky + n2, :], a2_ref[ky],
                              preferred_element_type=f32)            # valid @ even rows

    # ---- relu(max_pool2d(., 2)) #2 (row pairs are 2 apart due to garbage rows).
    rmax2 = jnp.maximum(acc2[0:n2 - 2, :], acc2[2:n2, :])            # (n2-2, wo2*c2)
    cmax2 = jnp.maximum(rmax2[:, 0:(wo2 - 1) * c2], rmax2[:, c2:wo2 * c2])
    p2 = jnp.maximum(cmax2, 0.0)          # valid @ rows 4*py, lanes 2*px*c2 + c

    # ---- fc1 (PyTorch NCHW flatten folded into host-permuted f1), fc2, fc3.
    h1 = b1_ref[...].astype(f32)                                     # (1, n1)
    for py in range(hp2):
        h1 = h1 + jnp.dot(p2[4 * py:4 * py + 1, :], f1_ref[py],
                          preferred_element_type=f32)
    h1 = jnp.maximum(h1, 0.0)
    h2 = jnp.maximum(
        jnp.dot(h1, w2_ref[...], preferred_element_type=f32) + b2_ref[...], 0.0)
    h3 = jnp.maximum(
        jnp.dot(h2, w3_ref[...], preferred_element_type=f32) + b3_ref[...], 0.0)

    # ---- softmax(dim=1)
    m = jnp.max(h3, axis=-1, keepdims=True)
    e = jnp.exp(h3 - m)
    probs = e * pl.reciprocal(jnp.sum(e, axis=-1, keepdims=True), approx=True)
    o_ref[0] = probs.astype(o_ref.dtype)


# ----------------------------------------------------------------------------
# One-time host-side packing of the PyTorch-style weights into the banded /
# permuted matrices consumed by the fused kernel.
# ----------------------------------------------------------------------------
def pack_params(params, *, in_channels, k, h, w, classes):
    wc1 = np.asarray(params["wc1"], np.float32)   # (k,k,cin,c1)  HWIO
    bc1 = np.asarray(params["bc1"], np.float32)
    wc2 = np.asarray(params["wc2"], np.float32)   # (k,k,c1,c2)
    bc2 = np.asarray(params["bc2"], np.float32)
    w1 = np.asarray(params["w1"], np.float32)     # (c2*hp2*wp2, n1), NCHW-flatten rows

    c1, c2 = wc1.shape[-1], wc2.shape[-1]
    ho1, wo1 = h - k + 1, w - k + 1
    hp1, wp1 = ho1 // 2, wo1 // 2
    ho2, wo2 = hp1 - k + 1, wp1 - k + 1
    hp2, wp2 = ho2 // 2, wo2 // 2
    n1 = w1.shape[1]
    assert w1.shape[0] == c2 * hp2 * wp2, "linear_input inconsistent with conv sizes"

    # conv1: one (W, wo1*c1) banded matrix per (in-channel, row-tap).
    a1 = np.zeros((in_channels * k, w, wo1 * c1), np.float32)
    for ci in range(in_channels):
        for ky in range(k):
            for ox in range(wo1):
                for kx in range(k):
                    a1[ci * k + ky, ox + kx, ox * c1:(ox + 1) * c1] = wc1[ky, kx, ci, :]
    bias1 = np.tile(bc1, wo1)[None, :]                                # (1, wo1*c1)

    # conv2: one ((wo1-1)*c1, wo2*c2) banded matrix per row-tap.  Only even
    # col-blocks of the pooled activation are valid -> odd blocks get zeros.
    a2 = np.zeros((k, (wo1 - 1) * c1, wo2 * c2), np.float32)
    for ky in range(k):
        for ox in range(wo2):
            for kx in range(k):
                r0 = 2 * (ox + kx) * c1
                a2[ky, r0:r0 + c1, ox * c2:(ox + 1) * c2] = wc2[ky, kx, :, :]
    bias2 = np.tile(bc2, wo2)[None, :]                                # (1, wo2*c2)

    # fc1 with the PyTorch NCHW (c,h,w) flatten folded in; one slab per pooled
    # row.  Valid pooled lanes sit at 2*px*c2 + c; everything else stays zero.
    f1 = np.zeros((hp2, (wo2 - 1) * c2, n1), np.float32)
    for py in range(hp2):
        for px in range(wp2):
            for co in range(c2):
                f1[py, 2 * px * c2 + co, :] = w1[co * hp2 * wp2 + py * wp2 + px, :]

    return {
        "a1": jnp.asarray(a1), "bias1": jnp.asarray(bias1),
        "a2": jnp.asarray(a2), "bias2": jnp.asarray(bias2),
        "f1": jnp.asarray(f1),
        "b1": jnp.asarray(params["b1"], jnp.float32).reshape(1, -1),
        "w2": jnp.asarray(params["w2"], jnp.float32),
        "b2": jnp.asarray(params["b2"], jnp.float32).reshape(1, -1),
        "w3": jnp.asarray(params["w3"], jnp.float32),
        "b3": jnp.asarray(params["b3"], jnp.float32).reshape(1, -1),
        "dims": dict(cin=in_channels, k=k, h=h, w=w, ho1=ho1, wo1=wo1, c1=c1,
                     ho2=ho2, wo2=wo2, c2=c2, hp2=hp2, classes=classes),
    }


def net_forward(packed, x_nchw):
    d = packed["dims"]
    B = x_nchw.shape[0]
    kern = functools.partial(
        _fused_net_kernel, cin=d["cin"], k=d["k"], ho1=d["ho1"], wo1=d["wo1"],
        c1=d["c1"], ho2=d["ho2"], wo2=d["wo2"], c2=d["c2"], hp2=d["hp2"])
    out = pl.pallas_call(
        kern,
        out_shape=jax.ShapeDtypeStruct((B, 1, d["classes"]), jnp.float32),
        grid=(B,),
        in_specs=[
            pl.BlockSpec((1, d["cin"], d["h"], d["w"]), lambda b: (b, 0, 0, 0)),
            pl.BlockSpec(packed["a1"].shape, lambda b: (0, 0, 0)),
            pl.BlockSpec(packed["bias1"].shape, lambda b: (0, 0)),
            pl.BlockSpec(packed["a2"].shape, lambda b: (0, 0, 0)),
            pl.BlockSpec(packed["bias2"].shape, lambda b: (0, 0)),
            pl.BlockSpec(packed["f1"].shape, lambda b: (0, 0, 0)),
            pl.BlockSpec(packed["b1"].shape, lambda b: (0, 0)),
            pl.BlockSpec(packed["w2"].shape, lambda b: (0, 0)),
            pl.BlockSpec(packed["b2"].shape, lambda b: (0, 0)),
            pl.BlockSpec(packed["w3"].shape, lambda b: (0, 0)),
            pl.BlockSpec(packed["b3"].shape, lambda b: (0, 0)),
        ],
        out_specs=pl.BlockSpec((1, 1, d["classes"]), lambda b: (b, 0, 0)),
        compiler_params=pltpu.CompilerParams(dimension_semantics=("parallel",)),
    )(x_nchw.astype(jnp.float32), packed["a1"], packed["bias1"], packed["a2"],
      packed["bias2"], packed["f1"], packed["b1"], packed["w2"], packed["b2"],
      packed["w3"], packed["b3"])
    return out[:, 0, :]


# ----------------------------------------------------------------------------
# Synthetic parameters (PyTorch-equivalent layouts) + pure-JAX reference.
# ----------------------------------------------------------------------------
def init_params(key, in_channels, classes, batch_size_arg, kernel_size, linear_input):
    ks = jax.random.split(key, 10)
    s = 0.1
    return {
        "wc1": jax.random.normal(ks[0], (kernel_size, kernel_size, in_channels, 10), jnp.float32) * s,
        "bc1": jax.random.normal(ks[1], (10,), jnp.float32) * s,
        "wc2": jax.random.normal(ks[2], (kernel_size, kernel_size, 10, 20), jnp.float32) * s,
        "bc2": jax.random.normal(ks[3], (20,), jnp.float32) * s,
        "w1": jax.random.normal(ks[4], (linear_input, batch_size_arg), jnp.float32) * s,
        "b1": jax.random.normal(ks[5], (batch_size_arg,), jnp.float32) * s,
        "w2": jax.random.normal(ks[6], (batch_size_arg, 120), jnp.float32) * s,
        "b2": jax.random.normal(ks[7], (120,), jnp.float32) * s,
        "w3": jax.random.normal(ks[8], (120, classes), jnp.float32) * s,
        "b3": jax.random.normal(ks[9], (classes,), jnp.float32) * s,
    }


def reference_forward(params, x_nchw):
    """Pure-JAX reference with identical semantics (for validation)."""
    x = jnp.transpose(x_nchw, (0, 2, 3, 1)).astype(jnp.float32)
    dn = ("NHWC", "HWIO", "NHWC")

    def conv(v, w, b):
        return jax.lax.conv_general_dilated(
            v, w, (1, 1), "VALID", dimension_numbers=dn) + b.reshape(1, 1, 1, -1)

    def pool_relu(v):
        p = jax.lax.reduce_window(v, -jnp.inf, jax.lax.max,
                                  (1, 2, 2, 1), (1, 2, 2, 1), "VALID")
        return jnp.maximum(p, 0.0)

    v = pool_relu(conv(x, params["wc1"], params["bc1"]))
    v = pool_relu(conv(v, params["wc2"], params["bc2"]))
    B = v.shape[0]
    f = jnp.transpose(v, (0, 3, 1, 2)).reshape(B, -1)
    h = jnp.maximum(f @ params["w1"] + params["b1"], 0.0)
    h = jnp.maximum(h @ params["w2"] + params["b2"], 0.0)
    h = jnp.maximum(h @ params["w3"] + params["b3"], 0.0)
    return jax.nn.softmax(h, axis=1)


if __name__ == "__main__":
    # NetModel(in_channels=3, classes=10, batch_size=8, kernel_size=3,
    #          linear_input=720) -> requires 32x32 spatial input.
    B, Cin, H, W = 2, 3, 32, 32
    classes, batch_size_arg, ksize, linear_input = 10, 8, 3, 720

    key = jax.random.PRNGKey(0)
    kp, kx = jax.random.split(key)
    params = init_params(kp, Cin, classes, batch_size_arg, ksize, linear_input)
    x = jax.random.normal(kx, (B, Cin, H, W), jnp.float32)

    packed = pack_params(params, in_channels=Cin, k=ksize, h=H, w=W, classes=classes)
    out = jax.block_until_ready(net_forward(packed, x))

    ref = reference_forward(params, x)
    assert out.shape == (B, classes)
    assert jnp.allclose(jnp.sum(out, axis=1), 1.0, atol=1e-2)
    assert jnp.allclose(out, ref, atol=2e-2, rtol=2e-2), float(jnp.max(jnp.abs(out - ref)))
    print("KERNEL_OK")
</pallas_src>

<mosaic_0001>
module attributes {stable_mosaic.version = 11 : i64} {
  func.func @_fused_net_kernel(%arg0: i32, %arg1: memref<1x3x32x32xf32, #tpu.memory_space<vmem>>, %arg2: memref<9x32x300xf32, #tpu.memory_space<vmem>>, %arg3: memref<1x300xf32, #tpu.memory_space<vmem>>, %arg4: memref<3x290x260xf32, #tpu.memory_space<vmem>>, %arg5: memref<1x260xf32, #tpu.memory_space<vmem>>, %arg6: memref<6x240x8xf32, #tpu.memory_space<vmem>>, %arg7: memref<1x8xf32, #tpu.memory_space<vmem>>, %arg8: memref<8x120xf32, #tpu.memory_space<vmem>>, %arg9: memref<1x120xf32, #tpu.memory_space<vmem>>, %arg10: memref<120x10xf32, #tpu.memory_space<vmem>>, %arg11: memref<1x10xf32, #tpu.memory_space<vmem>>, %arg12: memref<1x1x10xf32, #tpu.memory_space<vmem>>) attributes {dimension_semantics = [#tpu.dimension_semantics<parallel>], iteration_bounds = array<i64: 2>, scalar_prefetch = 0 : i64, scratch_operands = 0 : i64, tpu.core_type = #tpu.core_type<tc>, window_params = [{transform_indices = @transform_0, window_bounds = array<i64: 1, 3, 32, 32>}, {pipeline_mode = #tpu.pipeline_mode<synchronous>, transform_indices = @transform_1, window_bounds = array<i64: 9, 32, 300>}, {pipeline_mode = #tpu.pipeline_mode<synchronous>, transform_indices = @transform_2, window_bounds = array<i64: 1, 300>}, {pipeline_mode = #tpu.pipeline_mode<synchronous>, transform_indices = @transform_3, window_bounds = array<i64: 3, 290, 260>}, {pipeline_mode = #tpu.pipeline_mode<synchronous>, transform_indices = @transform_4, window_bounds = array<i64: 1, 260>}, {pipeline_mode = #tpu.pipeline_mode<synchronous>, transform_indices = @transform_5, window_bounds = array<i64: 6, 240, 8>}, {pipeline_mode = #tpu.pipeline_mode<synchronous>, transform_indices = @transform_6, window_bounds = array<i64: 1, 8>}, {pipeline_mode = #tpu.pipeline_mode<synchronous>, transform_indices = @transform_7, window_bounds = array<i64: 8, 120>}, {pipeline_mode = #tpu.pipeline_mode<synchronous>, transform_indices = @transform_8, window_bounds = array<i64: 1, 120>}, {pipeline_mode = #tpu.pipeline_mode<synchronous>, transform_indices = @transform_9, window_bounds = array<i64: 120, 10>}, {pipeline_mode = #tpu.pipeline_mode<synchronous>, transform_indices = @transform_10, window_bounds = array<i64: 1, 10>}, {transform_indices = @transform_11, window_bounds = array<i64: 1, 1, 10>}]} {
    %c0 = arith.constant 0 : index
    %c0_0 = arith.constant 0 : index
    %0 = vector.load %arg3[%c0, %c0_0] : memref<1x300xf32, #tpu.memory_space<vmem>>, vector<1x300xf32>
    %1 = vector.shape_cast %0 : vector<1x300xf32> to vector<1x300xf32>
    %2 = vector.broadcast %1 : vector<1x300xf32> to vector<30x300xf32>
    %c0_1 = arith.constant 0 : index
    %c0_2 = arith.constant 0 : index
    %c0_3 = arith.constant 0 : index
    %c0_4 = arith.constant 0 : index
    %3 = vector.load %arg1[%c0_1, %c0_2, %c0_3, %c0_4] : memref<1x3x32x32xf32, #tpu.memory_space<vmem>>, vector<1x1x30x32xf32>
    %4 = vector.shape_cast %3 : vector<1x1x30x32xf32> to vector<30x32xf32>
    %c0_5 = arith.constant 0 : index
    %c0_6 = arith.constant 0 : index
    %c0_7 = arith.constant 0 : index
    %5 = vector.load %arg2[%c0_5, %c0_6, %c0_7] : memref<9x32x300xf32, #tpu.memory_space<vmem>>, vector<1x32x300xf32>
    %6 = vector.shape_cast %5 : vector<1x32x300xf32> to vector<32x300xf32>
    %cst = arith.constant dense<0.000000e+00> : vector<30x300xf32>
    %7 = tpu.matmul %4, %6, %cst {dimension_numbers = #tpu.dot_dimension_numbers<[1], [0], [0], [1], [0, 0, 1, 1], [], []>} : vector<30x32xf32>, vector<32x300xf32>, vector<30x300xf32> -> vector<30x300xf32>
    %8 = arith.addf %2, %7 : vector<30x300xf32>
    %c0_8 = arith.constant 0 : index
    %c0_9 = arith.constant 0 : index
    %c1 = arith.constant 1 : index
    %c0_10 = arith.constant 0 : index
    %9 = vector.load %arg1[%c0_8, %c0_9, %c1, %c0_10] : memref<1x3x32x32xf32, #tpu.memory_space<vmem>>, vector<1x1x30x32xf32>
    %10 = vector.shape_cast %9 : vector<1x1x30x32xf32> to vector<30x32xf32>
    %c1_11 = arith.constant 1 : index
    %c0_12 = arith.constant 0 : index
    %c0_13 = arith.constant 0 : index
    %11 = vector.load %arg2[%c1_11, %c0_12, %c0_13] : memref<9x32x300xf32, #tpu.memory_space<vmem>>, vector<1x32x300xf32>
    %12 = vector.shape_cast %11 : vector<1x32x300xf32> to vector<32x300xf32>
    %cst_14 = arith.constant dense<0.000000e+00> : vector<30x300xf32>
    %13 = tpu.matmul %10, %12, %cst_14 {dimension_numbers = #tpu.dot_dimension_numbers<[1], [0], [0], [1], [0, 0, 1, 1], [], []>} : vector<30x32xf32>, vector<32x300xf32>, vector<30x300xf32> -> vector<30x300xf32>
    %14 = arith.addf %8, %13 : vector<30x300xf32>
    %c0_15 = arith.constant 0 : index
    %c0_16 = arith.constant 0 : index
    %c2 = arith.constant 2 : index
    %c0_17 = arith.constant 0 : index
    %15 = vector.load %arg1[%c0_15, %c0_16, %c2, %c0_17] : memref<1x3x32x32xf32, #tpu.memory_space<vmem>>, vector<1x1x30x32xf32>
    %16 = vector.shape_cast %15 : vector<1x1x30x32xf32> to vector<30x32xf32>
    %c2_18 = arith.constant 2 : index
    %c0_19 = arith.constant 0 : index
    %c0_20 = arith.constant 0 : index
    %17 = vector.load %arg2[%c2_18, %c0_19, %c0_20] : memref<9x32x300xf32, #tpu.memory_space<vmem>>, vector<1x32x300xf32>
    %18 = vector.shape_cast %17 : vector<1x32x300xf32> to vector<32x300xf32>
    %cst_21 = arith.constant dense<0.000000e+00> : vector<30x300xf32>
    %19 = tpu.matmul %16, %18, %cst_21 {dimension_numbers = #tpu.dot_dimension_numbers<[1], [0], [0], [1], [0, 0, 1, 1], [], []>} : vector<30x32xf32>, vector<32x300xf32>, vector<30x300xf32> -> vector<30x300xf32>
    %20 = arith.addf %14, %19 : vector<30x300xf32>
    %c0_22 = arith.constant 0 : index
    %c1_23 = arith.constant 1 : index
    %c0_24 = arith.constant 0 : index
    %c0_25 = arith.constant 0 : index
    %21 = vector.load %arg1[%c0_22, %c1_23, %c0_24, %c0_25] : memref<1x3x32x32xf32, #tpu.memory_space<vmem>>, vector<1x1x30x32xf32>
    %22 = vector.shape_cast %21 : vector<1x1x30x32xf32> to vector<30x32xf32>
    %c3 = arith.constant 3 : index
    %c0_26 = arith.constant 0 : index
    %c0_27 = arith.constant 0 : index
    %23 = vector.load %arg2[%c3, %c0_26, %c0_27] : memref<9x32x300xf32, #tpu.memory_space<vmem>>, vector<1x32x300xf32>
    %24 = vector.shape_cast %23 : vector<1x32x300xf32> to vector<32x300xf32>
    %cst_28 = arith.constant dense<0.000000e+00> : vector<30x300xf32>
    %25 = tpu.matmul %22, %24, %cst_28 {dimension_numbers = #tpu.dot_dimension_numbers<[1], [0], [0], [1], [0, 0, 1, 1], [], []>} : vector<30x32xf32>, vector<32x300xf32>, vector<30x300xf32> -> vector<30x300xf32>
    %26 = arith.addf %20, %25 : vector<30x300xf32>
    %c0_29 = arith.constant 0 : index
    %c1_30 = arith.constant 1 : index
    %c1_31 = arith.constant 1 : index
    %c0_32 = arith.constant 0 : index
    %27 = vector.load %arg1[%c0_29, %c1_30, %c1_31, %c0_32] : memref<1x3x32x32xf32, #tpu.memory_space<vmem>>, vector<1x1x30x32xf32>
    %28 = vector.shape_cast %27 : vector<1x1x30x32xf32> to vector<30x32xf32>
    %c4 = arith.constant 4 : index
    %c0_33 = arith.constant 0 : index
    %c0_34 = arith.constant 0 : index
    %29 = vector.load %arg2[%c4, %c0_33, %c0_34] : memref<9x32x300xf32, #tpu.memory_space<vmem>>, vector<1x32x300xf32>
    %30 = vector.shape_cast %29 : vector<1x32x300xf32> to vector<32x300xf32>
    %cst_35 = arith.constant dense<0.000000e+00> : vector<30x300xf32>
    %31 = tpu.matmul %28, %30, %cst_35 {dimension_numbers = #tpu.dot_dimension_numbers<[1], [0], [0], [1], [0, 0, 1, 1], [], []>} : vector<30x32xf32>, vector<32x300xf32>, vector<30x300xf32> -> vector<30x300xf32>
    %32 = arith.addf %26, %31 : vector<30x300xf32>
    %c0_36 = arith.constant 0 : index
    %c1_37 = arith.constant 1 : index
    %c2_38 = arith.constant 2 : index
    %c0_39 = arith.constant 0 : index
    %33 = vector.load %arg1[%c0_36, %c1_37, %c2_38, %c0_39] : memref<1x3x32x32xf32, #tpu.memory_space<vmem>>, vector<1x1x30x32xf32>
    %34 = vector.shape_cast %33 : vector<1x1x30x32xf32> to vector<30x32xf32>
    %c5 = arith.constant 5 : index
    %c0_40 = arith.constant 0 : index
    %c0_41 = arith.constant 0 : index
    %35 = vector.load %arg2[%c5, %c0_40, %c0_41] : memref<9x32x300xf32, #tpu.memory_space<vmem>>, vector<1x32x300xf32>
    %36 = vector.shape_cast %35 : vector<1x32x300xf32> to vector<32x300xf32>
    %cst_42 = arith.constant dense<0.000000e+00> : vector<30x300xf32>
    %37 = tpu.matmul %34, %36, %cst_42 {dimension_numbers = #tpu.dot_dimension_numbers<[1], [0], [0], [1], [0, 0, 1, 1], [], []>} : vector<30x32xf32>, vector<32x300xf32>, vector<30x300xf32> -> vector<30x300xf32>
    %38 = arith.addf %32, %37 : vector<30x300xf32>
    %c0_43 = arith.constant 0 : index
    %c2_44 = arith.constant 2 : index
    %c0_45 = arith.constant 0 : index
    %c0_46 = arith.constant 0 : index
    %39 = vector.load %arg1[%c0_43, %c2_44, %c0_45, %c0_46] : memref<1x3x32x32xf32, #tpu.memory_space<vmem>>, vector<1x1x30x32xf32>
    %40 = vector.shape_cast %39 : vector<1x1x30x32xf32> to vector<30x32xf32>
    %c6 = arith.constant 6 : index
    %c0_47 = arith.constant 0 : index
    %c0_48 = arith.constant 0 : index
    %41 = vector.load %arg2[%c6, %c0_47, %c0_48] : memref<9x32x300xf32, #tpu.memory_space<vmem>>, vector<1x32x300xf32>
    %42 = vector.shape_cast %41 : vector<1x32x300xf32> to vector<32x300xf32>
    %cst_49 = arith.constant dense<0.000000e+00> : vector<30x300xf32>
    %43 = tpu.matmul %40, %42, %cst_49 {dimension_numbers = #tpu.dot_dimension_numbers<[1], [0], [0], [1], [0, 0, 1, 1], [], []>} : vector<30x32xf32>, vector<32x300xf32>, vector<30x300xf32> -> vector<30x300xf32>
    %44 = arith.addf %38, %43 : vector<30x300xf32>
    %c0_50 = arith.constant 0 : index
    %c2_51 = arith.constant 2 : index
    %c1_52 = arith.constant 1 : index
    %c0_53 = arith.constant 0 : index
    %45 = vector.load %arg1[%c0_50, %c2_51, %c1_52, %c0_53] : memref<1x3x32x32xf32, #tpu.memory_space<vmem>>, vector<1x1x30x32xf32>
    %46 = vector.shape_cast %45 : vector<1x1x30x32xf32> to vector<30x32xf32>
    %c7 = arith.constant 7 : index
    %c0_54 = arith.constant 0 : index
    %c0_55 = arith.constant 0 : index
    %47 = vector.load %arg2[%c7, %c0_54, %c0_55] : memref<9x32x300xf32, #tpu.memory_space<vmem>>, vector<1x32x300xf32>
    %48 = vector.shape_cast %47 : vector<1x32x300xf32> to vector<32x300xf32>
    %cst_56 = arith.constant dense<0.000000e+00> : vector<30x300xf32>
    %49 = tpu.matmul %46, %48, %cst_56 {dimension_numbers = #tpu.dot_dimension_numbers<[1], [0], [0], [1], [0, 0, 1, 1], [], []>} : vector<30x32xf32>, vector<32x300xf32>, vector<30x300xf32> -> vector<30x300xf32>
    %50 = arith.addf %44, %49 : vector<30x300xf32>
    %c0_57 = arith.constant 0 : index
    %c2_58 = arith.constant 2 : index
    %c2_59 = arith.constant 2 : index
    %c0_60 = arith.constant 0 : index
    %51 = vector.load %arg1[%c0_57, %c2_58, %c2_59, %c0_60] : memref<1x3x32x32xf32, #tpu.memory_space<vmem>>, vector<1x1x30x32xf32>
    %52 = vector.shape_cast %51 : vector<1x1x30x32xf32> to vector<30x32xf32>
    %c8 = arith.constant 8 : index
    %c0_61 = arith.constant 0 : index
    %c0_62 = arith.constant 0 : index
    %53 = vector.load %arg2[%c8, %c0_61, %c0_62] : memref<9x32x300xf32, #tpu.memory_space<vmem>>, vector<1x32x300xf32>
    %54 = vector.shape_cast %53 : vector<1x32x300xf32> to vector<32x300xf32>
    %cst_63 = arith.constant dense<0.000000e+00> : vector<30x300xf32>
    %55 = tpu.matmul %52, %54, %cst_63 {dimension_numbers = #tpu.dot_dimension_numbers<[1], [0], [0], [1], [0, 0, 1, 1], [], []>} : vector<30x32xf32>, vector<32x300xf32>, vector<30x300xf32> -> vector<30x300xf32>
    %56 = arith.addf %50, %55 : vector<30x300xf32>
    %57 = vector.extract_strided_slice %56 {offsets = [0, 0], sizes = [29, 300], strides = [1, 1]} : vector<30x300xf32> to vector<29x300xf32>
    %58 = vector.extract_strided_slice %56 {offsets = [1, 0], sizes = [29, 300], strides = [1, 1]} : vector<30x300xf32> to vector<29x300xf32>
    %59 = arith.maximumf %57, %58 : vector<29x300xf32>
    %60 = vector.extract_strided_slice %59 {offsets = [0, 0], sizes = [29, 290], strides = [1, 1]} : vector<29x300xf32> to vector<29x290xf32>
    %61 = vector.extract_strided_slice %59 {offsets = [0, 10], sizes = [29, 290], strides = [1, 1]} : vector<29x300xf32> to vector<29x290xf32>
    %62 = arith.maximumf %60, %61 : vector<29x290xf32>
    %cst_64 = arith.constant 0.000000e+00 : f32
    %63 = vector.broadcast %cst_64 : f32 to vector<29x290xf32>
    %64 = arith.maximumf %62, %63 : vector<29x290xf32>
    %c0_65 = arith.constant 0 : index
    %c0_66 = arith.constant 0 : index
    %65 = vector.load %arg5[%c0_65, %c0_66] : memref<1x260xf32, #tpu.memory_space<vmem>>, vector<1x260xf32>
    %66 = vector.shape_cast %65 : vector<1x260xf32> to vector<1x260xf32>
    %67 = vector.broadcast %66 : vector<1x260xf32> to vector<25x260xf32>
    %68 = vector.extract_strided_slice %64 {offsets = [0, 0], sizes = [25, 290], strides = [1, 1]} : vector<29x290xf32> to vector<25x290xf32>
    %c0_67 = arith.constant 0 : index
    %c0_68 = arith.constant 0 : index
    %c0_69 = arith.constant 0 : index
    %69 = vector.load %arg4[%c0_67, %c0_68, %c0_69] : memref<3x290x260xf32, #tpu.memory_space<vmem>>, vector<1x290x260xf32>
    %70 = vector.shape_cast %69 : vector<1x290x260xf32> to vector<290x260xf32>
    %cst_70 = arith.constant dense<0.000000e+00> : vector<25x260xf32>
    %71 = tpu.matmul %68, %70, %cst_70 {dimension_numbers = #tpu.dot_dimension_numbers<[1], [0], [0], [1], [0, 0, 1, 1], [], []>} : vector<25x290xf32>, vector<290x260xf32>, vector<25x260xf32> -> vector<25x260xf32>
    %72 = arith.addf %67, %71 : vector<25x260xf32>
    %73 = vector.extract_strided_slice %64 {offsets = [2, 0], sizes = [25, 290], strides = [1, 1]} : vector<29x290xf32> to vector<25x290xf32>
    %c1_71 = arith.constant 1 : index
    %c0_72 = arith.constant 0 : index
    %c0_73 = arith.constant 0 : index
    %74 = vector.load %arg4[%c1_71, %c0_72, %c0_73] : memref<3x290x260xf32, #tpu.memory_space<vmem>>, vector<1x290x260xf32>
    %75 = vector.shape_cast %74 : vector<1x290x260xf32> to vector<290x260xf32>
    %cst_74 = arith.constant dense<0.000000e+00> : vector<25x260xf32>
    %76 = tpu.matmul %73, %75, %cst_74 {dimension_numbers = #tpu.dot_dimension_numbers<[1], [0], [0], [1], [0, 0, 1, 1], [], []>} : vector<25x290xf32>, vector<290x260xf32>, vector<25x260xf32> -> vector<25x260xf32>
    %77 = arith.addf %72, %76 : vector<25x260xf32>
    %78 = vector.extract_strided_slice %64 {offsets = [4, 0], sizes = [25, 290], strides = [1, 1]} : vector<29x290xf32> to vector<25x290xf32>
    %c2_75 = arith.constant 2 : index
    %c0_76 = arith.constant 0 : index
    %c0_77 = arith.constant 0 : index
    %79 = vector.load %arg4[%c2_75, %c0_76, %c0_77] : memref<3x290x260xf32, #tpu.memory_space<vmem>>, vector<1x290x260xf32>
    %80 = vector.shape_cast %79 : vector<1x290x260xf32> to vector<290x260xf32>
    %cst_78 = arith.constant dense<0.000000e+00> : vector<25x260xf32>
    %81 = tpu.matmul %78, %80, %cst_78 {dimension_numbers = #tpu.dot_dimension_numbers<[1], [0], [0], [1], [0, 0, 1, 1], [], []>} : vector<25x290xf32>, vector<290x260xf32>, vector<25x260xf32> -> vector<25x260xf32>
    %82 = arith.addf %77, %81 : vector<25x260xf32>
    %83 = vector.extract_strided_slice %82 {offsets = [0, 0], sizes = [23, 260], strides = [1, 1]} : vector<25x260xf32> to vector<23x260xf32>
    %84 = vector.extract_strided_slice %82 {offsets = [2, 0], sizes = [23, 260], strides = [1, 1]} : vector<25x260xf32> to vector<23x260xf32>
    %85 = arith.maximumf %83, %84 : vector<23x260xf32>
    %86 = vector.extract_strided_slice %85 {offsets = [0, 0], sizes = [23, 240], strides = [1, 1]} : vector<23x260xf32> to vector<23x240xf32>
    %87 = vector.extract_strided_slice %85 {offsets = [0, 20], sizes = [23, 240], strides = [1, 1]} : vector<23x260xf32> to vector<23x240xf32>
    %88 = arith.maximumf %86, %87 : vector<23x240xf32>
    %cst_79 = arith.constant 0.000000e+00 : f32
    %89 = vector.broadcast %cst_79 : f32 to vector<23x240xf32>
    %90 = arith.maximumf %88, %89 : vector<23x240xf32>
    %c0_80 = arith.constant 0 : index
    %c0_81 = arith.constant 0 : index
    %91 = vector.load %arg7[%c0_80, %c0_81] : memref<1x8xf32, #tpu.memory_space<vmem>>, vector<1x8xf32>
    %92 = vector.extract_strided_slice %90 {offsets = [0, 0], sizes = [1, 240], strides = [1, 1]} : vector<23x240xf32> to vector<1x240xf32>
    %c0_82 = arith.constant 0 : index
    %c0_83 = arith.constant 0 : index
    %c0_84 = arith.constant 0 : index
    %93 = vector.load %arg6[%c0_82, %c0_83, %c0_84] : memref<6x240x8xf32, #tpu.memory_space<vmem>>, vector<1x240x8xf32>
    %94 = vector.shape_cast %93 : vector<1x240x8xf32> to vector<240x8xf32>
    %cst_85 = arith.constant dense<0.000000e+00> : vector<1x8xf32>
    %95 = tpu.matmul %92, %94, %cst_85 {dimension_numbers = #tpu.dot_dimension_numbers<[1], [0], [0], [1], [0, 0, 1, 1], [], []>} : vector<1x240xf32>, vector<240x8xf32>, vector<1x8xf32> -> vector<1x8xf32>
    %96 = arith.addf %91, %95 : vector<1x8xf32>
    %97 = vector.extract_strided_slice %90 {offsets = [4, 0], sizes = [1, 240], strides = [1, 1]} : vector<23x240xf32> to vector<1x240xf32>
    %c1_86 = arith.constant 1 : index
    %c0_87 = arith.constant 0 : index
    %c0_88 = arith.constant 0 : index
    %98 = vector.load %arg6[%c1_86, %c0_87, %c0_88] : memref<6x240x8xf32, #tpu.memory_space<vmem>>, vector<1x240x8xf32>
    %99 = vector.shape_cast %98 : vector<1x240x8xf32> to vector<240x8xf32>
    %cst_89 = arith.constant dense<0.000000e+00> : vector<1x8xf32>
    %100 = tpu.matmul %97, %99, %cst_89 {dimension_numbers = #tpu.dot_dimension_numbers<[1], [0], [0], [1], [0, 0, 1, 1], [], []>} : vector<1x240xf32>, vector<240x8xf32>, vector<1x8xf32> -> vector<1x8xf32>
    %101 = arith.addf %96, %100 : vector<1x8xf32>
    %102 = vector.extract_strided_slice %90 {offsets = [8, 0], sizes = [1, 240], strides = [1, 1]} : vector<23x240xf32> to vector<1x240xf32>
    %c2_90 = arith.constant 2 : index
    %c0_91 = arith.constant 0 : index
    %c0_92 = arith.constant 0 : index
    %103 = vector.load %arg6[%c2_90, %c0_91, %c0_92] : memref<6x240x8xf32, #tpu.memory_space<vmem>>, vector<1x240x8xf32>
    %104 = vector.shape_cast %103 : vector<1x240x8xf32> to vector<240x8xf32>
    %cst_93 = arith.constant dense<0.000000e+00> : vector<1x8xf32>
    %105 = tpu.matmul %102, %104, %cst_93 {dimension_numbers = #tpu.dot_dimension_numbers<[1], [0], [0], [1], [0, 0, 1, 1], [], []>} : vector<1x240xf32>, vector<240x8xf32>, vector<1x8xf32> -> vector<1x8xf32>
    %106 = arith.addf %101, %105 : vector<1x8xf32>
    %107 = vector.extract_strided_slice %90 {offsets = [12, 0], sizes = [1, 240], strides = [1, 1]} : vector<23x240xf32> to vector<1x240xf32>
    %c3_94 = arith.constant 3 : index
    %c0_95 = arith.constant 0 : index
    %c0_96 = arith.constant 0 : index
    %108 = vector.load %arg6[%c3_94, %c0_95, %c0_96] : memref<6x240x8xf32, #tpu.memory_space<vmem>>, vector<1x240x8xf32>
    %109 = vector.shape_cast %108 : vector<1x240x8xf32> to vector<240x8xf32>
    %cst_97 = arith.constant dense<0.000000e+00> : vector<1x8xf32>
    %110 = tpu.matmul %107, %109, %cst_97 {dimension_numbers = #tpu.dot_dimension_numbers<[1], [0], [0], [1], [0, 0, 1, 1], [], []>} : vector<1x240xf32>, vector<240x8xf32>, vector<1x8xf32> -> vector<1x8xf32>
    %111 = arith.addf %106, %110 : vector<1x8xf32>
    %112 = vector.extract_strided_slice %90 {offsets = [16, 0], sizes = [1, 240], strides = [1, 1]} : vector<23x240xf32> to vector<1x240xf32>
    %c4_98 = arith.constant 4 : index
    %c0_99 = arith.constant 0 : index
    %c0_100 = arith.constant 0 : index
    %113 = vector.load %arg6[%c4_98, %c0_99, %c0_100] : memref<6x240x8xf32, #tpu.memory_space<vmem>>, vector<1x240x8xf32>
    %114 = vector.shape_cast %113 : vector<1x240x8xf32> to vector<240x8xf32>
    %cst_101 = arith.constant dense<0.000000e+00> : vector<1x8xf32>
    %115 = tpu.matmul %112, %114, %cst_101 {dimension_numbers = #tpu.dot_dimension_numbers<[1], [0], [0], [1], [0, 0, 1, 1], [], []>} : vector<1x240xf32>, vector<240x8xf32>, vector<1x8xf32> -> vector<1x8xf32>
    %116 = arith.addf %111, %115 : vector<1x8xf32>
    %117 = vector.extract_strided_slice %90 {offsets = [20, 0], sizes = [1, 240], strides = [1, 1]} : vector<23x240xf32> to vector<1x240xf32>
    %c5_102 = arith.constant 5 : index
    %c0_103 = arith.constant 0 : index
    %c0_104 = arith.constant 0 : index
    %118 = vector.load %arg6[%c5_102, %c0_103, %c0_104] : memref<6x240x8xf32, #tpu.memory_space<vmem>>, vector<1x240x8xf32>
    %119 = vector.shape_cast %118 : vector<1x240x8xf32> to vector<240x8xf32>
    %cst_105 = arith.constant dense<0.000000e+00> : vector<1x8xf32>
    %120 = tpu.matmul %117, %119, %cst_105 {dimension_numbers = #tpu.dot_dimension_numbers<[1], [0], [0], [1], [0, 0, 1, 1], [], []>} : vector<1x240xf32>, vector<240x8xf32>, vector<1x8xf32> -> vector<1x8xf32>
    %121 = arith.addf %116, %120 : vector<1x8xf32>
    %cst_106 = arith.constant 0.000000e+00 : f32
    %122 = vector.broadcast %cst_106 : f32 to vector<1x8xf32>
    %123 = arith.maximumf %121, %122 : vector<1x8xf32>
    %c0_107 = arith.constant 0 : index
    %c0_108 = arith.constant 0 : index
    %124 = vector.load %arg8[%c0_107, %c0_108] : memref<8x120xf32, #tpu.memory_space<vmem>>, vector<8x120xf32>
    %cst_109 = arith.constant dense<0.000000e+00> : vector<1x120xf32>
    %125 = tpu.matmul %123, %124, %cst_109 {dimension_numbers = #tpu.dot_dimension_numbers<[1], [0], [0], [1], [0, 0, 1, 1], [], []>} : vector<1x8xf32>, vector<8x120xf32>, vector<1x120xf32> -> vector<1x120xf32>
    %c0_110 = arith.constant 0 : index
    %c0_111 = arith.constant 0 : index
    %126 = vector.load %arg9[%c0_110, %c0_111] : memref<1x120xf32, #tpu.memory_space<vmem>>, vector<1x120xf32>
    %127 = arith.addf %125, %126 : vector<1x120xf32>
    %cst_112 = arith.constant 0.000000e+00 : f32
    %128 = vector.broadcast %cst_112 : f32 to vector<1x120xf32>
    %129 = arith.maximumf %127, %128 : vector<1x120xf32>
    %c0_113 = arith.constant 0 : index
    %c0_114 = arith.constant 0 : index
    %130 = vector.load %arg10[%c0_113, %c0_114] : memref<120x10xf32, #tpu.memory_space<vmem>>, vector<120x10xf32>
    %cst_115 = arith.constant dense<0.000000e+00> : vector<1x10xf32>
    %131 = tpu.matmul %129, %130, %cst_115 {dimension_numbers = #tpu.dot_dimension_numbers<[1], [0], [0], [1], [0, 0, 1, 1], [], []>} : vector<1x120xf32>, vector<120x10xf32>, vector<1x10xf32> -> vector<1x10xf32>
    %c0_116 = arith.constant 0 : index
    %c0_117 = arith.constant 0 : index
    %132 = vector.load %arg11[%c0_116, %c0_117] : memref<1x10xf32, #tpu.memory_space<vmem>>, vector<1x10xf32>
    %133 = arith.addf %131, %132 : vector<1x10xf32>
    %cst_118 = arith.constant 0.000000e+00 : f32
    %134 = vector.broadcast %cst_118 : f32 to vector<1x10xf32>
    %135 = arith.maximumf %133, %134 : vector<1x10xf32>
    %cst_119 = arith.constant dense<0xFF800000> : vector<1xf32>
    %136 = vector.multi_reduction <maximumf>, %135, %cst_119 [1] : vector<1x10xf32> to vector<1xf32>
    %137 = vector.shape_cast %136 : vector<1xf32> to vector<1x1xf32>
    %138 = vector.broadcast %137 : vector<1x1xf32> to vector<1x10xf32>
    %139 = arith.subf %135, %138 : vector<1x10xf32>
    %140 = math.exp %139 : vector<1x10xf32>
    %cst_120 = arith.constant dense<0.000000e+00> : vector<1xf32>
    %141 = vector.multi_reduction <add>, %140, %cst_120 [1] : vector<1x10xf32> to vector<1xf32>
    %142 = vector.shape_cast %141 : vector<1xf32> to vector<1x1xf32>
    %143 = tpu.reciprocal %142 {approx = true} : vector<1x1xf32> -> vector<1x1xf32>
    %144 = vector.broadcast %143 : vector<1x1xf32> to vector<1x10xf32>
    %145 = arith.mulf %140, %144 : vector<1x10xf32>
    %c0_121 = arith.constant 0 : index
    %c0_122 = arith.constant 0 : index
    %c0_123 = arith.constant 0 : index
    %146 = vector.load %arg12[%c0_121, %c0_122, %c0_123] : memref<1x1x10xf32, #tpu.memory_space<vmem>>, vector<1x1x10xf32>
    %147 = vector.shape_cast %146 : vector<1x1x10xf32> to vector<1x10xf32>
    %148 = vector.shape_cast %145 : vector<1x10xf32> to vector<1x1x10xf32>
    tpu.vector_store %arg12[%c0_121, %c0_122, %c0_123], %148 {strides = array<i32>} : memref<1x1x10xf32, #tpu.memory_space<vmem>>, vector<1x1x10xf32>,
    return
  }
  func.func @transform_0(%arg0: i32) -> (i32, i32, i32, i32) {
    %c0_i32 = arith.constant 0 : i32
    %c0_i32_0 = arith.constant 0 : i32
    %c0_i32_1 = arith.constant 0 : i32
    %c0_i32_2 = arith.constant 0 : i32
    return %arg0, %c0_i32, %c0_i32_0, %c0_i32_1 : i32, i32, i32, i32
  }
  func.func @transform_1(%arg0: i32) -> (i32, i32, i32) {
    %c0_i32 = arith.constant 0 : i32
    %c0_i32_0 = arith.constant 0 : i32
    %c0_i32_1 = arith.constant 0 : i32
    %c0_i32_2 = arith.constant 0 : i32
    return %c0_i32, %c0_i32_0, %c0_i32_1 : i32, i32, i32
  }
  func.func @transform_2(%arg0: i32) -> (i32, i32) {
    %c0_i32 = arith.constant 0 : i32
    %c0_i32_0 = arith.constant 0 : i32
    %c0_i32_1 = arith.constant 0 : i32
    return %c0_i32, %c0_i32_0 : i32, i32
  }
  func.func @transform_3(%arg0: i32) -> (i32, i32, i32) {
    %c0_i32 = arith.constant 0 : i32
    %c0_i32_0 = arith.constant 0 : i32
    %c0_i32_1 = arith.constant 0 : i32
    %c0_i32_2 = arith.constant 0 : i32
    return %c0_i32, %c0_i32_0, %c0_i32_1 : i32, i32, i32
  }
  func.func @transform_4(%arg0: i32) -> (i32, i32) {
    %c0_i32 = arith.constant 0 : i32
    %c0_i32_0 = arith.constant 0 : i32
    %c0_i32_1 = arith.constant 0 : i32
    return %c0_i32, %c0_i32_0 : i32, i32
  }
  func.func @transform_5(%arg0: i32) -> (i32, i32, i32) {
    %c0_i32 = arith.constant 0 : i32
    %c0_i32_0 = arith.constant 0 : i32
    %c0_i32_1 = arith.constant 0 : i32
    %c0_i32_2 = arith.constant 0 : i32
    return %c0_i32, %c0_i32_0, %c0_i32_1 : i32, i32, i32
  }
  func.func @transform_6(%arg0: i32) -> (i32, i32) {
    %c0_i32 = arith.constant 0 : i32
    %c0_i32_0 = arith.constant 0 : i32
    %c0_i32_1 = arith.constant 0 : i32
    return %c0_i32, %c0_i32_0 : i32, i32
  }
  func.func @transform_7(%arg0: i32) -> (i32, i32) {
    %c0_i32 = arith.constant 0 : i32
    %c0_i32_0 = arith.constant 0 : i32
    %c0_i32_1 = arith.constant 0 : i32
    return %c0_i32, %c0_i32_0 : i32, i32
  }
  func.func @transform_8(%arg0: i32) -> (i32, i32) {
    %c0_i32 = arith.constant 0 : i32
    %c0_i32_0 = arith.constant 0 : i32
    %c0_i32_1 = arith.constant 0 : i32
    return %c0_i32, %c0_i32_0 : i32, i32
  }
  func.func @transform_9(%arg0: i32) -> (i32, i32) {
    %c0_i32 = arith.constant 0 : i32
    %c0_i32_0 = arith.constant 0 : i32
    %c0_i32_1 = arith.constant 0 : i32
    return %c0_i32, %c0_i32_0 : i32, i32
  }
  func.func @transform_10(%arg0: i32) -> (i32, i32) {
    %c0_i32 = arith.constant 0 : i32
    %c0_i32_0 = arith.constant 0 : i32
    %c0_i32_1 = arith.constant 0 : i32
    return %c0_i32, %c0_i32_0 : i32, i32
  }
  func.func @transform_11(%arg0: i32) -> (i32, i32, i32) {
    %c0_i32 = arith.constant 0 : i32
    %c0_i32_0 = arith.constant 0 : i32
    %c0_i32_1 = arith.constant 0 : i32
    return %arg0, %c0_i32, %c0_i32_0 : i32, i32, i32
  }
}

</mosaic_0001>

<bundles_post_ra>
// kernel: tpu_custom_call.1
= control target key start
LH: loop header
LB: loop body
LE: loop exit
PB: predicated region body
PF: predicated region fallthrough
CT: control target
= control target key end

     0   :  { %16 = vsyncpa [#allocation3], 0  ;;  %s10116_s0 = inlined_call_operand.vmem [shape: f32[2,3,32,32], index: 0, kind: input, shape index: {}]   ;;  %s10117_s1 = inlined_call_operand.vmem [shape: f32[9,32,300], index: 1, kind: input, shape index: {}]   ;;  %s10118_s2 = inlined_call_operand.vmem [shape: f32[1,300], index: 2, kind: input, shape index: {}]   ;;  %s10119_s3 = inlined_call_operand.vmem [shape: f32[3,290,260], index: 3, kind: input, shape index: {}]   ;;  %s10120_s4 = inlined_call_operand.vmem [shape: f32[1,260], index: 4, kind: input, shape index: {}]   ;;  %s10121_s5 = inlined_call_operand.vmem [shape: f32[6,240,8], index: 5, kind: input, shape index: {}]   ;;  %s10122_s6 = inlined_call_operand.vmem [shape: f32[1,8], index: 6, kind: input, shape index: {}]   ;;  %s10123_s7 = inlined_call_operand.vmem [shape: f32[8,120], index: 7, kind: input, shape index: {}]   ;;  %s10124_s8 = inlined_call_operand.vmem [shape: f32[1,120], index: 8, kind: input, shape index: {}]   ;;  %s10125_s9 = inlined_call_operand.vmem [shape: f32[120,10], index: 9, kind: input, shape index: {}]   ;;  %s10126_s10 = inlined_call_operand.vmem [shape: f32[1,10], index: 10, kind: input, shape index: {}]   ;;  %s10127_s11 = inlined_call_operand.hbm [shape: f32[2,1,10], index: 11, kind: output, shape index: {}]  }
   0x1   :  { %18 = vsyncpa [#allocation3 + $0x1], 0  ;;  %s7265_s17 = smov 0   ;;  %s7267_s18 = smov 0  }
   0x2   :  { %s7269_s19 = smov 0   ;;  %s7271_s20 = smov 0  }
   0x3 LB: > { %10129 = sst [smem:[#allocation5_spill]] %s7193_s19  ;;  %s7286_s21 = sadd.s32 4294967295, %s7197_s20   ;;  %s7197_s20 = sphi %s7271_s20, %s10137_s20   ;;  %s7193_s19 = sphi %s7269_s19, %s10134_s19   ;;  %s7189_s18 = sphi %s7267_s18, %s10136_s18   ;;  %s7185_s17 = sphi %s7265_s17, %s10135_s17  }
   0x4   : > { %s5027_s22 = sadd.s32 4294967294, %s7197_s20   ;;  %s7290_s23 = sadd.s32 1, %s7197_s20  }
   0x5   : > { %s267_s24 = sadd.s32 1, %s7193_s19  ;;  %s264_s25 = ssub.s32 %s7197_s20, %s7290_s23 }
   0x6   : > { %p277_p0 = scmp.ne.s32.totalorder %s7193_s19, %s7189_s18  ;;  %p265_p1 = scmp.eq.s32.totalorder %s264_s25, 0 }
   0x7   : > { %p278_p2 = scmp.eq.s32.totalorder %s7286_s21, 1  ;;  %p283_p3 = scmp.ne.s32.totalorder %s7189_s18, %s7185_s17 }
   0x8   : > { %p284_p4 = scmp.eq.s32.totalorder %s5027_s22, 1  ;;  %p5030_p7 = scmp.ge.s32.totalorder %s7197_s20, 1 }
   0x9   : > { %s7301_s26 = scalar_select %p265_p1, %s7193_s19, %s267_s24  }
   0xa   : > { %p7303_p5 = por %p278_p2, %p277_p0  ;;  %p7307_p6 = por %p284_p4, %p283_p3 }
   0xb   : > { %10130 = sst [smem:[#allocation6_spill]] %s7301_s26  ;;  %p340_p8 = scmp.lt.s32.totalorder %s7197_s20, 3 }
   0xd   : > { %p341_p9 = pnand %p5030_p7, %p340_p8 }
   0xe   : > { %v406_v0 = vld [vmem:[%s10117_s1 + $0x8] sm:$0xff] (!%p341_p9)  ;;  %v409_v1 = vld [vmem:[%s10117_s1 + $0x20] sm:$0xff] (!%p341_p9)  ;;  %p379_p10 = scmp.lt.s32.totalorder (!%p341_p9), %s7286_s21, 1  ;;  %v408_v4 = vld [vmem:[%s10117_s1 + $0x18] sm:$0xff] (!%p341_p9)  ;;  %v7199_v7 = vmov (!%p341_p9), 0.0   ;;  %vm417_vm0 = vcmask (!%p341_p9), 261120  }
   0xf   : > { %344 = sbr.rel (%p341_p9) target bundleno = 2314 (0x90a), region = 64  ;;  %v405_v2 = vld [vmem:[%s10117_s1] sm:$0xff] (!%p341_p9)  ;;  %v6101_v3 = vpack.c.bf16 (!%p341_p9), %v409_v1, %v406_v0  ;;  %v412_v5 = vld [vmem:[%s10117_s1 + $0x38] sm:$0xff] (!%p341_p9)  ;;  %v415_v6 = vld [vmem:[%s10117_s1 + $0x50] sm:$0xff] (!%p341_p9)  ;;  %494 = vmatprep.mubr.f32.mxu0 (!%p341_p9), %v7199_v7  ;;  %506 = vmatprep.mubr.f32.mxu1 (!%p341_p9), %v7199_v7  ;;  %vm2350_vm1 = vcmask (!%p341_p9), 1046528   ;;  %vm2432_vm2 = vcmask (!%p341_p9), 965632  }
  0x10   : > { %v6103_v8 = vpack.c.bf16 (!%p341_p9), %v408_v4, %v405_v2  ;;  %v6105_v9 = vpack.c.bf16 (!%p341_p9), %v415_v6, %v412_v5  ;;  %v411_v10 = vld [vmem:[%s10117_s1 + $0x30] sm:$0xff] (!%p341_p9)  ;;  %v414_v11 = vld [vmem:[%s10117_s1 + $0x48] sm:$0xff] (!%p341_p9)  ;;  %v5044_v15 = vld [vmem:[%s10117_s1 + $0x80] sm:$0xff] (!%p341_p9)  ;;  %vm3108_vm3 = vcmask (!%p341_p9), 1045504   ;;  %vm2618_vm4 = vcmask (!%p341_p9), 1041408  }
  0x11   : > { %v407_v12 = vld [vmem:[%s10117_s1 + $0x10] sm:$0xff] (!%p341_p9)  ;;  %6102 = vmatprep.subr.bf16.mxu0 (!%p341_p9), %v6101_v3  ;;  %6872 = vmatprep.subr.bf16.mxu1 (!%p341_p9), %v6101_v3  ;;  %v410_v13 = vld [vmem:[%s10117_s1 + $0x28] sm:$0xff] (!%p341_p9)  ;;  %v6107_v16 = vpack.c.bf16 (!%p341_p9), %v414_v11, %v411_v10  ;;  %v5040_v19 = vld [vmem:[%s10117_s1 + $0x60] sm:$0xff] (!%p341_p9)  ;;  %vm3627_vm5 = vcmask (!%p341_p9), 1043456   ;;  %vm2605_vm6 = vcmask (!%p341_p9), 277504   ;;  %vm4112_vm7 = vcmask (!%p341_p9), 883712  }
  0x12   : > { %v5041_v14 = vld [vmem:[%s10117_s1 + $0x68] sm:$0xff] (!%p341_p9)  ;;  %6104 = vmatpush1.bf16.msra.mxu0 (!%p341_p9), %v6103_v8  ;;  %6874 = vmatpush1.bf16.msra.mxu1 (!%p341_p9), %v6103_v8  ;;  %v6109_v17 = vpack.c.bf16 (!%p341_p9), %v410_v13, %v407_v12  ;;  %v5043_v20 = vld [vmem:[%s10117_s1 + $0x78] sm:$0xff] (!%p341_p9)  ;;  %v413_v21 = vld [vmem:[%s10117_s1 + $0x40] sm:$0xff] (!%p341_p9)  ;;  %vm4168_vm8 = vcmask (!%p341_p9), 916480   ;;  %vm7203_vm9 = vmmov (!%p341_p9), 0   ;;  %vm4780_vm10 = vcmask (!%p341_p9), 64512  }
  0x13   : > { %6106 = vmatprep.subr.bf16.mxu0 (!%p341_p9), %v6105_v9  ;;  %6873 = vmatprep.subr.bf16.mxu1 (!%p341_p9), %v6105_v9  ;;  %v6117_v18 = vpack.c.bf16 (!%p341_p9), %v5044_v15, %v5041_v14  ;;  %v416_v22 = vld [vmem:[%s10117_s1 + $0x58] sm:$0xff] (!%p341_p9)  ;;  %v5050_v24 = vld [vmem:[%s10117_s1 + $0xb0] sm:$0xff] (!%p341_p9)  ;;  %v6119_v27 = vpack.c.bf16 (!%p341_p9), %v5043_v20, %v5040_v19  ;;  %v5049_v29 = vld [vmem:[%s10117_s1 + $0xa8] sm:$0xff] (!%p341_p9)  ;;  %vm4871_vm11 = vcmask (!%p341_p9), 982016   ;;  %vm4946_vm12 = vcmask (!%p341_p9), 73728  }
  0x14   : > { %v5047_v23 = vld [vmem:[%s10117_s1 + $0x98] sm:$0xff] (!%p341_p9)  ;;  %v5046_v28 = vld [vmem:[%s10117_s1 + $0x90] sm:$0xff] (!%p341_p9)  ;;  %v6113_v30 = vpack.c.bf16 (!%p341_p9), %v416_v22, %v413_v21  ;;  %v5045_v33 = vld [vmem:[%s10117_s1 + $0x88] sm:$0xff] (!%p341_p9) }
  0x15   : > { %v6121_v31 = vpack.c.bf16 (!%p341_p9), %v5050_v24, %v5047_v23  ;;  %v5042_v32 = vld [vmem:[%s10117_s1 + $0x70] sm:$0xff] (!%p341_p9)  ;;  %v5061_v34 = vld [vmem:[%s10117_s1 + $0xc8] sm:$0xff] (!%p341_p9)  ;;  %v5064_v35 = vld [vmem:[%s10117_s1 + $0xe0] sm:$0xff] (!%p341_p9)  ;;  %v6123_v38 = vpack.c.bf16 (!%p341_p9), %v5049_v29, %v5046_v28 }
  0x16   : > { %s380_s16 = scalar_select %p379_p10, %s7286_s21, 1  ;;  %6108 = vmatpush1.bf16.msra.mxu0 %v6107_v16  ;;  %6875 = vmatpush1.bf16.msra.mxu1 %v6107_v16  ;;  %v5060_v39 = vld [vmem:[%s10117_s1 + $0xc0] sm:$0xff]  ;;  %v5063_v40 = vld [vmem:[%s10117_s1 + $0xd8] sm:$0xff]  ;;  %v6125_v41 = vpack.c.bf16 %v5045_v33, %v5042_v32  ;;  %v6133_v42 = vpack.c.bf16 %v5064_v35, %v5061_v34  ;;  %v5070_v46 = vld [vmem:[%s10117_s1 + $0x110] sm:$0xff] }
  0x17   : > { %6110 = vmatprep.subr.bf16.mxu1 %v6109_v17  ;;  %6118 = vmatprep.subr.bf16.mxu0 %v6117_v18  ;;  %v5048_v43 = vld [vmem:[%s10117_s1 + $0xa0] sm:$0xff]  ;;  %v5051_v44 = vld [vmem:[%s10117_s1 + $0xb8] sm:$0xff]  ;;  %v6135_v48 = vpack.c.bf16 %v5063_v40, %v5060_v39  ;;  %v5062_v51 = vld [vmem:[%s10117_s1 + $0xd0] sm:$0xff] }
  0x18   : > { %s7066_s14 = smul.u32 96, %s380_s16  ;;  %v5067_v45 = vld [vmem:[%s10117_s1 + $0xf8] sm:$0xff]  ;;  %v6129_v49 = vpack.c.bf16 %v5051_v44, %v5048_v43  ;;  %v5065_v52 = vld [vmem:[%s10117_s1 + $0xe8] sm:$0xff]  ;;  %v5066_v53 = vld [vmem:[%s10117_s1 + $0xf0] sm:$0xff] }
  0x19   : > { %v6137_v50 = vpack.c.bf16 %v5070_v46, %v5067_v45  ;;  %v5069_v54 = vld [vmem:[%s10117_s1 + $0x108] sm:$0xff]  ;;  %v6141_v56 = vpack.c.bf16 %v5065_v52, %v5062_v51  ;;  %v5068_v58 = vld [vmem:[%s10117_s1 + $0x100] sm:$0xff]  ;;  %v5071_v59 = vld [vmem:[%s10117_s1 + $0x118] sm:$0xff] }
  0x1a   : > { %s7362_s30 = scalar_lea.vmem %s10116_s0, %s7066_s14  ;;  %v6139_v57 = vpack.c.bf16 %v5069_v54, %v5066_v53  ;;  %v5085_v60 = vld [vmem:[%s10117_s1 + $0x128] sm:$0xff]  ;;  %v5088_v61 = vld [vmem:[%s10117_s1 + $0x140] sm:$0xff]  ;;  %v6145_v63 = vpack.c.bf16 %v5071_v59, %v5068_v58  ;;  %v5086_v1 = vld [vmem:[%s10117_s1 + $0x130] sm:$0xff]  ;;  %s7202_s14 = smov 108  }
  0x1b   : > { %v401_v25 = vld [vmem:[%s7362_s30] sm:$0xff]  ;;  %v403_v26 = vld [vmem:[%s7362_s30 + $0x10] sm:$0xff]  ;;  %v402_v36 = vld [vmem:[%s7362_s30 + $0x8] sm:$0xff]  ;;  %v6149_v0 = vpack.c.bf16 %v5088_v61, %v5085_v60 }
  0x1c   : > { %5032 = vmatmul.mubr.msk.f32.vlgmr.msra.gmra.mrb[0].mxu0 %vm417_vm0, %v401_v25  ;;  %5034 = vmatmul.mubr.msk.f32.vlgmr.msra.gmra.mrb[0].mxu1 %vm417_vm0, %v403_v26  ;;  %v404_v37 = vld [vmem:[%s7362_s30 + $0x18] sm:$0x3f]  ;;  %v616_v47 = vld [vmem:[%s7362_s30 + $0x1] sm:$0xff]  ;;  %v617_v55 = vld [vmem:[%s7362_s30 + $0x9] sm:$0xff] }
  0x1d   : > { %6112 = vmatpush3.bf16.msra.mxu1 %v6109_v17  ;;  %6120 = vmatpush1.bf16.msra.mxu0 %v6119_v27  ;;  %v618_v62 = vld [vmem:[%s7362_s30 + $0x11] sm:$0xff]  ;;  %v5089_v2 = vld [vmem:[%s10117_s1 + $0x148] sm:$0xff]  ;;  %v619_v3 = vld [vmem:[%s7362_s30 + $0x19] sm:$0x3f] }
  0x1e   : > { %500 = vmatprep.mubr.f32.mxu0 %v7199_v7  ;;  %512 = vmatprep.mubr.f32.mxu1 %v7199_v7  ;;  %v6157_v4 = vpack.c.bf16 %v5089_v2, %v5086_v1  ;;  %v5084_v5 = vld [vmem:[%s10117_s1 + $0x120] sm:$0xff]  ;;  %v5087_v6 = vld [vmem:[%s10117_s1 + $0x138] sm:$0xff]  ;;  %v5094_v12 = vld [vmem:[%s10117_s1 + $0x170] sm:$0xff] }
  0x1f   : > { %6114 = vmatprep.subr.bf16.mxu1 %v6113_v30  ;;  %6122 = vmatprep.subr.bf16.mxu0 %v6121_v31  ;;  %v831_v8 = vld [vmem:[%s7362_s30 + $0x2] sm:$0xff]  ;;  %v5095_v10 = vld [vmem:[%s10117_s1 + $0x178] sm:$0xff]  ;;  %v832_v13 = vld [vmem:[%s7362_s30 + $0xa] sm:$0xff]  ;;  %v6151_v14 = vpack.c.bf16 %v5087_v6, %v5084_v5 }
  0x20   : > { %5033 = vmatmul.mubr.msk.f32.gmra.mrb[2].mxu0 %vm417_vm0, %v402_v36  ;;  %5035 = vmatmul.mubr.msk.f32.gmra.mrb[2].mxu1 %vm417_vm0, %v404_v37  ;;  %v5092_v9 = vld [vmem:[%s10117_s1 + $0x160] sm:$0xff]  ;;  %v5091_v11 = vld [vmem:[%s10117_s1 + $0x158] sm:$0xff]  ;;  %v5110_v18 = vld [vmem:[%s10117_s1 + $0x190] sm:$0xff] }
  0x21   : > { %6116 = vmatpush3.bf16.msra.mxu1 %v6113_v30  ;;  %6124 = vmatpush1.bf16.msra.mxu0 %v6123_v38  ;;  %v833_v15 = vld [vmem:[%s7362_s30 + $0x12] sm:$0xff]  ;;  %v6161_v16 = vpack.c.bf16 %v5095_v10, %v5092_v9  ;;  %v6153_v17 = vpack.c.bf16 %v5094_v12, %v5091_v11  ;;  %v5113_v19 = vld [vmem:[%s10117_s1 + $0x1a8] sm:$0xff]  ;;  %v834_v22 = vld [vmem:[%s7362_s30 + $0x1a] sm:$0x3f] }
  0x22   : > { %5897 = vmatprep.mubr.msk.f32.mxu1 %vm417_vm0, %v401_v25  ;;  %709 = vmatprep.mubr.f32.mxu0 %v7199_v7  ;;  %v5090_v20 = vld [vmem:[%s10117_s1 + $0x150] sm:$0xff]  ;;  %v5093_v21 = vld [vmem:[%s10117_s1 + $0x168] sm:$0xff]  ;;  %v6173_v23 = vpack.c.bf16 %v5113_v19, %v5110_v18  ;;  %v5080_v24 = vld [vmem:[%s7362_s30 + $0x20] sm:$0xff] }
  0x23   : > { %6126 = vmatprep.subr.bf16.mxu1 %v6125_v41  ;;  %6134 = vmatprep.subr.bf16.mxu0 %v6133_v42  ;;  %v6155_v25 = vpack.c.bf16 %v5093_v21, %v5090_v20  ;;  %v5119_v27 = vld [vmem:[%s10117_s1 + $0x1d8] sm:$0xff]  ;;  %v5109_v28 = vld [vmem:[%s10117_s1 + $0x188] sm:$0xff]  ;;  %v5112_v29 = vld [vmem:[%s10117_s1 + $0x1a0] sm:$0xff] }
  0x24   : > { %5898 = vmatmul.mubr.msk.f32.vlgmr.msra.gmra.mrb[4].mxu1 %vm417_vm0, %v402_v36  ;;  %5052 = vmatmul.mubr.msk.f32.vlgmr.msra.gmra.mrb[0].mxu0 %vm417_vm0, %v616_v47  ;;  %v5081_v30 = vld [vmem:[%s7362_s30 + $0x28] sm:$0xff]  ;;  %v7531_v32 = vld [vmem:[%s7362_s30 + $0x30] sm:$0xff]  ;;  %v6165_v33 = vpack.c.bf16 %v5112_v29, %v5109_v28  ;;  %v7543_v36 = vld [vmem:[%s7362_s30 + $0x38] sm:$0x3f] }
  0x25   : > { %6128 = vmatpush3.bf16.msra.mxu1 %v6125_v41  ;;  %6136 = vmatpush1.bf16.msra.mxu0 %v6135_v48  ;;  %v5134_v34 = vld [vmem:[%s10117_s1 + $0x1f0] sm:$0xff]  ;;  %v5137_v35 = vld [vmem:[%s10117_s1 + $0x208] sm:$0xff]  ;;  %v5108_v38 = vld [vmem:[%s10117_s1 + $0x180] sm:$0xff] }
  0x26   : > { %5900 = vmatprep.mubr.msk.f32.mxu1 %vm417_vm0, %v403_v26  ;;  %715 = vmatprep.mubr.f32.mxu0 %v7199_v7  ;;  %v5116_v26 = vld [vmem:[%s10117_s1 + $0x1c0] sm:$0xff]  ;;  %v5111_v39 = vld [vmem:[%s10117_s1 + $0x198] sm:$0xff]  ;;  %v5118_v44 = vld [vmem:[%s10117_s1 + $0x1d0] sm:$0xff] }
  0x27   : > { %6130 = vmatprep.subr.bf16.mxu1 %v6129_v49  ;;  %6138 = vmatprep.subr.bf16.mxu0 %v6137_v50  ;;  %v6177_v31 = vpack.c.bf16 %v5119_v27, %v5116_v26  ;;  %v7554_v40 = vld [vmem:[%s7362_s30 + $0x21] sm:$0xff]  ;;  %v5143_v42 = vld [vmem:[%s10117_s1 + $0x238] sm:$0xff]  ;;  %v7573_v45 = vld [vmem:[%s7362_s30 + $0x29] sm:$0xff]  ;;  %v6167_v46 = vpack.c.bf16 %v5111_v39, %v5108_v38 }
  0x28   : > { %5901 = vmatmul.mubr.msk.f32.gmra.mrb[6].mxu1 %vm417_vm0, %v404_v37  ;;  %5053 = vmatmul.mubr.msk.f32.gmra.mrb[2].mxu0 %vm417_vm0, %v617_v55  ;;  %v6189_v37 = vpack.c.bf16 %v5137_v35, %v5134_v34  ;;  %v5140_v41 = vld [vmem:[%s10117_s1 + $0x220] sm:$0xff]  ;;  %v5115_v43 = vld [vmem:[%s10117_s1 + $0x1b8] sm:$0xff]  ;;  %v5158_v50 = vld [vmem:[%s10117_s1 + $0x250] sm:$0xff] }
  0x29   : > { %6132 = vmatpush3.bf16.msra.mxu1 %v6129_v49  ;;  %721 = vmatprep.mubr.f32.mxu0 %v7199_v7  ;;  %v6193_v48 = vpack.c.bf16 %v5143_v42, %v5140_v41  ;;  %v6169_v49 = vpack.c.bf16 %v5118_v44, %v5115_v43  ;;  %v5161_v51 = vld [vmem:[%s10117_s1 + $0x268] sm:$0xff]  ;;  %v5114_v52 = vld [vmem:[%s10117_s1 + $0x1b0] sm:$0xff]  ;;  %v7596_v54 = vld [vmem:[%s7362_s30 + $0x39] sm:$0x3f] }
  0x2a   : > { %5911 = vmatprep.mubr.msk.f32.mxu1 %vm417_vm0, %v616_v47  ;;  %6142 = vmatprep.subr.bf16.mxu1 %v6141_v56  ;;  %v7578_v47 = vld [vmem:[%s7362_s30 + $0x31] sm:$0xff]  ;;  %v5117_v53 = vld [vmem:[%s10117_s1 + $0x1c8] sm:$0xff]  ;;  %v5164_v58 = vld [vmem:[%s10117_s1 + $0x280] sm:$0xff] }
  0x2b   : > { %6140 = vmatpush1.bf16.msra.mxu0 %v6139_v57  ;;  %v6171_v57 = vpack.c.bf16 %v5117_v53, %v5114_v52  ;;  %v5167_v59 = vld [vmem:[%s10117_s1 + $0x298] sm:$0xff]  ;;  %v5133_v60 = vld [vmem:[%s10117_s1 + $0x1e8] sm:$0xff]  ;;  %v5136_v61 = vld [vmem:[%s10117_s1 + $0x200] sm:$0xff] }
  0x2c   : > { %5054 = vmatmul.mubr.msk.f32.gmra.mrb[4].mxu0 %vm417_vm0, %v618_v62  ;;  %5912 = vmatmul.mubr.msk.f32.vlgmr.msra.gmra.mrb[4].mxu1 %vm417_vm0, %v617_v55  ;;  %v6205_v55 = vpack.c.bf16 %v5161_v51, %v5158_v50  ;;  %v6181_v1 = vpack.c.bf16 %v5136_v61, %v5133_v60  ;;  %v5182_v2 = vld [vmem:[%s10117_s1 + $0x2b0] sm:$0xff]  ;;  %v5132_v6 = vld [vmem:[%s10117_s1 + $0x1e0] sm:$0xff]  ;;  %v5191_v11 = vld [vmem:[%s10117_s1 + $0x2f8] sm:$0xff] }
  0x2d   : > { %6144 = vmatpush3.bf16.msra.mxu1 %v6141_v56  ;;  %727 = vmatprep.mubr.f32.mxu0 %v7199_v7  ;;  %v7602_v56 = vld [vmem:[%s7362_s30 + $0x22] sm:$0xff]  ;;  %v5139_v12 = vld [vmem:[%s10117_s1 + $0x218] sm:$0xff]  ;;  %v5206_v19 = vld [vmem:[%s10117_s1 + $0x310] sm:$0xff] }
  0x2e   : > { %5914 = vmatprep.mubr.msk.f32.mxu1 %vm417_vm0, %v618_v62  ;;  %6146 = vmatprep.subr.bf16.mxu1 %v6145_v63  ;;  %v7621_v62 = vld [vmem:[%s7362_s30 + $0x2a] sm:$0xff]  ;;  %v7651_v9 = vld [vmem:[%s7362_s30 + $0x40] sm:$0xff]  ;;  %v5215_v28 = vld [vmem:[%s10117_s1 + $0x358] sm:$0xff] }
  0x2f   : > { %6150 = vmatprep.subr.bf16.mxu0 %v6149_v0  ;;  %v7626_v0 = vld [vmem:[%s7362_s30 + $0x32] sm:$0xff]  ;;  %v5188_v10 = vld [vmem:[%s10117_s1 + $0x2e0] sm:$0xff]  ;;  %v5209_v20 = vld [vmem:[%s10117_s1 + $0x328] sm:$0xff] }
  0x30   : > { %5055 = vmatmul.mubr.msk.f32.gmra.mrb[6].mxu0 %vm417_vm0, %v619_v3  ;;  %5915 = vmatmul.mubr.msk.f32.gmra.mrb[6].mxu1 %vm417_vm0, %v619_v3  ;;  %v5185_v3 = vld [vmem:[%s10117_s1 + $0x2c8] sm:$0xff]  ;;  %v5138_v21 = vld [vmem:[%s10117_s1 + $0x210] sm:$0xff]  ;;  %v5212_v27 = vld [vmem:[%s10117_s1 + $0x340] sm:$0xff] }
  0x31   : > { %6148 = vmatpush3.bf16.msra.mxu1 %v6145_v63  ;;  %924 = vmatprep.mubr.f32.mxu0 %v7199_v7  ;;  %v6209_v63 = vpack.c.bf16 %v5167_v59, %v5164_v58  ;;  %v6221_v5 = vpack.c.bf16 %v5185_v3, %v5182_v2  ;;  %v5157_v29 = vld [vmem:[%s10117_s1 + $0x248] sm:$0xff]  ;;  %v7734_v35 = vld [vmem:[%s7362_s30 + $0x59] sm:$0x3f]  ;;  %v5162_v44 = vld [vmem:[%s10117_s1 + $0x270] sm:$0xff] }
  0x32   : > { %5925 = vmatprep.mubr.msk.f32.mxu1 %vm417_vm0, %v831_v8  ;;  %6158 = vmatprep.subr.bf16.mxu1 %v6157_v4  ;;  %v7745_v38 = vld [vmem:[%s7362_s30 + $0x42] sm:$0xff]  ;;  %v5163_v39 = vld [vmem:[%s10117_s1 + $0x278] sm:$0xff]  ;;  %v7759_v41 = vld [vmem:[%s7362_s30 + $0x4a] sm:$0xff] }
  0x33   : > { %v5180_v52 = vld [vmem:[%s10117_s1 + $0x2a0] sm:$0xff]  ;;  %v5183_v53 = vld [vmem:[%s10117_s1 + $0x2b8] sm:$0xff]  ;;  %v5186_v58 = vld [vmem:[%s10117_s1 + $0x2d0] sm:$0xff] }
  0x34   : > { %5072 = vmatmul.mubr.msk.f32.vlgmr.msra.gmra.mrb[0].mxu0 %vm417_vm0, %v831_v8  ;;  %5926 = vmatmul.mubr.msk.f32.vlgmr.msra.gmra.mrb[4].mxu1 %vm417_vm0, %v832_v13  ;;  %v5135_v8 = vld [vmem:[%s10117_s1 + $0x1f8] sm:$0xff]  ;;  %v5189_v59 = vld [vmem:[%s10117_s1 + $0x2e8] sm:$0xff]  ;;  %v5208_v61 = vld [vmem:[%s10117_s1 + $0x320] sm:$0xff] }
  0x35   : > { %6152 = vmatpush1.bf16.msra.mxu0 %v6151_v14  ;;  %6160 = vmatpush3.bf16.msra.mxu1 %v6157_v4  ;;  %v7640_v4 = vld [vmem:[%s7362_s30 + $0x3a] sm:$0x3f]  ;;  %v7671_v14 = vld [vmem:[%s7362_s30 + $0x48] sm:$0xff]  ;;  %v5214_v3 = vld [vmem:[%s10117_s1 + $0x350] sm:$0xff] }
  0x36   : > { %930 = vmatprep.mubr.f32.mxu0 %v7199_v7  ;;  %5928 = vmatprep.mubr.msk.f32.mxu1 %vm417_vm0, %v833_v15  ;;  %v5205_v60 = vld [vmem:[%s10117_s1 + $0x308] sm:$0xff]  ;;  %v5211_v2 = vld [vmem:[%s10117_s1 + $0x338] sm:$0xff] }
  0x37   : > { %6162 = vmatprep.subr.bf16.mxu1 %v6161_v16  ;;  %6154 = vmatprep.subr.bf16.mxu0 %v6153_v17  ;;  %v6225_v17 = vpack.c.bf16 %v5191_v11, %v5188_v10 }
  0x38   : > { %5073 = vmatmul.mubr.msk.f32.gmra.mrb[2].mxu0 %vm417_vm0, %v832_v13  ;;  %5929 = vmatmul.mubr.msk.f32.gmra.mrb[6].mxu1 %vm417_vm0, %v834_v22  ;;  %v5142_v13 = vld [vmem:[%s10117_s1 + $0x230] sm:$0xff] }
  0x39   : > { %6164 = vmatpush3.bf16.msra.mxu1 %v6161_v16  ;;  %936 = vmatprep.mubr.f32.mxu0 %v7199_v7  ;;  %v7676_v16 = vld [vmem:[%s7362_s30 + $0x50] sm:$0xff]  ;;  %v6185_v18 = vpack.c.bf16 %v5142_v13, %v5139_v12 }
  0x3a   : > { %5939 = vmatprep.mubr.msk.f32.mxu1 %vm417_vm0, %v5080_v24  ;;  %6174 = vmatprep.subr.bf16.mxu1 %v6173_v23 }
  0x3b   : > { %6156 = vmatpush1.bf16.msra.mxu0 %v6155_v25  ;;  %v7701_v25 = vld [vmem:[%s7362_s30 + $0x41] sm:$0xff] }
  0x3c   : > { %5074 = vmatmul.mubr.msk.f32.gmra.mrb[4].mxu0 %vm417_vm0, %v833_v15  ;;  %5940 = vmatmul.mubr.msk.f32.vlgmr.msra.gmra.mrb[4].mxu1 %vm417_vm0, %v5081_v30  ;;  %v6183_v15 = vpack.c.bf16 %v5135_v8, %v5132_v6  ;;  %v5210_v6 = vld [vmem:[%s10117_s1 + $0x330] sm:$0xff]  ;;  %v5213_v8 = vld [vmem:[%s10117_s1 + $0x348] sm:$0xff] }
  0x3d   : > { %6176 = vmatpush3.bf16.msra.mxu1 %v6173_v23  ;;  %942 = vmatprep.mubr.f32.mxu0 %v7199_v7  ;;  %v7695_v23 = vld [vmem:[%s7362_s30 + $0x58] sm:$0x3f] }
  0x3e   : > { %5942 = vmatprep.mubr.msk.f32.mxu1 %vm417_vm0, %v7531_v32  ;;  %6178 = vmatprep.subr.bf16.mxu1 %v6177_v31 }
  0x3f   : > { %6166 = vmatprep.subr.bf16.mxu0 %v6165_v33  ;;  %v7726_v33 = vld [vmem:[%s7362_s30 + $0x51] sm:$0xff] }
  0x40   : > { %5075 = vmatmul.mubr.msk.f32.gmra.mrb[6].mxu0 %vm417_vm0, %v834_v22  ;;  %5943 = vmatmul.mubr.msk.f32.gmra.mrb[6].mxu1 %vm417_vm0, %v7543_v36  ;;  %v5141_v22 = vld [vmem:[%s10117_s1 + $0x228] sm:$0xff] }
  0x41   : > { %6180 = vmatpush3.bf16.msra.mxu1 %v6177_v31  ;;  %1140 = vmatprep.mubr.f32.mxu0 %v7199_v7  ;;  %v6187_v26 = vpack.c.bf16 %v5141_v22, %v5138_v21  ;;  %v7721_v31 = vld [vmem:[%s7362_s30 + $0x49] sm:$0xff] }
  0x42   : > { %5953 = vmatprep.mubr.msk.f32.mxu1 %vm417_vm0, %v7554_v40  ;;  %6190 = vmatprep.subr.bf16.mxu1 %v6189_v37 }
  0x44   : > { %5096 = vmatmul.mubr.msk.f32.vlgmr.msra.gmra.mrb[0].mxu0 %vm417_vm0, %v5080_v24  ;;  %5954 = vmatmul.mubr.msk.f32.vlgmr.msra.gmra.mrb[4].mxu1 %vm417_vm0, %v7573_v45  ;;  %v6237_v24 = vpack.c.bf16 %v5209_v20, %v5206_v19  ;;  %v386_v20 = vlaneseq }
  0x45   : > { %6168 = vmatpush1.bf16.msra.mxu0 %v6167_v46  ;;  %6192 = vmatpush3.bf16.msra.mxu1 %v6189_v37  ;;  %v5159_v37 = vld [vmem:[%s10117_s1 + $0x258] sm:$0xff] }
  0x46   : > { %1146 = vmatprep.mubr.f32.mxu0 %v7199_v7  ;;  %5956 = vmatprep.mubr.msk.f32.mxu1 %vm417_vm0, %v7578_v47  ;;  %v7770_v46 = vld [vmem:[%s7362_s30 + $0x52] sm:$0xff]  ;;  %v7896_v21 = vshrl.u32 %v386_v20, 7 }
  0x47   : > { %6194 = vmatprep.subr.bf16.mxu1 %v6193_v48  ;;  %6170 = vmatprep.subr.bf16.mxu0 %v6169_v49  ;;  %v7784_v49 = vld [vmem:[%s7362_s30 + $0x5a] sm:$0x3f]  ;;  %s7200_s30 = smov 118  }
  0x48   : > { %5097 = vmatmul.mubr.msk.f32.gmra.mrb[2].mxu0 %vm417_vm0, %v5081_v30  ;;  %5957 = vmatmul.mubr.msk.f32.gmra.mrb[6].mxu1 %vm417_vm0, %v7596_v54  ;;  %v5160_v30 = vld [vmem:[%s10117_s1 + $0x260] sm:$0xff]  ;;  %v396_v22 = vsub.s32 2, %v7896_v21 }
  0x49   : > { %6196 = vmatpush3.bf16.msra.mxu1 %v6193_v48  ;;  %1152 = vmatprep.mubr.f32.mxu0 %v7199_v7  ;;  %v6197_v34 = vpack.c.bf16 %v5160_v30, %v5157_v29  ;;  %v5184_v48 = vld [vmem:[%s10117_s1 + $0x2c0] sm:$0xff]  ;;  %v2503_v29 = vld [vmem:[%s10119_s3 + $0x48] sm:$0xff] }
  0x4a   : > { %5967 = vmatprep.mubr.msk.f32.mxu1 %vm417_vm0, %v7602_v56  ;;  %6206 = vmatprep.subr.bf16.mxu1 %v6205_v55 }
  0x4b   : > { %6172 = vmatpush1.bf16.msra.mxu0 %v6171_v57 }
  0x4c   : > { %5098 = vmatmul.mubr.msk.f32.gmra.mrb[4].mxu0 %vm417_vm0, %v7531_v32  ;;  %5968 = vmatmul.mubr.msk.f32.vlgmr.msra.gmra.mrb[4].mxu1 %vm417_vm0, %v7621_v62  ;;  %v6241_v32 = vpack.c.bf16 %v5215_v28, %v5212_v27  ;;  %v2500_v28 = vld [vmem:[%s10119_s3 + $0x30] sm:$0xff] }
  0x4d   : > { %6208 = vmatpush3.bf16.msra.mxu1 %v6205_v55  ;;  %1158 = vmatprep.mubr.f32.mxu0 %v7199_v7  ;;  %v5190_v55 = vld [vmem:[%s10117_s1 + $0x2f0] sm:$0xff]  ;;  %v6251_v30 = vpack.c.bf16 %v2503_v29, %v2500_v28 }
  0x4e   : > { %5970 = vmatprep.mubr.msk.f32.mxu1 %vm417_vm0, %v7626_v0  ;;  %6210 = vmatprep.subr.bf16.mxu1 %v6209_v63  ;;  %v2540_v28 = vld [vmem:[%s10119_s3 + $0x170] sm:$0xff] }
  0x4f   : > { %6182 = vmatprep.subr.bf16.mxu0 %v6181_v1  ;;  %v5207_v1 = vld [vmem:[%s10117_s1 + $0x318] sm:$0xff] }
  0x50   : > { %5099 = vmatmul.mubr.msk.f32.gmra.mrb[6].mxu0 %vm417_vm0, %v7543_v36  ;;  %5971 = vmatmul.mubr.msk.f32.gmra.mrb[6].mxu1 %vm417_vm0, %v7640_v4  ;;  %v5156_v36 = vld [vmem:[%s10117_s1 + $0x240] sm:$0xff] }
  0x51   : > { %6212 = vmatpush3.bf16.msra.mxu1 %v6209_v63  ;;  %1355 = vmatprep.mubr.f32.mxu0 %v7199_v7  ;;  %v6199_v42 = vpack.c.bf16 %v5159_v37, %v5156_v36  ;;  %v6229_v63 = vpack.c.bf16 %v5208_v61, %v5205_v60  ;;  %v2525_v61 = vld [vmem:[%s10119_s3 + $0xf8] sm:$0xff] }
  0x52   : > { %5981 = vmatprep.mubr.msk.f32.mxu1 %vm417_vm0, %v7651_v9  ;;  %6222 = vmatprep.subr.bf16.mxu1 %v6221_v5 }
  0x54   : > { %5120 = vmatmul.mubr.msk.f32.vlgmr.msra.gmra.mrb[0].mxu0 %vm417_vm0, %v7554_v40  ;;  %5982 = vmatmul.mubr.msk.f32.vlgmr.msra.gmra.mrb[4].mxu1 %vm417_vm0, %v7671_v14  ;;  %v5166_v40 = vld [vmem:[%s10117_s1 + $0x290] sm:$0xff] }
  0x55   : > { %6184 = vmatpush1.bf16.msra.mxu0 %v6183_v15  ;;  %6224 = vmatpush3.bf16.msra.mxu1 %v6221_v5  ;;  %v6201_v43 = vpack.c.bf16 %v5166_v40, %v5163_v39  ;;  %v6233_v5 = vpack.c.bf16 %v5214_v3, %v5211_v2  ;;  %v2498_v15 = vld [vmem:[%s10119_s3 + $0x20] sm:$0xff]  ;;  %v2509_v39 = vld [vmem:[%s10119_s3 + $0x78] sm:$0xff] }
  0x56   : > { %1361 = vmatprep.mubr.f32.mxu0 %v7199_v7  ;;  %5984 = vmatprep.mubr.msk.f32.mxu1 %vm417_vm0, %v7676_v16 }
  0x57   : > { %6226 = vmatprep.subr.bf16.mxu1 %v6225_v17  ;;  %6186 = vmatprep.subr.bf16.mxu0 %v6185_v18  ;;  %v2497_v18 = vld [vmem:[%s10119_s3 + $0x18] sm:$0xff] }
  0x58   : > { %5121 = vmatmul.mubr.msk.f32.gmra.mrb[2].mxu0 %vm417_vm0, %v7573_v45  ;;  %5985 = vmatmul.mubr.msk.f32.gmra.mrb[6].mxu1 %vm417_vm0, %v7695_v23  ;;  %v5165_v45 = vld [vmem:[%s10117_s1 + $0x288] sm:$0xff] }
  0x59   : > { %6228 = vmatpush3.bf16.msra.mxu1 %v6225_v17  ;;  %1367 = vmatprep.mubr.f32.mxu0 %v7199_v7  ;;  %v6203_v50 = vpack.c.bf16 %v5165_v45, %v5162_v44  ;;  %v2513_v44 = vld [vmem:[%s10119_s3 + $0x98] sm:$0xff]  ;;  %v2516_v45 = vld [vmem:[%s10119_s3 + $0xb0] sm:$0xff] }
  0x5a   : > { %5995 = vmatprep.mubr.msk.f32.mxu1 %vm417_vm0, %v7701_v25  ;;  %6238 = vmatprep.subr.bf16.mxu1 %v6237_v24 }
  0x5b   : > { %6188 = vmatpush1.bf16.msra.mxu0 %v6187_v26  ;;  %v2504_v26 = vld [vmem:[%s10119_s3 + $0x50] sm:$0xff] }
  0x5c   : > { %5122 = vmatmul.mubr.msk.f32.gmra.mrb[4].mxu0 %vm417_vm0, %v7578_v47  ;;  %5996 = vmatmul.mubr.msk.f32.vlgmr.msra.gmra.mrb[4].mxu1 %vm417_vm0, %v7721_v31  ;;  %v5181_v47 = vld [vmem:[%s10117_s1 + $0x2a8] sm:$0xff] }
  0x5d   : > { %6240 = vmatpush3.bf16.msra.mxu1 %v6237_v24  ;;  %1373 = vmatprep.mubr.f32.mxu0 %v7199_v7  ;;  %v6213_v51 = vpack.c.bf16 %v5184_v48, %v5181_v47 }
  0x5e   : > { %5998 = vmatprep.mubr.msk.f32.mxu1 %vm417_vm0, %v7726_v33  ;;  %6242 = vmatprep.subr.bf16.mxu1 %v6241_v32 }
  0x5f   : > { %6198 = vmatprep.subr.bf16.mxu0 %v6197_v34  ;;  %v2507_v34 = vld [vmem:[%s10119_s3 + $0x68] sm:$0xff] }
  0x60   : > { %5123 = vmatmul.mubr.msk.f32.gmra.mrb[6].mxu0 %vm417_vm0, %v7596_v54  ;;  %5999 = vmatmul.mubr.msk.f32.gmra.mrb[6].mxu1 %vm417_vm0, %v7734_v35  ;;  %v5187_v54 = vld [vmem:[%s10117_s1 + $0x2d8] sm:$0xff] }
  0x61   : > { %6244 = vmatpush3.bf16.msra.mxu1 %v6241_v32  ;;  %1570 = vmatprep.mubr.f32.mxu0 %v7199_v7  ;;  %v6217_v57 = vpack.c.bf16 %v5190_v55, %v5187_v54 }
  0x62   : > { %6009 = vmatprep.mubr.msk.f32.mxu1 %vm417_vm0, %v7745_v38 }
  0x64   : > { %5144 = vmatmul.mubr.msk.f32.vlgmr.msra.gmra.mrb[0].mxu0 %vm417_vm0, %v7602_v56  ;;  %6010 = vmatmul.mubr.msk.f32.vlgmr.msra.gmra.mrb[4].mxu1 %vm417_vm0, %v7759_v41  ;;  %v6215_v56 = vpack.c.bf16 %v5183_v53, %v5180_v52  ;;  %v2522_v52 = vld [vmem:[%s10119_s3 + $0xe0] sm:$0xff] }
  0x65   : > { %6200 = vmatpush1.bf16.msra.mxu0 %v6199_v42  ;;  %1576 = vmatprep.mubr.f32.mxu0 %v7199_v7 }
  0x66   : > { %6012 = vmatprep.mubr.msk.f32.mxu1 %vm417_vm0, %v7770_v46  ;;  %6202 = vmatprep.subr.bf16.mxu0 %v6201_v43 }
  0x68   : > { %5145 = vmatmul.mubr.msk.f32.gmra.mrb[2].mxu0 %vm417_vm0, %v7621_v62  ;;  %6013 = vmatmul.mubr.msk.f32.gmra.mrb[6].mxu1 %vm417_vm0, %v7784_v49  ;;  %v6219_v62 = vpack.c.bf16 %v5189_v59, %v5186_v58  ;;  %v2521_v58 = vld [vmem:[%s10119_s3 + $0xd8] sm:$0xff] }
  0x69   : > { %1582 = vmatprep.mubr.f32.mxu0 %v7199_v7  ;;  %6204 = vmatpush1.bf16.msra.mxu0 %v6203_v50  ;;  %v2515_v50 = vld [vmem:[%s10119_s3 + $0xa8] sm:$0xff] }
  0x6a   : > { %6214 = vmatprep.subr.bf16.mxu0 %v6213_v51  ;;  %v2519_v51 = vld [vmem:[%s10119_s3 + $0xc8] sm:$0xff] }
  0x6c   : > { %5146 = vmatmul.mubr.msk.f32.gmra.mrb[4].mxu0 %vm417_vm0, %v7626_v0  ;;  %v5204_v0 = vld [vmem:[%s10117_s1 + $0x300] sm:$0xff] }
  0x6d   : > { %1588 = vmatprep.mubr.f32.mxu0 %v7199_v7 }
  0x70   : > { %5147 = vmatmul.mubr.msk.f32.gmra.mrb[6].mxu0 %vm417_vm0, %v7640_v4  ;;  %v6231_v4 = vpack.c.bf16 %v5207_v1, %v5204_v0 }
  0x71   : > { %1786 = vmatprep.mubr.f32.mxu0 %v7199_v7 }
  0x74   : > { %5168 = vmatmul.mubr.msk.f32.vlgmr.msra.gmra.mrb[0].mxu0 %vm417_vm0, %v7651_v9  ;;  %v6235_v9 = vpack.c.bf16 %v5213_v8, %v5210_v6 }
  0x75   : > { %6216 = vmatpush1.bf16.msra.mxu0 %v6215_v56  ;;  %1792 = vmatprep.mubr.f32.mxu0 %v7199_v7  ;;  %v6261_v56 = vpack.c.bf16 %v2522_v52, %v2519_v51  ;;  %v2545_v51 = vld [vmem:[%s10119_s3 + $0x198] sm:$0xff] }
  0x76   : > { %6218 = vmatprep.subr.bf16.mxu0 %v6217_v57  ;;  %v2518_v57 = vld [vmem:[%s10119_s3 + $0xc0] sm:$0xff] }
  0x77   : > { %v6263_v0 = vpack.c.bf16 %v2521_v58, %v2518_v57  ;;  %v5255_v57 = vld [vmem:[%s10119_s3 + $0x418] sm:$0xff]  ;;  %v5258_v58 = vld [vmem:[%s10119_s3 + $0x430] sm:$0xff] }
  0x78   : > { %5169 = vmatmul.mubr.msk.f32.gmra.mrb[2].mxu0 %vm417_vm0, %v7671_v14  ;;  %v2495_v14 = vld [vmem:[%s10119_s3 + $0x8] sm:$0xff] }
  0x79   : > { %1798 = vmatprep.mubr.f32.mxu0 %v7199_v7  ;;  %6220 = vmatpush1.bf16.msra.mxu0 %v6219_v62  ;;  %v6245_v17 = vpack.c.bf16 %v2498_v15, %v2495_v14  ;;  %v2528_v62 = vld [vmem:[%s10119_s3 + $0x110] sm:$0xff]  ;;  %v2534_v14 = vld [vmem:[%s10119_s3 + $0x140] sm:$0xff]  ;;  %v5285_v15 = vld [vmem:[%s10119_s3 + $0x508] sm:$0xff] }
  0x7a   : > { %6230 = vmatprep.subr.bf16.mxu0 %v6229_v63  ;;  %v6265_v3 = vpack.c.bf16 %v2528_v62, %v2525_v61  ;;  %v2552_v61 = vld [vmem:[%s10119_s3 + $0x1d0] sm:$0xff]  ;;  %v5309_v62 = vld [vmem:[%s10119_s3 + $0x5c8] sm:$0xff] }
  0x7b   : > { %6246 = vmatprep.subr.bf16.mxu1 %v6245_v17  ;;  %v2530_v17 = vld [vmem:[%s10119_s3 + $0x120] sm:$0xff] }
  0x7c   : > { %5170 = vmatmul.mubr.msk.f32.gmra.mrb[4].mxu0 %vm417_vm0, %v7676_v16  ;;  %v2494_v16 = vld [vmem:[%s10119_s3] sm:$0xff] }
  0x7d   : > { %1804 = vmatprep.mubr.f32.mxu0 %v7199_v7  ;;  %v6247_v19 = vpack.c.bf16 %v2497_v18, %v2494_v16  ;;  %v2533_v18 = vld [vmem:[%s10119_s3 + $0x138] sm:$0xff] }
  0x7f   : > { %6248 = vmatpush1.bf16.msra.mxu1 %v6247_v19  ;;  %v5288_v19 = vld [vmem:[%s10119_s3 + $0x520] sm:$0xff] }
  0x80   : > { %5171 = vmatmul.mubr.msk.f32.gmra.mrb[6].mxu0 %vm417_vm0, %v7695_v23  ;;  %v7902_v23 = vld [vmem:[%s10118_s2] sm:$0x7] }
  0x81   : > { %2001 = vmatprep.mubr.f32.mxu0 %v7199_v7  ;;  %v397_v24 = vrot.slane %v7902_v23, %v396_v22 }
  0x84   : > { %5192 = vmatmul.mubr.msk.f32.vlgmr.msra.gmra.mrb[0].mxu0 %vm417_vm0, %v7701_v25  ;;  %v2501_v25 = vld [vmem:[%s10119_s3 + $0x38] sm:$0xff] }
  0x85   : > { %6232 = vmatpush1.bf16.msra.mxu0 %v6231_v4  ;;  %2007 = vmatprep.mubr.f32.mxu0 %v7199_v7  ;;  %v6249_v27 = vpack.c.bf16 %v2504_v26, %v2501_v25  ;;  %v2524_v4 = vld [vmem:[%s10119_s3 + $0xf0] sm:$0xff]  ;;  %v6429_v25 = vpack.c.bf16 %v5288_v19, %v5285_v15  ;;  %v5237_v26 = vld [vmem:[%s10119_s3 + $0x388] sm:$0xff] }
  0x86   : > { %6234 = vmatprep.subr.bf16.mxu0 %v6233_v5  ;;  %v2527_v5 = vld [vmem:[%s10119_s3 + $0x108] sm:$0xff] }
  0x87   : > { %6250 = vmatprep.subr.bf16.mxu1 %v6249_v27  ;;  %v6267_v16 = vpack.c.bf16 %v2527_v5, %v2524_v4  ;;  %v5240_v27 = vld [vmem:[%s10119_s3 + $0x3a0] sm:$0xff]  ;;  %v2551_v4 = vld [vmem:[%s10119_s3 + $0x1c8] sm:$0xff] }
  0x88   : > { %5193 = vmatmul.mubr.msk.f32.gmra.mrb[2].mxu0 %vm417_vm0, %v7721_v31  ;;  %6252 = vmatpush1.bf16.msra.mxu1 %v6251_v30  ;;  %v6431_v29 = vpack.c.bf16 %v5240_v27, %v5237_v26  ;;  %v5291_v30 = vld [vmem:[%s10119_s3 + $0x538] sm:$0xff]  ;;  %v2555_v15 = vld [vmem:[%s10119_s3 + $0x1e8] sm:$0xff]  ;;  %v2564_v26 = vld [vmem:[%s10119_s3 + $0x230] sm:$0xff] }
  0x89   : > { %2013 = vmatprep.mubr.f32.mxu0 %v7199_v7  ;;  %6236 = vmatpush1.bf16.msra.mxu0 %v6235_v9  ;;  %v2531_v9 = vld [vmem:[%s10119_s3 + $0x128] sm:$0xff] }
  0x8a   : > { %v6269_v20 = vpack.c.bf16 %v2534_v14, %v2531_v9  ;;  %6430 = vmatprep.subr.bf16.mxu0 %v6429_v25  ;;  %v5261_v9 = vld [vmem:[%s10119_s3 + $0x448] sm:$0xff]  ;;  %v5264_v14 = vld [vmem:[%s10119_s3 + $0x460] sm:$0xff]  ;;  %v2561_v25 = vld [vmem:[%s10119_s3 + $0x218] sm:$0xff] }
  0x8c   : > { %5194 = vmatmul.mubr.msk.f32.gmra.mrb[4].mxu0 %vm417_vm0, %v7726_v33 }
  0x8d   : > { %2019 = vmatprep.mubr.f32.mxu0 %v7199_v7 }
  0x90   : > { %5195 = vmatmul.mubr.msk.f32.gmra.mrb[6].mxu0 %vm417_vm0, %v7734_v35  ;;  %v2510_v35 = vld [vmem:[%s10119_s3 + $0x80] sm:$0xff] }
  0x91   : > { %2216 = vmatprep.mubr.f32.mxu0 %v7199_v7  ;;  %v6253_v37 = vpack.c.bf16 %v2510_v35, %v2507_v34  ;;  %v6271_v34 = vpack.c.bf16 %v2533_v18, %v2530_v17  ;;  %v2536_v35 = vld [vmem:[%s10119_s3 + $0x150] sm:$0xff]  ;;  %v6447_v18 = vpack.c.bf16 %v5264_v14, %v5261_v9  ;;  %v5321_v14 = vld [vmem:[%s10119_s3 + $0x628] sm:$0xff] }
  0x92   : > { %v2588_v9 = vld [vmem:[%s10119_s3 + $0x2f0] sm:$0xff] }
  0x93   : > { %6254 = vmatprep.subr.bf16.mxu1 %v6253_v37  ;;  %v5246_v37 = vld [vmem:[%s10119_s3 + $0x3d0] sm:$0xff] }
  0x94   : > { %5216 = vmatmul.mubr.msk.f32.vlgmr.msra.gmra.mrb[0].mxu0 %vm417_vm0, %v7745_v38  ;;  %v2506_v38 = vld [vmem:[%s10119_s3 + $0x60] sm:$0xff] }
  0x95   : > { %2222 = vmatprep.mubr.f32.mxu0 %v7199_v7  ;;  %6432 = vmatpush3.bf16.msra.mxu0 %v6431_v29  ;;  %v2560_v29 = vld [vmem:[%s10119_s3 + $0x210] sm:$0xff] }
  0x98   : > { %5217 = vmatmul.mubr.msk.f32.gmra.mrb[2].mxu0 %vm417_vm0, %v7759_v41  ;;  %v6255_v41 = vpack.c.bf16 %v2509_v39, %v2506_v38  ;;  %v2543_v39 = vld [vmem:[%s10119_s3 + $0x188] sm:$0xff] }
  0x99   : > { %2228 = vmatprep.mubr.f32.mxu0 %v7199_v7 }
  0x9a   : > { %6256 = vmatpush1.bf16.msra.mxu1 %v6255_v41  ;;  %v5297_v41 = vld [vmem:[%s10119_s3 + $0x568] sm:$0xff] }
  0x9c   : > { %5218 = vmatmul.mubr.msk.f32.gmra.mrb[4].mxu0 %vm417_vm0, %v7770_v46  ;;  %v2512_v46 = vld [vmem:[%s10119_s3 + $0x90] sm:$0xff] }
  0x9d   : > { %2234 = vmatprep.mubr.f32.mxu0 %v7199_v7  ;;  %v6259_v55 = vpack.c.bf16 %v2515_v50, %v2512_v46  ;;  %v5252_v46 = vld [vmem:[%s10119_s3 + $0x400] sm:$0xff] }
  0x9e   : > { %v2542_v50 = vld [vmem:[%s10119_s3 + $0x180] sm:$0xff] }
  0xa0   : > { %5219 = vmatmul.mubr.msk.f32.gmra.mrb[6].mxu0 %vm417_vm0, %v7784_v49  ;;  %v6257_v49 = vpack.c.bf16 %v2516_v45, %v2513_v44  ;;  %v5249_v45 = vld [vmem:[%s10119_s3 + $0x3e8] sm:$0xff] }
  0xa1   : > { %v6439_v52 = vpack.c.bf16 %v5252_v46, %v5249_v45  ;;  %v392_v45 = vsub.s32 1, %v7896_v21 }
  0xa2   : > { %6258 = vmatprep.subr.bf16.mxu1 %v6257_v49 }
  0xa3   : > { %6260 = vmatpush1.bf16.msra.mxu1 %v6259_v55  ;;  %v2549_v55 = vld [vmem:[%s10119_s3 + $0x1b8] sm:$0xff] }
  0xa4   : > { %6262 = vmatprep.subr.bf16.mxu1 %v6261_v56 }
  0xa7   : > { %6264 = vmatpush1.bf16.msra.mxu1 %v6263_v0  ;;  %v6279_v0 = vpack.c.bf16 %v2545_v51, %v2542_v50  ;;  %v2579_v50 = vld [vmem:[%s10119_s3 + $0x2a8] sm:$0xff]  ;;  %v2582_v51 = vld [vmem:[%s10119_s3 + $0x2c0] sm:$0xff] }
  0xa8   : > { %6266 = vmatprep.subr.bf16.mxu1 %v6265_v3  ;;  %v6281_v3 = vpack.c.bf16 %v2552_v61, %v2549_v55  ;;  %v5318_v55 = vld [vmem:[%s10119_s3 + $0x610] sm:$0xff] }
  0xab   : > { %6268 = vmatpush1.bf16.msra.mxu1 %v6267_v16  ;;  %v2558_v16 = vld [vmem:[%s10119_s3 + $0x200] sm:$0xff] }
  0xac   : > { %6270 = vmatprep.subr.bf16.mxu1 %v6269_v20  ;;  %v6285_v19 = vpack.c.bf16 %v2558_v16, %v2555_v15  ;;  %v2554_v20 = vld [vmem:[%s10119_s3 + $0x1e0] sm:$0xff] }
  0xaf   : > { %6272 = vmatpush1.bf16.msra.mxu1 %v6271_v34 }
  0xef   : > { %v7876_v10 = vpop.f32.mrb[0].mxu1 }
  0xf0   : > { %v7878_v11 = vpop.f32.mrb[1].mxu1 }
  0xf3   : > { %v7880_v12 = vpop.f32.mrb[2].mxu1 }
  0xf4   : > { %v7882_v13 = vpop.f32.mrb[3].mxu1 }
 0x137   : > { %v6011_v31 = vpop.f32.mrb[4].mxu1 }
 0x138   : > { %v6888_v32 = vadd.f32 %v6011_v31, %v397_v24  ;;  %v2307_v33 = vpop.f32.mrb[5].mxu1  ;;  %v5294_v31 = vld [vmem:[%s10119_s3 + $0x550] sm:$0xff] }
 0x139   : > { %v6889_v36 = vadd.f32 %v2307_v33, %v397_v24  ;;  %v5243_v33 = vld [vmem:[%s10119_s3 + $0x3b8] sm:$0xff] }
 0x13a   : > { %v2358_v40 = vrot.slane %v6888_v32, 1 }
 0x13b   : > { %v2357_v42 = vrot.slane %v6889_v36, 1  ;;  %v6014_v43 = vpop.f32.mrb[6].mxu1 }
 0x13c   : > { %v7940_v47 = vadd.f32 %v6014_v43, %v397_v24  ;;  %v2317_v48 = vpop.f32.mrb[7].mxu1  ;;  %v2546_v43 = vld [vmem:[%s10119_s3 + $0x1a0] sm:$0xff] }
 0x13d   : > { %v2359_v53 = vsel %vm2350_vm1, %v2357_v42, %v2358_v40  ;;  %v6891_v54 = vadd.f32 %v2317_v48, %v397_v24  ;;  %v2537_v24 = vld [vmem:[%s10119_s3 + $0x158] sm:$0xff]  ;;  %v5300_v42 = vld [vmem:[%s10119_s3 + $0x580] sm:$0xff] }
 0x13e   : > { %v7958_v59 = vmax.f32 %v6889_v36, %v2359_v53  ;;  %v2370_v60 = vrot.slane %v7940_v47, 1  ;;  %v2539_v36 = vld [vmem:[%s10119_s3 + $0x168] sm:$0xff]  ;;  %v6273_v38 = vpack.c.bf16 %v2540_v28, %v2537_v24  ;;  %v6437_v44 = vpack.c.bf16 %v5300_v42, %v5297_v41  ;;  %v5303_v48 = vld [vmem:[%s10119_s3 + $0x598] sm:$0xff]  ;;  %v5306_v53 = vld [vmem:[%s10119_s3 + $0x5b0] sm:$0xff] }
 0x13f   : > { %v2364_v63 = vrot.slane %v6891_v54, 1  ;;  %v6275_v49 = vpack.c.bf16 %v2539_v36, %v2536_v35  ;;  %v6441_v56 = vpack.c.bf16 %v5306_v53, %v5303_v48  ;;  %v2557_v24 = vld [vmem:[%s10119_s3 + $0x1f8] sm:$0xff]  ;;  %v6289_v28 = vpack.c.bf16 %v2564_v26, %v2561_v25  ;;  %v2566_v35 = vld [vmem:[%s10119_s3 + $0x240] sm:$0xff]  ;;  %v2572_v41 = vld [vmem:[%s10119_s3 + $0x270] sm:$0xff] }
 0x140   : > { %6274 = vmatprep.subr.bf16.mxu1 %v6273_v38  ;;  %v6287_v27 = vpack.c.bf16 %v2557_v24, %v2554_v20  ;;  %v2569_v36 = vld [vmem:[%s10119_s3 + $0x258] sm:$0xff]  ;;  %v2576_v38 = vld [vmem:[%s10119_s3 + $0x290] sm:$0xff]  ;;  %v2575_v42 = vld [vmem:[%s10119_s3 + $0x288] sm:$0xff]  ;;  %v393_v53 = vrot.slane %v7902_v23, %v392_v45 }
 0x141   : > { %v2371_v1 = vsel %vm2350_vm1, %v2364_v63, %v2370_v60  ;;  %v2365_v2 = vsel %vm2350_vm1, %v2358_v40, %v2364_v63  ;;  %v6435_v40 = vpack.c.bf16 %v5246_v37, %v5243_v33  ;;  %v5312_v63 = vld [vmem:[%s10119_s3 + $0x5e0] sm:$0xff]  ;;  %6276 = vmatpush1.bf16.msra.mxu1 %v6275_v49  ;;  %v2573_v37 = vld [vmem:[%s10119_s3 + $0x278] sm:$0xff]  ;;  %v2587_v20 = vld [vmem:[%s10119_s3 + $0x2e8] sm:$0xff] }
 0x142   : > { %v7977_v6 = vmax.f32 %v6891_v54, %v2371_v1  ;;  %v7979_v8 = vmax.f32 %v6888_v32, %v2365_v2  ;;  %v6433_v32 = vpack.c.bf16 %v5294_v31, %v5291_v30  ;;  %v6277_v54 = vpack.c.bf16 %v2546_v43, %v2543_v39  ;;  %v2548_v1 = vld [vmem:[%s10119_s3 + $0x1b0] sm:$0xff]  ;;  %v2563_v30 = vld [vmem:[%s10119_s3 + $0x228] sm:$0xff] }
 0x143   : > { %v6443_v2 = vpack.c.bf16 %v5258_v58, %v5255_v57  ;;  %v6445_v5 = vpack.c.bf16 %v5312_v63, %v5309_v62  ;;  %v6283_v17 = vpack.c.bf16 %v2551_v4, %v2548_v1  ;;  %v2567_v31 = vld [vmem:[%s10119_s3 + $0x248] sm:$0xff]  ;;  %v6291_v33 = vpack.c.bf16 %v2563_v30, %v2560_v29  ;;  %v2581_v57 = vld [vmem:[%s10119_s3 + $0x2b8] sm:$0xff]  ;;  %v5270_v63 = vld [vmem:[%s10119_s3 + $0x490] sm:$0xff] }
 0x144   : > { %2418 = vrot.lane.b32.xlu1 %v7979_v8, %s7200_s30  ;;  %6434 = vmatprep.subr.bf16.mxu0 %v6433_v32  ;;  %v2570_v32 = vld [vmem:[%s10119_s3 + $0x260] sm:$0xff]  ;;  %v6295_v39 = vpack.c.bf16 %v2569_v36, %v2566_v35  ;;  %v388_v43 = vsub.s32 0, %v7896_v21  ;;  %v611_v29 = vadd.f32 %v7878_v11, %v393_v53  ;;  %v5327_v11 = vld [vmem:[%s10119_s3 + $0x658] sm:$0xff] }
 0x145   : > { %6436 = vmatpush3.bf16.msra.mxu0 %v6435_v40  ;;  %6278 = vmatprep.subr.bf16.mxu1 %v6277_v54  ;;  %v6293_v34 = vpack.c.bf16 %v2570_v32, %v2567_v31  ;;  %v6297_v40 = vpack.c.bf16 %v2576_v38, %v2573_v37  ;;  %v6301_v54 = vpack.c.bf16 %v2582_v51, %v2579_v50  ;;  %v5282_v50 = vld [vmem:[%s10119_s3 + $0x4f0] sm:$0xff] }
 0x146   : > { %6438 = vmatprep.subr.bf16.mxu0 %v6437_v44  ;;  %6280 = vmatpush1.bf16.msra.mxu1 %v6279_v0  ;;  %v6299_v44 = vpack.c.bf16 %v2575_v42, %v2572_v41  ;;  %v389_v48 = vrot.slane %v7902_v23, %v388_v43  ;;  %v5267_v23 = vld [vmem:[%s10119_s3 + $0x478] sm:$0xff]  ;;  %v614_v51 = vadd.f32 %v7882_v13, %v393_v53  ;;  %v2591_v13 = vld [vmem:[%s10119_s3 + $0x308] sm:$0xff] }
 0x147   : > { %6282 = vmatprep.subr.bf16.mxu1 %v6281_v3 }
 0x148   : > { %v610_v15 = vadd.f32 %v7876_v10, %v389_v48  ;;  %v5273_v10 = vld [vmem:[%s10119_s3 + $0x4a8] sm:$0xff]  ;;  %v613_v41 = vadd.f32 %v7880_v12, %v389_v48 }
 0x149   : > { %6440 = vmatpush3.bf16.msra.mxu0 %v6439_v52  ;;  %v5315_v52 = vld [vmem:[%s10119_s3 + $0x5f8] sm:$0xff] }
 0x14a   : > { %6442 = vmatprep.subr.bf16.mxu0 %v6441_v56  ;;  %6284 = vmatpush1.bf16.msra.mxu1 %v6283_v17  ;;  %v2578_v56 = vld [vmem:[%s10119_s3 + $0x2a0] sm:$0xff]  ;;  %v6449_v61 = vpack.c.bf16 %v5318_v55, %v5315_v52 }
 0x14b   : > { %6286 = vmatprep.subr.bf16.mxu1 %v6285_v19  ;;  %v6303_v62 = vpack.c.bf16 %v2581_v57, %v2578_v56  ;;  %v2584_v19 = vld [vmem:[%s10119_s3 + $0x2d0] sm:$0xff] }
 0x14d   : > { %6444 = vmatpush3.bf16.msra.mxu0 %v6443_v2  ;;  %v6451_v2 = vpack.c.bf16 %v5270_v63, %v5267_v23 }
 0x14e   : > { %6446 = vmatprep.subr.bf16.mxu0 %v6445_v5  ;;  %6288 = vmatpush1.bf16.msra.mxu1 %v6287_v27  ;;  %v2585_v5 = vld [vmem:[%s10119_s3 + $0x2d8] sm:$0xff]  ;;  %v6307_v27 = vpack.c.bf16 %v2587_v20, %v2584_v19  ;;  %v8261_v20 = vmax.f32 %v7940_v47, %v2370_v60 }
 0x14f   : > { %6290 = vmatprep.subr.bf16.mxu1 %v6289_v28  ;;  %v6305_v17 = vpack.c.bf16 %v2588_v9, %v2585_v5  ;;  %v5276_v28 = vld [vmem:[%s10119_s3 + $0x4c0] sm:$0xff] }
 0x151   : > { %6448 = vmatpush3.bf16.msra.mxu0 %v6447_v18  ;;  %v5324_v18 = vld [vmem:[%s10119_s3 + $0x640] sm:$0xff] }
 0x152   : > { %6292 = vmatpush1.bf16.msra.mxu1 %v6291_v33  ;;  %6450 = vmatprep.subr.bf16.mxu0 %v6449_v61  ;;  %v6453_v26 = vpack.c.bf16 %v5324_v18, %v5321_v14  ;;  %v6455_v33 = vpack.c.bf16 %v5276_v28, %v5273_v10 }
 0x153   : > { %6294 = vmatprep.subr.bf16.mxu1 %v6293_v34 }
 0x155   : > { %6452 = vmatpush3.bf16.msra.mxu0 %v6451_v2  ;;  %v5410_v2 = vld [vmem:[%s10119_s3 + $0x898] sm:$0xff] }
 0x156   : > { %6296 = vmatpush1.bf16.msra.mxu1 %v6295_v39  ;;  %6454 = vmatprep.subr.bf16.mxu0 %v6453_v26 }
 0x157   : > { %6298 = vmatprep.subr.bf16.mxu1 %v6297_v40  ;;  %v5330_v40 = vld [vmem:[%s10119_s3 + $0x670] sm:$0xff] }
 0x159   : > { %6456 = vmatpush3.bf16.msra.mxu0 %v6455_v33 }
 0x15a   : > { %6300 = vmatpush1.bf16.msra.mxu1 %v6299_v44 }
 0x15b   : > { %6302 = vmatprep.subr.bf16.mxu1 %v6301_v54 }
 0x15e   : > { %6304 = vmatpush1.bf16.msra.mxu1 %v6303_v62 }
 0x15f   : > { %6306 = vmatprep.subr.bf16.mxu1 %v6305_v17 }
 0x162   : > { %6308 = vmatpush1.bf16.msra.mxu1 %v6307_v27 }
 0x167   : > { %v2218_v46 = vpop.f32.mrb[0].mxu0 }
 0x168   : > { %v2220_v49 = vpop.f32.mrb[1].mxu0  ;;  %v6876_v58 = vadd.f32 %v2218_v46, %v389_v48  ;;  %v6457_v46 = vpack.c.bf16 %v5330_v40, %v5327_v11  ;;  %v8302_v11 = vld [vmem:[%s10119_s3 + $0x330] sm:$0xff]  ;;  %v2599_v40 = vld [vmem:[%s10119_s3 + $0x348] sm:$0xff] }
 0x169   : > { %v6877_v0 = vadd.f32 %v2220_v49, %v393_v53  ;;  %v5279_v49 = vld [vmem:[%s10119_s3 + $0x4d8] sm:$0xff] }
 0x16a   : > { %v2351_v24 = vrot.slane %v6876_v58, 1  ;;  %v6459_v55 = vpack.c.bf16 %v5282_v50, %v5279_v49  ;;  %6458 = vmatprep.subr.bf16.mxu0 %v6457_v46  ;;  %v8315_v46 = vld [vmem:[%s10119_s3 + $0x8b0] sm:$0xff]  ;;  %v8320_v49 = vld [vmem:[%s10119_s3 + $0x8c8] sm:$0xff] }
 0x16b   : > { %v2224_v1 = vpop.f32.mrb[2].mxu0  ;;  %v2354_v30 = vrot.slane %v6877_v0, 1 }
 0x16c   : > { %v6878_v3 = vadd.f32 %v2224_v1, %v389_v48  ;;  %v2226_v4 = vpop.f32.mrb[3].mxu0  ;;  %6460 = vmatpush3.bf16.msra.mxu0 %v6459_v55  ;;  %v5407_v1 = vld [vmem:[%s10119_s3 + $0x880] sm:$0xff] }
 0x16d   : > { %v6879_v16 = vadd.f32 %v2226_v4, %v393_v53  ;;  %v2594_v53 = vld [vmem:[%s10119_s3 + $0x320] sm:$0xff]  ;;  %v6541_v4 = vpack.c.bf16 %v5410_v2, %v5407_v1 }
 0x16e   : > { %v2352_v25 = vrot.slane %v6878_v3, 1 }
 0x16f   : > { %v2355_v31 = vrot.slane %v6879_v16, 1  ;;  %v2230_v32 = vpop.f32.mrb[4].mxu0  ;;  %6542 = vmatprep.subr.bf16.mxu0 %v6541_v4 }
 0x170   : > { %v6881_v34 = vadd.f32 %v2230_v32, %v610_v15  ;;  %v2232_v35 = vpop.f32.mrb[5].mxu0  ;;  %v2353_v36 = vsel %vm2350_vm1, %v2351_v24, %v2352_v25 }
 0x171   : > { %v6883_v37 = vadd.f32 %v2232_v35, %v611_v29  ;;  %v2356_v38 = vsel %vm2350_vm1, %v2354_v30, %v2355_v31  ;;  %v8199_v39 = vmax.f32 %v6876_v58, %v2353_v36  ;;  %v2590_v30 = vld [vmem:[%s10119_s3 + $0x300] sm:$0xff]  ;;  %v8290_v36 = vld [vmem:[%s10119_s3 + $0x718] sm:$0xff] }
 0x172   : > { %v2360_v42 = vrot.slane %v6881_v34, 1  ;;  %v8208_v44 = vmax.f32 %v6877_v0, %v2356_v38  ;;  %v6309_v0 = vpack.c.bf16 %v2594_v53, %v2591_v13  ;;  %v8285_v35 = vld [vmem:[%s10119_s3 + $0x700] sm:$0xff] }
 0x173   : > { %v2362_v52 = vrot.slane %v6883_v37, 1  ;;  %v2236_v54 = vpop.f32.mrb[6].mxu0 }
 0x174   : > { %v6885_v56 = vadd.f32 %v2236_v54, %v613_v41  ;;  %v2238_v57 = vpop.f32.mrb[7].mxu0  ;;  %v7111_v12 = vpack.i.bf16 %v8199_v39, %v8208_v44  ;;  %v2361_v48 = vsel %vm2350_vm1, %v2352_v25, %v2360_v42  ;;  %6310 = vmatprep.subr.bf16.mxu1 %v6309_v0 }
 0x175   : > { %v6887_v58 = vadd.f32 %v2238_v57, %v614_v51  ;;  %v2363_v61 = vsel %vm2350_vm1, %v2355_v31, %v2362_v52  ;;  %v8221_v62 = vmax.f32 %v6878_v3, %v2361_v48  ;;  %v2593_v31 = vld [vmem:[%s10119_s3 + $0x318] sm:$0xff] }
 0x176   : > { %v2366_v23 = vrot.slane %v6885_v56, 1  ;;  %7112 = vrot.lane.b32.xlu0 %v7111_v12, %s7200_s30  ;;  %v8230_v63 = vmax.f32 %v6879_v16, %v2363_v61  ;;  %v6543_v12 = vpack.c.bf16 %v8290_v36, %v8285_v35 }
 0x177   : > { %v2368_v3 = vrot.slane %v6887_v58, 1 }
 0x178   : > { %v7116_v5 = vpack.i.bf16 %v8221_v62, %v8230_v63  ;;  %v2367_v9 = vsel %vm2350_vm1, %v2360_v42, %v2366_v23  ;;  %v8249_v17 = vmax.f32 %v6885_v56, %v2366_v23  ;;  %v6311_v56 = vpack.c.bf16 %v2593_v31, %v2590_v30  ;;  %v2544_v30 = vld [vmem:[%s10119_s3 + $0x190] sm:$0xff]  ;;  %v2547_v31 = vld [vmem:[%s10119_s3 + $0x1a8] sm:$0xff] }
 0x179   : > { %v2369_v14 = vsel %vm2350_vm1, %v2362_v52, %v2368_v3  ;;  %v8242_v15 = vmax.f32 %v6881_v34, %v2367_v9  ;;  %v8251_v18 = vmax.f32 %v6887_v58, %v2368_v3  ;;  %v6315_v58 = vpack.c.bf16 %v2599_v40, %v8302_v11  ;;  %v2602_v11 = vld [vmem:[%s10119_s3 + $0x360] sm:$0x3] }
 0x17a   : > { %2412 = vrot.lane.b32.xlu0 %v7958_v59, %s7200_s30  ;;  %7117 = vrot.lane.b32.xlu1 %v7116_v5, %s7200_s30  ;;  %v8247_v16 = vmax.f32 %v6883_v37, %v2369_v14  ;;  %v2597_v37 = vld [vmem:[%s10119_s3 + $0x338] sm:$0xff]  ;;  %v5368_v14 = vld [vmem:[%s10119_s3 + $0x748] sm:$0xff] }
 0x17b   : > { %v7126_v24 = vpack.i.bf16 %v8249_v17, %v8251_v18 }
 0x17c   : > { %v7121_v19 = vpack.i.bf16 %v8242_v15, %v8247_v16 }
 0x17e   : > { %2424 = vrot.lane.b32.xlu1 %v7977_v6, %s7200_s30  ;;  %7122 = vrot.lane.b32.xlu0 %v7121_v19, %s7200_s30 }
 0x182   : > { %2430 = vrot.lane.b32.xlu1 %v8261_v20, %s7200_s30  ;;  %7127 = vrot.lane.b32.xlu0 %v7126_v24, %s7200_s30  ;;  %s377_s30 = sand.u32 1, %s7189_s18  }
 0x183   : > { %s378_s13 = scalar_lea.vmem [#allocation2], %s377_s30  ;;  %s4960_s25 = scalar_lea.sflag [#allocation3], %s377_s30 }
 0x184   : > { %s4972_s16 = sshll.u32 %s378_s13, 4  ;;  %s10075_s16 = int_to_ptr.vmem [resolvable:$true] %s4972_s16 }
 0x185   : > { %s7135_s19 = scalar_lea.vmem %s10075_s16, 16 }
 0x186   : > { %p7136_p11 = scmp.ne.s32.totalorder %s10075_s16, %s7135_s19 }
 0x188   : > { %p7137_p12 = pnand %p7136_p11, %p7303_p5 }
 0x18a   : > { %p7138_p13 = pneg %p7137_p12 }
 0x1b6   : > { %v8268_v25 = vpop.permute.xlu1 %2418 }
 0x1b7   : > { %v2458_v23 = vmax.f32 %v7979_v8, %v8268_v25 }
 0x1b9   : > { %v8400_v40 = vmax.f32 %v2458_v23, 0.0 }
 0x1bb   : > { %v3635_v23 = vrot.slane %v8400_v40, 4 }
 0x1e8   : > { %v7113_v26 = vpop.permute.xlu0 %7112 }
 0x1e9   : > { %v7115_v27 = vunpack.i.h.bf16 %v7113_v26  ;;  %v7114_v10 = vunpack.i.l.bf16 %v7113_v26 }
 0x1eb   : > { %v2433_v28 = vsel %vm2432_vm2, %v7115_v27, %v7114_v10 }
 0x1ec   : > { %v2453_v29 = vmax.f32 %v8199_v39, %v2433_v28  ;;  %v8272_v47 = vpop.permute.xlu0 %2412  ;;  %v7118_v60 = vpop.permute.xlu1 %7117  ;;  %v2600_v39 = vld [vmem:[%s10119_s3 + $0x350] sm:$0xff] }
 0x1ed   : > { %v2434_v32 = vsel %vm2432_vm2, %v7114_v10, %v8272_v47  ;;  %v7120_v33 = vunpack.i.h.bf16 %v7118_v60  ;;  %v7119_v34 = vunpack.i.l.bf16 %v7118_v60  ;;  %v6313_v48 = vpack.c.bf16 %v2600_v39, %v2597_v37  ;;  %v5422_v60 = vld [vmem:[%s10119_s3 + $0x8f8] sm:$0xff] }
 0x1ee   : > { %v2454_v38 = vmax.f32 %v8208_v44, %v2434_v32  ;;  %v8307_v41 = vmax.f32 %v2453_v29, 0.0 }
 0x1ef   : > { %v2435_v42 = vsel %vm2432_vm2, %v7120_v33, %v7119_v34  ;;  %v2436_v44 = vsel %vm2432_vm2, %v7119_v34, %v8268_v25 }
 0x1f0   : > { %v8322_v50 = vmax.f32 %v2454_v38, 0.0  ;;  %v2456_v51 = vmax.f32 %v8221_v62, %v2435_v42  ;;  %v2457_v52 = vmax.f32 %v8230_v63, %v2436_v44  ;;  %v2425_v54 = vpop.permute.xlu1 %2424  ;;  %v7123_v55 = vpop.permute.xlu0 %7122  ;;  %v6545_v62 = vpack.c.bf16 %v8320_v49, %v8315_v46 }
 0x1f1   : > { %v7125_v57 = vunpack.i.h.bf16 %v7123_v55  ;;  %v7124_v61 = vunpack.i.l.bf16 %v7123_v55  ;;  %v2455_v63 = vmax.f32 %v7958_v59, %v8272_v47  ;;  %v3109_v1 = vrot.slane %v8307_v41, 2  ;;  %v5365_v59 = vld [vmem:[%s10119_s3 + $0x730] sm:$0xff]  ;;  %v2603_v47 = vld [vmem:[%s10119_s3 + $0x368] sm:$0x3] }
 0x1f2   : > { %2692 = vmatprep.mubr.f32.mxu1 %v8322_v50  ;;  %v8330_v13 = vmax.f32 %v2457_v52, 0.0  ;;  %v8332_v53 = vmax.f32 %v2456_v51, 0.0  ;;  %v3112_v0 = vrot.slane %v8322_v50, 2  ;;  %v2461_v27 = vmax.f32 %v7977_v6, %v2425_v54  ;;  %v5371_v52 = vld [vmem:[%s10119_s3 + $0x760] sm:$0xff] }
 0x1f3   : > { %2693 = vmatmul.mubr.f32.vlgmr.msra.gmra.mrb[8].mxu1 %v8307_v41  ;;  %v2437_v2 = vsel %vm2432_vm2, %v7125_v57, %v7124_v61  ;;  %v2438_v3 = vsel %vm2432_vm2, %v7124_v61, %v2425_v54  ;;  %v8385_v32 = vmax.f32 %v2455_v63, 0.0  ;;  %v5374_v54 = vld [vmem:[%s10119_s3 + $0x778] sm:$0xff]  ;;  %v5428_v57 = vld [vmem:[%s10119_s3 + $0x928] sm:$0xff]  ;;  %v2496_v61 = vld [vmem:[%s10119_s3 + $0x10] sm:$0xff] }
 0x1f4   : > { %6312 = vmatpush1.bf16.msra.mxu1 %v6311_v56  ;;  %v2431_v4 = vpop.permute.xlu1 %2430  ;;  %2698 = vmatprep.mubr.f32.mxu1 %v8330_v13  ;;  %v7128_v5 = vpop.permute.xlu0 %7127  ;;  %v3113_v8 = vrot.slane %v8330_v13, 2  ;;  %v3110_v9 = vrot.slane %v8332_v53, 2  ;;  %v2459_v19 = vmax.f32 %v8242_v15, %v2437_v2  ;;  %v2460_v24 = vmax.f32 %v8247_v16, %v2438_v3  ;;  %v5419_v15 = vld [vmem:[%s10119_s3 + $0x8e0] sm:$0xff]  ;;  %v5425_v56 = vld [vmem:[%s10119_s3 + $0x910] sm:$0xff] }
 0x1f5   : > { %v2464_v25 = vmax.f32 %v8261_v20, %v2431_v4  ;;  %v7130_v26 = vunpack.i.h.bf16 %v7128_v5  ;;  %6314 = vmatprep.subr.bf16.mxu1 %v6313_v48  ;;  %v7129_v10 = vunpack.i.l.bf16 %v7128_v5  ;;  %v6547_v20 = vpack.c.bf16 %v5368_v14, %v5365_v59  ;;  %v5380_v59 = vld [vmem:[%s10119_s3 + $0x7a8] sm:$0xff] }
 0x1f6   : > { %v8359_v28 = vsel %vm3108_vm3, %v3112_v0, %v3113_v8  ;;  %v8362_v29 = vsel %vm3108_vm3, %v3109_v1, %v3110_v9  ;;  %v8372_v6 = vmax.f32 %v2460_v24, 0.0  ;;  %v8374_v16 = vmax.f32 %v2459_v19, 0.0  ;;  %v2550_v0 = vld [vmem:[%s10119_s3 + $0x1c0] sm:$0xff]  ;;  %v2553_v1 = vld [vmem:[%s10119_s3 + $0x1d8] sm:$0xff] }
 0x1f7   : > { %2699 = vmatmul.mubr.f32.gmra.mrb[10].mxu1 %v8332_v53  ;;  %3397 = vmatprep.mubr.f32.mxu0 %v8359_v28  ;;  %v8387_v33 = vmax.f32 %v2464_v25, 0.0  ;;  %v2439_v34 = vsel %vm2432_vm2, %v7130_v26, %v7129_v10  ;;  %v2440_v35 = vsel %vm2432_vm2, %v7129_v10, %v2431_v4  ;;  %v8402_v42 = vmax.f32 %v2461_v27, 0.0  ;;  %v5431_v24 = vld [vmem:[%s10119_s3 + $0x940] sm:$0xff]  ;;  %v5434_v25 = vld [vmem:[%s10119_s3 + $0x958] sm:$0xff] }
 0x1f8   : > { %3398 = vmatmul.mubr.f32.vlgmr.msra.gmra.mrb[8].mxu0 %v8362_v29  ;;  %6316 = vmatpush1.bf16.msra.mxu1 %v6315_v58  ;;  %v2462_v36 = vmax.f32 %v8249_v17, %v2439_v34  ;;  %v2463_v37 = vmax.f32 %v8251_v18, %v2440_v35  ;;  %v3120_v38 = vrot.slane %v8372_v6, 2  ;;  %v3118_v39 = vrot.slane %v8374_v16, 2  ;;  %v2556_v34 = vld [vmem:[%s10119_s3 + $0x1f0] sm:$0xff]  ;;  %v2559_v35 = vld [vmem:[%s10119_s3 + $0x208] sm:$0xff] }
 0x1f9   : > { %2704 = vmatprep.mubr.f32.mxu1 %v8372_v6  ;;  %6544 = vmatpush3.bf16.msra.mxu0 %v6543_v12  ;;  %v6549_v17 = vpack.c.bf16 %v5422_v60, %v5419_v15  ;;  %v6317_v18 = vpack.c.bf16 %v2547_v31, %v2544_v30  ;;  %v3634_v55 = vrot.slane %v8385_v32, 4  ;;  %v8432_v12 = vrot.slane %v8387_v33, 2  ;;  %v2502_v15 = vld [vmem:[%s10119_s3 + $0x40] sm:$0xff] }
 0x1fa   : > { %6546 = vmatprep.subr.bf16.mxu0 %v6545_v62  ;;  %5224 = vmatprep.subr.msk.mxu1 %vm2618_vm4, %v2603_v47  ;;  %v8407_v44 = vsel %vm3108_vm3, %v3113_v8, %v3120_v38  ;;  %v8409_v46 = vmax.f32 %v2463_v37, 0.0  ;;  %v8412_v49 = vsel %vm3108_vm3, %v3110_v9, %v3118_v39  ;;  %v8414_v51 = vmax.f32 %v2462_v36, 0.0  ;;  %v2499_v62 = vld [vmem:[%s10119_s3 + $0x28] sm:$0xff]  ;;  %v5377_v9 = vld [vmem:[%s10119_s3 + $0x790] sm:$0xff] }
 0x1fb   : > { %2705 = vmatmul.mubr.f32.gmra.mrb[12].mxu1 %v8374_v16  ;;  %3402 = vmatprep.mubr.f32.mxu0 %v8407_v44  ;;  %v6551_v63 = vpack.c.bf16 %v5374_v54, %v5371_v52  ;;  %v3122_v2 = vrot.slane %v8402_v42, 2  ;;  %v3641_v3 = vrot.slane %v8402_v42, 4  ;;  %v6553_v8 = vpack.c.bf16 %v5428_v57, %v5425_v56  ;;  %v2511_v56 = vld [vmem:[%s10119_s3 + $0x88] sm:$0xff] }
 0x1fc   : > { %5225 = vmatpush1.msk.msra.mxu1 %vm2618_vm4, %v2602_v11  ;;  %2710 = vmatprep.mubr.f32.mxu1 %v8409_v46  ;;  %v8437_v48 = vrot.slane %v8409_v46, 2  ;;  %v8440_v58 = vrot.slane %v8414_v51, 2  ;;  %v8473_v14 = vrot.slane %v8387_v33, 4  ;;  %v6319_v19 = vpack.c.bf16 %v2499_v62, %v2496_v61  ;;  %v2562_v61 = vld [vmem:[%s10119_s3 + $0x220] sm:$0xff]  ;;  %v2565_v62 = vld [vmem:[%s10119_s3 + $0x238] sm:$0xff] }
 0x1fd   : > { %3403 = vmatmul.mubr.f32.gmra.mrb[10].mxu0 %v8412_v49  ;;  %6318 = vmatprep.subr.bf16.mxu1 %v6317_v18  ;;  %v8487_v26 = vsel %vm3108_vm3, %v3122_v2, %v8432_v12  ;;  %v8490_v27 = vsel %vm3627_vm5, %v3634_v55, %v3635_v23  ;;  %v3632_v10 = vrot.slane %v8330_v13, 4  ;;  %v6321_v47 = vpack.c.bf16 %v2553_v1, %v2550_v0  ;;  %v5440_v18 = vld [vmem:[%s10119_s3 + $0x988] sm:$0xff]  ;;  %v2508_v55 = vld [vmem:[%s10119_s3 + $0x70] sm:$0xff] }
 0x1fe   : > { %6548 = vmatpush3.bf16.msra.mxu0 %v6547_v20  ;;  %v8460_v4 = vsel %vm3108_vm3, %v3120_v38, %v8437_v48  ;;  %v8464_v5 = vsel %vm3108_vm3, %v3118_v39, %v8440_v58  ;;  %v2505_v20 = vld [vmem:[%s10119_s3 + $0x58] sm:$0xff]  ;;  %v8501_v60 = vsel %vm3627_vm5, %v3635_v23, %v3641_v3  ;;  %v8505_v30 = vsel %vm3627_vm5, %v3641_v3, %v8473_v14  ;;  %v5383_v38 = vld [vmem:[%s10119_s3 + $0x7c0] sm:$0xff]  ;;  %v5392_v0 = vld [vmem:[%s10119_s3 + $0x808] sm:$0xff] }
 0x1ff   : > { %2711 = vmatmul.mubr.f32.gmra.mrb[14].mxu1 %v8414_v51  ;;  %6550 = vmatprep.subr.bf16.mxu0 %v6549_v17  ;;  %v6555_v31 = vpack.c.bf16 %v5380_v59, %v5377_v9  ;;  %v3631_v36 = vrot.slane %v8322_v50, 4  ;;  %v6557_v37 = vpack.c.bf16 %v5434_v25, %v5431_v24  ;;  %v5386_v39 = vld [vmem:[%s10119_s3 + $0x7d8] sm:$0xff]  ;;  %v6323_v11 = vpack.c.bf16 %v2505_v20, %v2502_v15  ;;  %v5437_v17 = vld [vmem:[%s10119_s3 + $0x970] sm:$0xff]  ;;  %v5443_v3 = vld [vmem:[%s10119_s3 + $0x9a0] sm:$0xff] }
 0x200   : > { %3407 = vmatprep.mubr.f32.mxu0 %v8460_v4  ;;  %2781 = vmatprep.mubr.f32.mxu1 %v7199_v7  ;;  %v6325_v54 = vpack.c.bf16 %v2559_v35, %v2556_v34  ;;  %v6559_v57 = vpack.c.bf16 %v5386_v39, %v5383_v38  ;;  %v6561_v23 = vpack.c.bf16 %v5440_v18, %v5437_v17  ;;  %v2514_v59 = vld [vmem:[%s10119_s3 + $0xa0] sm:$0xff]  ;;  %v2568_v25 = vld [vmem:[%s10119_s3 + $0x250] sm:$0xff]  ;;  %v2523_v39 = vld [vmem:[%s10119_s3 + $0xe8] sm:$0xff] }
 0x201   : > { %3408 = vmatmul.mubr.f32.gmra.mrb[12].mxu0 %v8464_v5  ;;  %v8534_v52 = vsel %vm3627_vm5, %v3631_v36, %v3632_v10  ;;  %v6327_v1 = vpack.c.bf16 %v2511_v56, %v2508_v55  ;;  %v6329_v9 = vpack.c.bf16 %v2565_v62, %v2562_v61  ;;  %v5395_v20 = vld [vmem:[%s10119_s3 + $0x820] sm:$0xff]  ;;  %v5449_v35 = vld [vmem:[%s10119_s3 + $0x9d0] sm:$0xff]  ;;  %v5452_v36 = vld [vmem:[%s10119_s3 + $0x9e8] sm:$0xff] }
 0x202   : > { %6552 = vmatpush3.bf16.msra.mxu0 %v6551_v63  ;;  %3412 = vmatprep.mubr.f32.mxu0 %v8437_v48  ;;  %v5389_v63 = vld [vmem:[%s10119_s3 + $0x7f0] sm:$0xff]  ;;  %v2574_v17 = vld [vmem:[%s10119_s3 + $0x280] sm:$0xff]  ;;  %v2577_v18 = vld [vmem:[%s10119_s3 + $0x298] sm:$0xff] }
 0x203   : > { %5226 = vmatmul.mubr.msk.f32.vlgmr.msra.gmra.mrb[8].mxu1 %vm2605_vm6, %v8385_v32  ;;  %6554 = vmatprep.subr.bf16.mxu0 %v6553_v8  ;;  %v5446_v8 = vld [vmem:[%s10119_s3 + $0x9b8] sm:$0xff]  ;;  %v6563_v24 = vpack.c.bf16 %v5392_v0, %v5389_v63  ;;  %v2520_v38 = vld [vmem:[%s10119_s3 + $0xd0] sm:$0xff]  ;;  %v5404_v56 = vld [vmem:[%s10119_s3 + $0x868] sm:$0xff]  ;;  %v6337_v61 = vpack.c.bf16 %v2577_v18, %v2574_v17  ;;  %v8669_v18 = vrot.slane %v8414_v51, 4 }
 0x204   : > { %6320 = vmatpush3.bf16.msra.mxu1 %v6319_v19  ;;  %2787 = vmatprep.mubr.f32.mxu1 %v7199_v7  ;;  %v2517_v19 = vld [vmem:[%s10119_s3 + $0xb8] sm:$0xff]  ;;  %v6565_v15 = vpack.c.bf16 %v5446_v8, %v5443_v3  ;;  %v5401_v55 = vld [vmem:[%s10119_s3 + $0x850] sm:$0xff]  ;;  %v2526_v62 = vld [vmem:[%s10119_s3 + $0x100] sm:$0xff]  ;;  %v3629_v3 = vrot.slane %v8332_v53, 4  ;;  %v3639_v8 = vrot.slane %v8372_v6, 4 }
 0x205   : > { %3413 = vmatmul.mubr.f32.gmra.mrb[14].mxu0 %v8440_v58  ;;  %6322 = vmatprep.subr.bf16.mxu1 %v6321_v47  ;;  %v2571_v47 = vld [vmem:[%s10119_s3 + $0x268] sm:$0xff]  ;;  %v6331_v34 = vpack.c.bf16 %v2517_v19, %v2514_v59  ;;  %v6571_v63 = vpack.c.bf16 %v5404_v56, %v5401_v55  ;;  %v2580_v0 = vld [vmem:[%s10119_s3 + $0x2b0] sm:$0xff]  ;;  %v2598_v56 = vld [vmem:[%s10119_s3 + $0x340] sm:$0xff] }
 0x206   : > { %6556 = vmatpush3.bf16.msra.mxu0 %v6555_v31  ;;  %3916 = vmatprep.mubr.f32.mxu0 %v8534_v52  ;;  %v5398_v31 = vld [vmem:[%s10119_s3 + $0x838] sm:$0xff]  ;;  %v2532_v59 = vld [vmem:[%s10119_s3 + $0x130] sm:$0xff]  ;;  %v2535_v19 = vld [vmem:[%s10119_s3 + $0x148] sm:$0xff] }
 0x207   : > { %5227 = vmatmul.mubr.msk.f32.gmra.mrb[10].mxu1 %vm2605_vm6, %v8400_v40  ;;  %6558 = vmatprep.subr.bf16.mxu0 %v6557_v37  ;;  %v6333_v37 = vpack.c.bf16 %v2571_v47, %v2568_v25  ;;  %v2586_v25 = vld [vmem:[%s10119_s3 + $0x2e0] sm:$0xff]  ;;  %v2589_v47 = vld [vmem:[%s10119_s3 + $0x2f8] sm:$0xff] }
 0x208   : > { %6324 = vmatpush3.bf16.msra.mxu1 %v6323_v11  ;;  %2793 = vmatprep.mubr.f32.mxu1 %v7199_v7  ;;  %v6567_v11 = vpack.c.bf16 %v5398_v31, %v5395_v20  ;;  %v6343_v20 = vpack.c.bf16 %v2535_v19, %v2532_v59  ;;  %v3637_v31 = vrot.slane %v8374_v16, 4  ;;  %v5247_v19 = vld [vmem:[%s10119_s3 + $0x3d8] sm:$0xff] }
 0x209   : > { %6326 = vmatprep.subr.bf16.mxu1 %v6325_v54  ;;  %v6569_v54 = vpack.c.bf16 %v5452_v36, %v5449_v35  ;;  %v8650_v35 = vrot.slane %v8409_v46, 4  ;;  %v6345_v36 = vpack.c.bf16 %v2589_v47, %v2586_v25  ;;  %v5254_v25 = vld [vmem:[%s10119_s3 + $0x410] sm:$0xff]  ;;  %v5257_v47 = vld [vmem:[%s10119_s3 + $0x428] sm:$0xff] }
 0x20a   : > { %6560 = vmatpush3.bf16.msra.mxu0 %v6559_v57  ;;  %v6335_v57 = vpack.c.bf16 %v2523_v39, %v2520_v38  ;;  %v2541_v38 = vld [vmem:[%s10119_s3 + $0x178] sm:$0xff]  ;;  %v2595_v39 = vld [vmem:[%s10119_s3 + $0x328] sm:$0xff] }
 0x20b   : > { %5228 = vmatmul.mubr.msk.f32.gmra.mrb[12].mxu1 %vm2605_vm6, %v8402_v42  ;;  %6562 = vmatprep.subr.bf16.mxu0 %v6561_v23  ;;  %v2529_v23 = vld [vmem:[%s10119_s3 + $0x118] sm:$0xff] }
 0x20c   : > { %6328 = vmatpush3.bf16.msra.mxu1 %v6327_v1  ;;  %2799 = vmatprep.mubr.f32.mxu1 %v7199_v7  ;;  %v6339_v1 = vpack.c.bf16 %v2529_v23, %v2526_v62  ;;  %v2604_v23 = vld [vmem:[%s10119_s3 + $0x370] sm:$0x3] }
 0x20d   : > { %6330 = vmatprep.subr.bf16.mxu1 %v6329_v9 }
 0x20e   : > { %6564 = vmatpush3.bf16.msra.mxu0 %v6563_v24  ;;  %v3628_v24 = vrot.slane %v8307_v41, 4 }
 0x20f   : > { %5229 = vmatmul.mubr.msk.f32.gmra.mrb[14].mxu1 %vm2605_vm6, %v8387_v33  ;;  %6566 = vmatprep.subr.bf16.mxu0 %v6565_v15 }
 0x210   : > { %6332 = vmatpush3.bf16.msra.mxu1 %v6331_v34  ;;  %2870 = vmatprep.mubr.f32.mxu1 %v8322_v50  ;;  %v2583_v50 = vld [vmem:[%s10119_s3 + $0x2c8] sm:$0xff]  ;;  %v8640_v15 = vsel %vm3627_vm5, %v3628_v24, %v3629_v3  ;;  %v8647_v34 = vsel %vm3627_vm5, %v3632_v10, %v3639_v8  ;;  %v2592_v10 = vld [vmem:[%s10119_s3 + $0x310] sm:$0xff] }
 0x211   : > { %6334 = vmatprep.subr.bf16.mxu1 %v6333_v37  ;;  %v6341_v9 = vpack.c.bf16 %v2583_v50, %v2580_v0  ;;  %v2538_v37 = vld [vmem:[%s10119_s3 + $0x160] sm:$0xff]  ;;  %v6349_v55 = vpack.c.bf16 %v2595_v39, %v2592_v10  ;;  %v5239_v0 = vld [vmem:[%s10119_s3 + $0x398] sm:$0xff]  ;;  %v5250_v24 = vld [vmem:[%s10119_s3 + $0x3f0] sm:$0xff] }
 0x212   : > { %6568 = vmatpush3.bf16.msra.mxu0 %v6567_v11  ;;  %v8666_v11 = vsel %vm3627_vm5, %v3629_v3, %v3637_v31  ;;  %v6347_v17 = vpack.c.bf16 %v2541_v38, %v2538_v37  ;;  %v5244_v3 = vld [vmem:[%s10119_s3 + $0x3c0] sm:$0xff]  ;;  %v5259_v39 = vld [vmem:[%s10119_s3 + $0x438] sm:$0xff] }
 0x213   : > { %6570 = vmatprep.subr.bf16.mxu0 %v6569_v54  ;;  %v8674_v54 = vsel %vm3627_vm5, %v3639_v8, %v8650_v35  ;;  %v5248_v8 = vld [vmem:[%s10119_s3 + $0x3e0] sm:$0xff] }
 0x214   : > { %6336 = vmatpush3.bf16.msra.mxu1 %v6335_v57  ;;  %v2601_v57 = vld [vmem:[%s10119_s3 + $0x358] sm:$0xff]  ;;  %v5256_v37 = vld [vmem:[%s10119_s3 + $0x420] sm:$0xff] }
 0x215   : > { %6338 = vmatprep.subr.bf16.mxu1 %v6337_v61  ;;  %v8685_v61 = vsel %vm3627_vm5, %v3637_v31, %v8669_v18  ;;  %v6353_v62 = vpack.c.bf16 %v2601_v57, %v2598_v56  ;;  %v6369_v31 = vpack.c.bf16 %v5257_v47, %v5254_v25  ;;  %v5260_v38 = vld [vmem:[%s10119_s3 + $0x440] sm:$0xff]  ;;  %v5269_v56 = vld [vmem:[%s10119_s3 + $0x488] sm:$0xff]  ;;  %v5283_v25 = vld [vmem:[%s10119_s3 + $0x4f8] sm:$0xff] }
 0x216   : > { %6572 = vmatpush3.bf16.msra.mxu0 %v6571_v63  ;;  %v5236_v63 = vld [vmem:[%s10119_s3 + $0x380] sm:$0xff]  ;;  %v5286_v47 = vld [vmem:[%s10119_s3 + $0x510] sm:$0xff] }
 0x218   : > { %6340 = vmatpush3.bf16.msra.mxu1 %v6339_v1  ;;  %v5241_v1 = vld [vmem:[%s10119_s3 + $0x3a8] sm:$0xff] }
 0x219   : > { %3917 = vmatmul.mubr.f32.vlgmr.msra.gmra.mrb[16].mxu0 %v8640_v15  ;;  %6342 = vmatprep.subr.bf16.mxu1 %v6341_v9  ;;  %v6363_v9 = vpack.c.bf16 %v5244_v3, %v5241_v1 }
 0x21a   : > { %3921 = vmatprep.mubr.f32.mxu0 %v8647_v34 }
 0x21c   : > { %6344 = vmatpush3.bf16.msra.mxu1 %v6343_v20  ;;  %v6367_v20 = vpack.c.bf16 %v5250_v24, %v5247_v19 }
 0x21d   : > { %3922 = vmatmul.mubr.f32.gmra.mrb[18].mxu0 %v8666_v11  ;;  %6346 = vmatprep.subr.bf16.mxu1 %v6345_v36  ;;  %v5253_v36 = vld [vmem:[%s10119_s3 + $0x408] sm:$0xff] }
 0x21e   : > { %3926 = vmatprep.mubr.f32.mxu0 %v8674_v54 }
 0x220   : > { %6348 = vmatpush3.bf16.msra.mxu1 %v6347_v17  ;;  %v5262_v17 = vld [vmem:[%s10119_s3 + $0x450] sm:$0xff] }
 0x221   : > { %3927 = vmatmul.mubr.f32.gmra.mrb[20].mxu0 %v8685_v61  ;;  %6350 = vmatprep.subr.bf16.mxu1 %v6349_v55  ;;  %v6375_v57 = vpack.c.bf16 %v5262_v17, %v5259_v39 }
 0x222   : > { %3931 = vmatprep.mubr.f32.mxu0 %v8650_v35 }
 0x223   : > { %2871 = vmatmul.mubr.f32.vlgmr.msra.gmra.mrb[16].mxu1 %v8307_v41  ;;  %v6357_v41 = vpack.c.bf16 %v5239_v0, %v5236_v63  ;;  %v5268_v63 = vld [vmem:[%s10119_s3 + $0x480] sm:$0xff] }
 0x224   : > { %2875 = vmatprep.mubr.f32.mxu1 %v8330_v13  ;;  %6352 = vmatpush3.bf16.msra.mxu1 %v6349_v55  ;;  %v5235_v13 = vld [vmem:[%s10119_s3 + $0x378] sm:$0xff]  ;;  %v5266_v55 = vld [vmem:[%s10119_s3 + $0x470] sm:$0xff]  ;;  %v5272_v0 = vld [vmem:[%s10119_s3 + $0x4a0] sm:$0xff] }
 0x225   : > { %3932 = vmatmul.mubr.f32.gmra.mrb[22].mxu0 %v8669_v18  ;;  %6354 = vmatprep.subr.bf16.mxu1 %v6353_v62 }
 0x227   : > { %2876 = vmatmul.mubr.f32.gmra.mrb[18].mxu1 %v8332_v53  ;;  %v5238_v53 = vld [vmem:[%s10119_s3 + $0x390] sm:$0xff] }
 0x228   : > { %2880 = vmatprep.mubr.f32.mxu1 %v8372_v6  ;;  %6356 = vmatpush3.bf16.msra.mxu1 %v6353_v62  ;;  %v5242_v6 = vld [vmem:[%s10119_s3 + $0x3b0] sm:$0xff]  ;;  %v6377_v62 = vpack.c.bf16 %v5269_v56, %v5266_v55  ;;  %v5295_v55 = vld [vmem:[%s10119_s3 + $0x558] sm:$0xff] }
 0x229   : > { %6023 = vmatprep.subr.msk.mxu1 %vm2618_vm4, %v2604_v23  ;;  %v5298_v56 = vld [vmem:[%s10119_s3 + $0x570] sm:$0xff] }
 0x22b   : > { %2881 = vmatmul.mubr.f32.gmra.mrb[20].mxu1 %v8374_v16  ;;  %v5245_v16 = vld [vmem:[%s10119_s3 + $0x3c8] sm:$0xff] }
 0x22c   : > { %2885 = vmatprep.mubr.f32.mxu1 %v8409_v46  ;;  %6024 = vmatpush3.msk.msra.mxu1 %vm2618_vm4, %v2604_v23  ;;  %v6359_v46 = vpack.c.bf16 %v5238_v53, %v5235_v13  ;;  %v6361_v50 = vpack.c.bf16 %v5245_v16, %v5242_v6  ;;  %v5265_v23 = vld [vmem:[%s10119_s3 + $0x468] sm:$0xff]  ;;  %v5271_v6 = vld [vmem:[%s10119_s3 + $0x498] sm:$0xff]  ;;  %v5274_v16 = vld [vmem:[%s10119_s3 + $0x4b0] sm:$0xff] }
 0x22d   : > { %6358 = vmatprep.subr.bf16.mxu1 %v6357_v41  ;;  %v5275_v41 = vld [vmem:[%s10119_s3 + $0x4b8] sm:$0xff]  ;;  %v6379_v13 = vpack.c.bf16 %v5268_v63, %v5265_v23  ;;  %v6383_v1 = vpack.c.bf16 %v5274_v16, %v5271_v6  ;;  %v6399_v23 = vpack.c.bf16 %v5298_v56, %v5295_v55 }
 0x22e   : > { %v6381_v53 = vpack.c.bf16 %v5275_v41, %v5272_v0  ;;  %v5301_v0 = vld [vmem:[%s10119_s3 + $0x588] sm:$0xff]  ;;  %v5304_v41 = vld [vmem:[%s10119_s3 + $0x5a0] sm:$0xff] }
 0x22f   : > { %2886 = vmatmul.mubr.f32.gmra.mrb[22].mxu1 %v8414_v51  ;;  %v5251_v51 = vld [vmem:[%s10119_s3 + $0x3f8] sm:$0xff]  ;;  %v6403_v6 = vpack.c.bf16 %v5304_v41, %v5301_v0 }
 0x230   : > { %6025 = vmatprep.mubr.msk.f32.mxu1 %vm2605_vm6, %v8385_v32  ;;  %v6365_v59 = vpack.c.bf16 %v5251_v51, %v5248_v8  ;;  %v5277_v8 = vld [vmem:[%s10119_s3 + $0x4c8] sm:$0xff]  ;;  %v5280_v51 = vld [vmem:[%s10119_s3 + $0x4e0] sm:$0xff] }
 0x231   : > { %v6387_v19 = vpack.c.bf16 %v5280_v51, %v5277_v8 }
 0x233   : > { %6026 = vmatmul.mubr.msk.f32.vlgmr.msra.gmra.mrb[24].mxu1 %vm2605_vm6, %v8400_v40 }
 0x234   : > { %6360 = vmatpush1.bf16.msra.mxu1 %v6359_v46  ;;  %6028 = vmatprep.mubr.msk.f32.mxu1 %vm2605_vm6, %v8402_v42  ;;  %v5278_v46 = vld [vmem:[%s10119_s3 + $0x4d0] sm:$0xff] }
 0x235   : > { %6362 = vmatprep.subr.bf16.mxu1 %v6361_v50  ;;  %v5281_v50 = vld [vmem:[%s10119_s3 + $0x4e8] sm:$0xff] }
 0x236   : > { %v6385_v3 = vpack.c.bf16 %v5281_v50, %v5278_v46  ;;  %v5307_v46 = vld [vmem:[%s10119_s3 + $0x5b8] sm:$0xff]  ;;  %v5310_v50 = vld [vmem:[%s10119_s3 + $0x5d0] sm:$0xff] }
 0x237   : > { %6029 = vmatmul.mubr.msk.f32.gmra.mrb[26].mxu1 %vm2605_vm6, %v8387_v33  ;;  %v5263_v33 = vld [vmem:[%s10119_s3 + $0x458] sm:$0xff]  ;;  %v6407_v8 = vpack.c.bf16 %v5310_v50, %v5307_v46  ;;  %v5333_v46 = vld [vmem:[%s10119_s3 + $0x688] sm:$0xff]  ;;  %v5336_v50 = vld [vmem:[%s10119_s3 + $0x6a0] sm:$0xff] }
 0x238   : > { %6364 = vmatpush1.bf16.msra.mxu1 %v6363_v9  ;;  %3219 = vmatprep.mubr.f32.mxu1 %v8359_v28  ;;  %v6371_v28 = vpack.c.bf16 %v5256_v37, %v5253_v36  ;;  %v6373_v10 = vpack.c.bf16 %v5263_v33, %v5260_v38  ;;  %v5284_v9 = vld [vmem:[%s10119_s3 + $0x500] sm:$0xff]  ;;  %v6391_v36 = vpack.c.bf16 %v5286_v47, %v5283_v25  ;;  %v5289_v38 = vld [vmem:[%s10119_s3 + $0x528] sm:$0xff] }
 0x239   : > { %6366 = vmatprep.subr.bf16.mxu1 %v6365_v59  ;;  %v5287_v59 = vld [vmem:[%s10119_s3 + $0x518] sm:$0xff]  ;;  %v5292_v33 = vld [vmem:[%s10119_s3 + $0x540] sm:$0xff] }
 0x23a   : > { %v6389_v24 = vpack.c.bf16 %v5287_v59, %v5284_v9  ;;  %v6395_v39 = vpack.c.bf16 %v5292_v33, %v5289_v38  ;;  %v5313_v9 = vld [vmem:[%s10119_s3 + $0x5e8] sm:$0xff]  ;;  %v5316_v59 = vld [vmem:[%s10119_s3 + $0x600] sm:$0xff] }
 0x23b   : > { %v6411_v25 = vpack.c.bf16 %v5316_v59, %v5313_v9  ;;  %v5364_v9 = vld [vmem:[%s10119_s3 + $0x728] sm:$0xff]  ;;  %v5367_v59 = vld [vmem:[%s10119_s3 + $0x740] sm:$0xff] }
 0x23c   : > { %6368 = vmatpush1.bf16.msra.mxu1 %v6367_v20  ;;  %v5290_v20 = vld [vmem:[%s10119_s3 + $0x530] sm:$0xff] }
 0x23d   : > { %6370 = vmatprep.subr.bf16.mxu1 %v6369_v31  ;;  %v5293_v31 = vld [vmem:[%s10119_s3 + $0x548] sm:$0xff] }
 0x23e   : > { %v6393_v37 = vpack.c.bf16 %v5293_v31, %v5290_v20  ;;  %v5319_v20 = vld [vmem:[%s10119_s3 + $0x618] sm:$0xff]  ;;  %v5322_v31 = vld [vmem:[%s10119_s3 + $0x630] sm:$0xff] }
 0x23f   : > { %v6415_v38 = vpack.c.bf16 %v5322_v31, %v5319_v20  ;;  %v5370_v20 = vld [vmem:[%s10119_s3 + $0x758] sm:$0xff]  ;;  %v5373_v31 = vld [vmem:[%s10119_s3 + $0x770] sm:$0xff] }
 0x240   : > { %6372 = vmatpush1.bf16.msra.mxu1 %v6371_v28  ;;  %v5296_v28 = vld [vmem:[%s10119_s3 + $0x560] sm:$0xff] }
 0x241   : > { %6374 = vmatprep.subr.bf16.mxu1 %v6373_v10  ;;  %v5299_v10 = vld [vmem:[%s10119_s3 + $0x578] sm:$0xff] }
 0x242   : > { %v6397_v17 = vpack.c.bf16 %v5299_v10, %v5296_v28  ;;  %v5325_v28 = vld [vmem:[%s10119_s3 + $0x648] sm:$0xff]  ;;  %v5328_v10 = vld [vmem:[%s10119_s3 + $0x660] sm:$0xff] }
 0x243   : > { %v6419_v55 = vpack.c.bf16 %v5328_v10, %v5325_v28  ;;  %v5376_v28 = vld [vmem:[%s10119_s3 + $0x788] sm:$0xff]  ;;  %v5379_v10 = vld [vmem:[%s10119_s3 + $0x7a0] sm:$0xff] }
 0x244   : > { %6376 = vmatpush1.bf16.msra.mxu1 %v6375_v57  ;;  %v5302_v57 = vld [vmem:[%s10119_s3 + $0x590] sm:$0xff] }
 0x245   : > { %6378 = vmatprep.subr.bf16.mxu1 %v6377_v62  ;;  %v5305_v62 = vld [vmem:[%s10119_s3 + $0x5a8] sm:$0xff] }
 0x246   : > { %v6401_v63 = vpack.c.bf16 %v5305_v62, %v5302_v57  ;;  %v5331_v57 = vld [vmem:[%s10119_s3 + $0x678] sm:$0xff]  ;;  %v5334_v62 = vld [vmem:[%s10119_s3 + $0x690] sm:$0xff] }
 0x247   : > { %v6423_v0 = vpack.c.bf16 %v5334_v62, %v5331_v57  ;;  %v5381_v62 = vld [vmem:[%s10119_s3 + $0x7b0] sm:$0xff] }
 0x248   : > { %6380 = vmatpush1.bf16.msra.mxu1 %v6379_v13  ;;  %v5308_v13 = vld [vmem:[%s10119_s3 + $0x5c0] sm:$0xff] }
 0x249   : > { %6382 = vmatprep.subr.bf16.mxu1 %v6381_v53  ;;  %v5311_v53 = vld [vmem:[%s10119_s3 + $0x5d8] sm:$0xff] }
 0x24a   : > { %v6405_v16 = vpack.c.bf16 %v5311_v53, %v5308_v13  ;;  %v5337_v13 = vld [vmem:[%s10119_s3 + $0x6a8] sm:$0xff]  ;;  %v5340_v53 = vld [vmem:[%s10119_s3 + $0x6c0] sm:$0xff] }
 0x24c   : > { %6384 = vmatpush1.bf16.msra.mxu1 %v6383_v1  ;;  %v5314_v1 = vld [vmem:[%s10119_s3 + $0x5f0] sm:$0xff] }
 0x24d   : > { %6386 = vmatprep.subr.bf16.mxu1 %v6385_v3  ;;  %v5317_v3 = vld [vmem:[%s10119_s3 + $0x608] sm:$0xff] }
 0x24e   : > { %v6409_v51 = vpack.c.bf16 %v5317_v3, %v5314_v1  ;;  %v3115_v1 = vrot.slane %v8385_v32, 2  ;;  %v3116_v3 = vrot.slane %v8400_v40, 2  ;;  %v5358_v40 = vld [vmem:[%s10119_s3 + $0x6f8] sm:$0xff] }
 0x250   : > { %6388 = vmatpush1.bf16.msra.mxu1 %v6387_v19  ;;  %v5320_v19 = vld [vmem:[%s10119_s3 + $0x620] sm:$0xff]  ;;  %v3123_v32 = vsel %vm3108_vm3, %v3116_v3, %v3122_v2  ;;  %v5357_v2 = vld [vmem:[%s10119_s3 + $0x6f0] sm:$0xff] }
 0x251   : > { %6390 = vmatprep.subr.bf16.mxu1 %v6389_v24  ;;  %v5323_v24 = vld [vmem:[%s10119_s3 + $0x638] sm:$0xff] }
 0x252   : > { %v6413_v47 = vpack.c.bf16 %v5323_v24, %v5320_v19  ;;  %v6473_v24 = vpack.c.bf16 %v5367_v59, %v5364_v9  ;;  %v5412_v9 = vld [vmem:[%s10119_s3 + $0x8a8] sm:$0xff]  ;;  %v5415_v59 = vld [vmem:[%s10119_s3 + $0x8c0] sm:$0xff] }
 0x254   : > { %6392 = vmatpush1.bf16.msra.mxu1 %v6391_v36  ;;  %v5326_v36 = vld [vmem:[%s10119_s3 + $0x650] sm:$0xff] }
 0x255   : > { %6394 = vmatprep.subr.bf16.mxu1 %v6393_v37  ;;  %v5329_v37 = vld [vmem:[%s10119_s3 + $0x668] sm:$0xff] }
 0x256   : > { %v6417_v33 = vpack.c.bf16 %v5329_v37, %v5326_v36  ;;  %v6477_v37 = vpack.c.bf16 %v5373_v31, %v5370_v20  ;;  %v5418_v20 = vld [vmem:[%s10119_s3 + $0x8d8] sm:$0xff]  ;;  %v5421_v31 = vld [vmem:[%s10119_s3 + $0x8f0] sm:$0xff] }
 0x258   : > { %6396 = vmatpush1.bf16.msra.mxu1 %v6395_v39  ;;  %v5332_v39 = vld [vmem:[%s10119_s3 + $0x680] sm:$0xff] }
 0x259   : > { %6398 = vmatprep.subr.bf16.mxu1 %v6397_v17  ;;  %v5335_v17 = vld [vmem:[%s10119_s3 + $0x698] sm:$0xff] }
 0x25a   : > { %v6421_v56 = vpack.c.bf16 %v5335_v17, %v5332_v39  ;;  %v6481_v39 = vpack.c.bf16 %v5379_v10, %v5376_v28  ;;  %v5375_v17 = vld [vmem:[%s10119_s3 + $0x780] sm:$0xff]  ;;  %v5424_v28 = vld [vmem:[%s10119_s3 + $0x908] sm:$0xff] }
 0x25b   : > { %v5427_v10 = vld [vmem:[%s10119_s3 + $0x920] sm:$0xff] }
 0x25c   : > { %6400 = vmatpush1.bf16.msra.mxu1 %v6399_v23  ;;  %v5338_v23 = vld [vmem:[%s10119_s3 + $0x6b0] sm:$0xff] }
 0x25d   : > { %6402 = vmatprep.subr.bf16.mxu1 %v6401_v63  ;;  %v5341_v63 = vld [vmem:[%s10119_s3 + $0x6c8] sm:$0xff] }
 0x25e   : > { %v6425_v41 = vpack.c.bf16 %v5341_v63, %v5338_v23  ;;  %v5384_v23 = vld [vmem:[%s10119_s3 + $0x7c8] sm:$0xff] }
 0x25f   : > { %v5388_v63 = vld [vmem:[%s10119_s3 + $0x7e8] sm:$0xff] }
 0x260   : > { %6404 = vmatpush1.bf16.msra.mxu1 %v6403_v6  ;;  %v6427_v6 = vpack.c.bf16 %v5340_v53, %v5337_v13  ;;  %v5387_v53 = vld [vmem:[%s10119_s3 + $0x7e0] sm:$0xff] }
 0x261   : > { %6406 = vmatprep.subr.bf16.mxu1 %v6405_v16  ;;  %v5344_v16 = vld [vmem:[%s10119_s3 + $0x6e0] sm:$0x3] }
 0x264   : > { %6408 = vmatpush1.bf16.msra.mxu1 %v6407_v8  ;;  %v5361_v8 = vld [vmem:[%s10119_s3 + $0x710] sm:$0xff] }
 0x265   : > { %6410 = vmatprep.subr.bf16.mxu1 %v6409_v51  ;;  %v6469_v42 = vpack.c.bf16 %v5361_v8, %v5358_v40  ;;  %v5360_v51 = vld [vmem:[%s10119_s3 + $0x708] sm:$0xff]  ;;  %v5409_v40 = vld [vmem:[%s10119_s3 + $0x890] sm:$0xff] }
 0x266   : > { %v6471_v19 = vpack.c.bf16 %v5360_v51, %v5357_v2  ;;  %v5405_v2 = vld [vmem:[%s10119_s3 + $0x870] sm:$0xff]  ;;  %v5408_v51 = vld [vmem:[%s10119_s3 + $0x888] sm:$0xff] }
 0x268   : > { %6412 = vmatpush1.bf16.msra.mxu1 %v6411_v25  ;;  %v5363_v25 = vld [vmem:[%s10119_s3 + $0x720] sm:$0xff] }
 0x269   : > { %6414 = vmatprep.subr.bf16.mxu1 %v6413_v47  ;;  %v5366_v47 = vld [vmem:[%s10119_s3 + $0x738] sm:$0xff] }
 0x26a   : > { %v6475_v36 = vpack.c.bf16 %v5366_v47, %v5363_v25  ;;  %v5411_v25 = vld [vmem:[%s10119_s3 + $0x8a0] sm:$0xff]  ;;  %v5414_v47 = vld [vmem:[%s10119_s3 + $0x8b8] sm:$0xff] }
 0x26c   : > { %6416 = vmatpush1.bf16.msra.mxu1 %v6415_v38  ;;  %v5369_v38 = vld [vmem:[%s10119_s3 + $0x750] sm:$0xff] }
 0x26d   : > { %6418 = vmatprep.subr.bf16.mxu1 %v6417_v33  ;;  %v5372_v33 = vld [vmem:[%s10119_s3 + $0x768] sm:$0xff] }
 0x270   : > { %6420 = vmatpush1.bf16.msra.mxu1 %v6419_v55  ;;  %v5378_v55 = vld [vmem:[%s10119_s3 + $0x798] sm:$0xff] }
 0x271   : > { %6422 = vmatprep.subr.bf16.mxu1 %v6421_v56  ;;  %v5382_v56 = vld [vmem:[%s10119_s3 + $0x7b8] sm:$0xff] }
 0x273   : > { %3220 = vmatmul.mubr.f32.vlgmr.msra.gmra.mrb[8].mxu1 %v8362_v29  ;;  %v5343_v29 = vld [vmem:[%s10119_s3 + $0x6d8] sm:$0x3] }
 0x274   : > { %3225 = vmatprep.mubr.f32.mxu1 %v8407_v44  ;;  %6424 = vmatpush1.bf16.msra.mxu1 %v6423_v0  ;;  %v6461_v44 = vpack.c.bf16 %v5336_v50, %v5333_v46  ;;  %v5391_v0 = vld [vmem:[%s10119_s3 + $0x800] sm:$0xff]  ;;  %v5397_v46 = vld [vmem:[%s10119_s3 + $0x830] sm:$0xff] }
 0x275   : > { %6426 = vmatprep.subr.bf16.mxu1 %v6425_v41  ;;  %v6487_v41 = vpack.c.bf16 %v5384_v23, %v5381_v62  ;;  %v6489_v13 = vpack.c.bf16 %v5391_v0, %v5388_v63  ;;  %v5429_v62 = vld [vmem:[%s10119_s3 + $0x930] sm:$0xff]  ;;  %v5432_v23 = vld [vmem:[%s10119_s3 + $0x948] sm:$0xff]  ;;  %v5439_v0 = vld [vmem:[%s10119_s3 + $0x980] sm:$0xff] }
 0x276   : > { %v5436_v63 = vld [vmem:[%s10119_s3 + $0x968] sm:$0xff] }
 0x277   : > { %3226 = vmatmul.mubr.f32.gmra.mrb[10].mxu1 %v8412_v49  ;;  %v5339_v49 = vld [vmem:[%s10119_s3 + $0x6b8] sm:$0xff] }
 0x278   : > { %3231 = vmatprep.mubr.f32.mxu1 %v8460_v4  ;;  %6428 = vmatpush1.bf16.msra.mxu1 %v6427_v6  ;;  %v5342_v4 = vld [vmem:[%s10119_s3 + $0x6d0] sm:$0xff]  ;;  %v5390_v6 = vld [vmem:[%s10119_s3 + $0x7f8] sm:$0xff] }
 0x279   : > { %5346 = vmatprep.subr.msk.mxu1 %vm2618_vm4, %v5344_v16  ;;  %v5394_v16 = vld [vmem:[%s10119_s3 + $0x818] sm:$0xff]  ;;  %v6491_v50 = vpack.c.bf16 %v5390_v6, %v5387_v53  ;;  %v5435_v53 = vld [vmem:[%s10119_s3 + $0x960] sm:$0xff] }
 0x27a   : > { %v5438_v6 = vld [vmem:[%s10119_s3 + $0x978] sm:$0xff] }
 0x27b   : > { %3232 = vmatmul.mubr.f32.gmra.mrb[12].mxu1 %v8464_v5  ;;  %v3117_v5 = vsel %vm3108_vm3, %v3115_v1, %v3116_v3  ;;  %v5396_v1 = vld [vmem:[%s10119_s3 + $0x828] sm:$0xff] }
 0x27c   : > { %3237 = vmatprep.mubr.f32.mxu1 %v8437_v48  ;;  %5347 = vmatpush1.msk.msra.mxu1 %vm2618_vm4, %v5343_v29  ;;  %v6465_v48 = vpack.c.bf16 %v5342_v4, %v5339_v49  ;;  %v6493_v29 = vpack.c.bf16 %v5397_v46, %v5394_v16  ;;  %v5400_v49 = vld [vmem:[%s10119_s3 + $0x848] sm:$0xff]  ;;  %v5403_v4 = vld [vmem:[%s10119_s3 + $0x860] sm:$0xff]  ;;  %v5442_v16 = vld [vmem:[%s10119_s3 + $0x998] sm:$0xff] }
 0x27d   : > { %6462 = vmatprep.subr.bf16.mxu1 %v6461_v44  ;;  %v5445_v46 = vld [vmem:[%s10119_s3 + $0x9b0] sm:$0xff] }
 0x27f   : > { %3238 = vmatmul.mubr.f32.gmra.mrb[14].mxu1 %v8440_v58  ;;  %v5345_v58 = vld [vmem:[%s10119_s3 + $0x6e8] sm:$0x3] }
 0x280   : > { %3308 = vmatprep.mubr.f32.mxu1 %v7199_v7 }
 0x283   : > { %5348 = vmatmul.mubr.msk.f32.vlgmr.msra.gmra.mrb[8].mxu1 %vm2605_vm6, %v3117_v5 }
 0x284   : > { %6464 = vmatpush3.bf16.msra.mxu1 %v6461_v44  ;;  %3314 = vmatprep.mubr.f32.mxu1 %v7199_v7  ;;  %v5393_v44 = vld [vmem:[%s10119_s3 + $0x810] sm:$0xff] }
 0x285   : > { %6466 = vmatprep.subr.bf16.mxu1 %v6465_v48  ;;  %v6495_v3 = vpack.c.bf16 %v5396_v1, %v5393_v44  ;;  %v5441_v44 = vld [vmem:[%s10119_s3 + $0x990] sm:$0xff]  ;;  %v5444_v1 = vld [vmem:[%s10119_s3 + $0x9a8] sm:$0xff] }
 0x287   : > { %5349 = vmatmul.mubr.msk.f32.gmra.mrb[10].mxu1 %vm2605_vm6, %v3123_v32 }
 0x288   : > { %3320 = vmatprep.mubr.f32.mxu1 %v7199_v7  ;;  %6468 = vmatpush3.bf16.msra.mxu1 %v6465_v48  ;;  %v6497_v48 = vpack.c.bf16 %v5403_v4, %v5400_v49  ;;  %v5448_v49 = vld [vmem:[%s10119_s3 + $0x9c8] sm:$0xff]  ;;  %v5451_v4 = vld [vmem:[%s10119_s3 + $0x9e0] sm:$0xff] }
 0x289   : > { %6039 = vmatprep.subr.msk.mxu1 %vm2618_vm4, %v5345_v58 }
 0x28b   : > { %5350 = vmatmul.mubr.msk.f32.gmra.mrb[12].mxu1 %vm2605_vm6, %v8487_v26 }
 0x28c   : > { %3326 = vmatprep.mubr.f32.mxu1 %v7199_v7  ;;  %6040 = vmatpush3.msk.msra.mxu1 %vm2618_vm4, %v5345_v58  ;;  %v5406_v58 = vld [vmem:[%s10119_s3 + $0x878] sm:$0xff] }
 0x28d   : > { %6470 = vmatprep.subr.bf16.mxu1 %v6469_v42  ;;  %v6501_v42 = vpack.c.bf16 %v5409_v40, %v5406_v58  ;;  %v5454_v58 = vld [vmem:[%s10119_s3 + $0x9f8] sm:$0xff]  ;;  %v5457_v40 = vld [vmem:[%s10119_s3 + $0xa10] sm:$0xff] }
 0x28f   : > { %5351 = vmatmul.mubr.msk.f32.gmra.mrb[14].mxu1 %vm2605_vm6, %v8432_v12 }
 0x290   : > { %6041 = vmatprep.mubr.msk.f32.mxu1 %vm2605_vm6, %v3117_v5  ;;  %v5399_v5 = vld [vmem:[%s10119_s3 + $0x840] sm:$0xff] }
 0x293   : > { %6042 = vmatmul.mubr.msk.f32.vlgmr.msra.gmra.mrb[24].mxu1 %vm2605_vm6, %v3123_v32  ;;  %v5402_v32 = vld [vmem:[%s10119_s3 + $0x858] sm:$0xff] }
 0x294   : > { %6472 = vmatpush1.bf16.msra.mxu1 %v6471_v19  ;;  %6044 = vmatprep.mubr.msk.f32.mxu1 %vm2605_vm6, %v8487_v26  ;;  %v6479_v26 = vpack.c.bf16 %v5372_v33, %v5369_v38  ;;  %v6499_v8 = vpack.c.bf16 %v5402_v32, %v5399_v5  ;;  %v6503_v19 = vpack.c.bf16 %v5408_v51, %v5405_v2  ;;  %v5417_v38 = vld [vmem:[%s10119_s3 + $0x8d0] sm:$0xff]  ;;  %v5420_v33 = vld [vmem:[%s10119_s3 + $0x8e8] sm:$0xff]  ;;  %v5447_v5 = vld [vmem:[%s10119_s3 + $0x9c0] sm:$0xff] }
 0x295   : > { %6474 = vmatprep.subr.bf16.mxu1 %v6473_v24  ;;  %v6505_v24 = vpack.c.bf16 %v5415_v59, %v5412_v9  ;;  %v5450_v32 = vld [vmem:[%s10119_s3 + $0x9d8] sm:$0xff]  ;;  %v6533_v9 = vpack.c.bf16 %v5457_v40, %v5454_v58  ;;  %v5453_v59 = vld [vmem:[%s10119_s3 + $0x9f0] sm:$0xff] }
 0x296   : > { %v6531_v2 = vpack.c.bf16 %v5450_v32, %v5447_v5 }
 0x297   : > { %6045 = vmatmul.mubr.msk.f32.gmra.mrb[26].mxu1 %vm2605_vm6, %v8432_v12  ;;  %v5385_v12 = vld [vmem:[%s10119_s3 + $0x7d0] sm:$0xff] }
 0x298   : > { %6476 = vmatpush1.bf16.msra.mxu1 %v6475_v36  ;;  %3738 = vmatprep.mubr.f32.mxu1 %v8534_v52  ;;  %v6483_v52 = vpack.c.bf16 %v5378_v55, %v5375_v17  ;;  %v6485_v57 = vpack.c.bf16 %v5385_v12, %v5382_v56  ;;  %v6507_v36 = vpack.c.bf16 %v5414_v47, %v5411_v25  ;;  %v5423_v17 = vld [vmem:[%s10119_s3 + $0x900] sm:$0xff]  ;;  %v5426_v55 = vld [vmem:[%s10119_s3 + $0x918] sm:$0xff]  ;;  %v5433_v12 = vld [vmem:[%s10119_s3 + $0x950] sm:$0xff] }
 0x299   : > { %6478 = vmatprep.subr.bf16.mxu1 %v6477_v37  ;;  %v6509_v37 = vpack.c.bf16 %v5421_v31, %v5418_v20  ;;  %v5430_v56 = vld [vmem:[%s10119_s3 + $0x938] sm:$0xff]  ;;  %v5463_v25 = vld [vmem:[%s10119_s3 + $0xa40] sm:$0xff] }
 0x29c   : > { %6480 = vmatpush1.bf16.msra.mxu1 %v6479_v26  ;;  %v6511_v26 = vpack.c.bf16 %v5420_v33, %v5417_v38  ;;  %v5462_v38 = vld [vmem:[%s10119_s3 + $0xa38] sm:$0xff] }
 0x29d   : > { %6482 = vmatprep.subr.bf16.mxu1 %v6481_v39  ;;  %v6513_v39 = vpack.c.bf16 %v5427_v10, %v5424_v28 }
 0x2a0   : > { %6484 = vmatpush1.bf16.msra.mxu1 %v6483_v52  ;;  %v6515_v52 = vpack.c.bf16 %v5426_v55, %v5423_v17  ;;  %v5466_v17 = vld [vmem:[%s10119_s3 + $0xa58] sm:$0x3]  ;;  %v5455_v55 = vld [vmem:[%s10119_s3 + $0xa00] sm:$0xff] }
 0x2a1   : > { %6486 = vmatprep.subr.bf16.mxu1 %v6485_v57  ;;  %v6517_v57 = vpack.c.bf16 %v5433_v12, %v5430_v56  ;;  %v5465_v12 = vld [vmem:[%s10119_s3 + $0xa50] sm:$0x3] }
 0x2a4   : > { %6488 = vmatpush1.bf16.msra.mxu1 %v6487_v41  ;;  %v6519_v41 = vpack.c.bf16 %v5432_v23, %v5429_v62 }
 0x2a5   : > { %6490 = vmatprep.subr.bf16.mxu1 %v6489_v13  ;;  %v6521_v13 = vpack.c.bf16 %v5439_v0, %v5436_v63 }
 0x2a8   : > { %6492 = vmatpush1.bf16.msra.mxu1 %v6491_v50  ;;  %v6523_v50 = vpack.c.bf16 %v5438_v6, %v5435_v53 }
 0x2a9   : > { %6494 = vmatprep.subr.bf16.mxu1 %v6493_v29  ;;  %v6525_v29 = vpack.c.bf16 %v5445_v46, %v5442_v16 }
 0x2ac   : > { %6496 = vmatpush1.bf16.msra.mxu1 %v6495_v3  ;;  %v6527_v3 = vpack.c.bf16 %v5444_v1, %v5441_v44 }
 0x2ad   : > { %6498 = vmatprep.subr.bf16.mxu1 %v6497_v48  ;;  %v6529_v48 = vpack.c.bf16 %v5451_v4, %v5448_v49 }
 0x2b0   : > { %6500 = vmatpush1.bf16.msra.mxu1 %v6499_v8 }
 0x2b1   : > { %6502 = vmatprep.subr.bf16.mxu1 %v6501_v42 }
 0x2b4   : > { %6504 = vmatpush1.bf16.msra.mxu1 %v6503_v19  ;;  %v5456_v19 = vld [vmem:[%s10119_s3 + $0xa08] sm:$0xff] }
 0x2b5   : > { %6506 = vmatprep.subr.bf16.mxu1 %v6505_v24  ;;  %v5460_v24 = vld [vmem:[%s10119_s3 + $0xa28] sm:$0xff]  ;;  %v6535_v20 = vpack.c.bf16 %v5456_v19, %v5453_v59 }
 0x2b8   : > { %6508 = vmatpush1.bf16.msra.mxu1 %v6507_v36  ;;  %v6537_v36 = vpack.c.bf16 %v5463_v25, %v5460_v24 }
 0x2b9   : > { %6510 = vmatprep.subr.bf16.mxu1 %v6509_v37  ;;  %v5459_v37 = vld [vmem:[%s10119_s3 + $0xa20] sm:$0xff] }
 0x2ba   : > { %v6539_v10 = vpack.c.bf16 %v5462_v38, %v5459_v37  ;;  %v7201_v37 = vmov 0.0|0.0  }
 0x2bb   : > { %6626 = vmatprep.subr.bf16.mxu0 %v7201_v37 }
 0x2bc   : > { %6512 = vmatpush1.bf16.msra.mxu1 %v6511_v26 }
 0x2bd   : > { %6514 = vmatprep.subr.bf16.mxu1 %v6513_v39 }
 0x2c0   : > { %6516 = vmatpush1.bf16.msra.mxu1 %v6515_v52 }
 0x2c1   : > { %6518 = vmatprep.subr.bf16.mxu1 %v6517_v57 }
 0x2c4   : > { %6520 = vmatpush1.bf16.msra.mxu1 %v6519_v41 }
 0x2c5   : > { %6522 = vmatprep.subr.bf16.mxu1 %v6521_v13  ;;  %v9257_v13 = vld [vmem:[%s10120_s4] sm:$0x7] }
 0x2c8   : > { %6524 = vmatpush1.bf16.msra.mxu1 %v6523_v50 }
 0x2c9   : > { %6526 = vmatprep.subr.bf16.mxu1 %v6525_v29 }
 0x2cb   : > { %v5797_v8 = vpop.f32.mrb[8].mxu0 }
 0x2cc   : > { %6528 = vmatpush1.bf16.msra.mxu1 %v6527_v3  ;;  %v5798_v42 = vpop.f32.mrb[9].mxu0 }
 0x2cd   : > { %v9180_v51 = vadd.f32 %v5798_v42, %v5797_v8  ;;  %6530 = vmatprep.subr.bf16.mxu1 %v6529_v48 }
 0x2d0   : > { %6532 = vmatpush1.bf16.msra.mxu1 %v6531_v2  ;;  %v5800_v47 = vpop.f32.mrb[10].mxu0 }
 0x2d1   : > { %v5801_v31 = vpop.f32.mrb[11].mxu0  ;;  %6534 = vmatprep.subr.bf16.mxu1 %v6533_v9 }
 0x2d2   : > { %v9200_v33 = vadd.f32 %v5801_v31, %v5800_v47  ;;  %v4139_v31 = vld [vmem:[%s10121_s5 + $0x8] sm:$0xff] }
 0x2d3   : > { %3739 = vmatmul.mubr.f32.vlgmr.msra.gmra.mrb[8].mxu1 %v8640_v15  ;;  %v5458_v15 = vld [vmem:[%s10119_s3 + $0xa18] sm:$0xff] }
 0x2d4   : > { %3744 = vmatprep.mubr.f32.mxu1 %v8647_v34  ;;  %6536 = vmatpush1.bf16.msra.mxu1 %v6535_v20  ;;  %v5803_v28 = vpop.f32.mrb[12].mxu0  ;;  %v6573_v52 = vpack.c.bf16 %v5458_v15, %v5455_v55  ;;  %v4138_v20 = vld [vmem:[%s10121_s5] sm:$0xff] }
 0x2d5   : > { %v5804_v26 = vpop.f32.mrb[13].mxu0  ;;  %6538 = vmatprep.subr.bf16.mxu1 %v6537_v36  ;;  %v5480_v36 = vld [vmem:[%s10121_s5 + $0xf0] sm:$0xff]  ;;  %v6582_v38 = vpack.c.bf16 %v4139_v31, %v4138_v20  ;;  %v4157_v31 = vld [vmem:[%s10121_s5 + $0x98] sm:$0xff] }
 0x2d6   : > { %v9204_v39 = vadd.f32 %v5804_v26, %v5803_v28  ;;  %v4140_v28 = vld [vmem:[%s10121_s5 + $0x10] sm:$0xff] }
 0x2d7   : > { %3745 = vmatmul.mubr.f32.gmra.mrb[10].mxu1 %v8666_v11  ;;  %v5461_v11 = vld [vmem:[%s10119_s3 + $0xa30] sm:$0xff] }
 0x2d8   : > { %3750 = vmatprep.mubr.f32.mxu1 %v8674_v54  ;;  %v5806_v34 = vpop.f32.mrb[14].mxu0  ;;  %6540 = vmatpush1.bf16.msra.mxu1 %v6539_v10  ;;  %v5464_v54 = vld [vmem:[%s10119_s3 + $0xa48] sm:$0xff]  ;;  %v4141_v10 = vld [vmem:[%s10121_s5 + $0x18] sm:$0xff]  ;;  %v4156_v20 = vld [vmem:[%s10121_s5 + $0x90] sm:$0xff] }
 0x2d9   : > { %v5807_v56 = vpop.f32.mrb[15].mxu0  ;;  %5468 = vmatprep.subr.msk.mxu1 %vm2618_vm4, %v5466_v17  ;;  %v6577_v62 = vpack.c.bf16 %v5464_v54, %v5461_v11  ;;  %v5483_v17 = vld [vmem:[%s10121_s5 + $0x108] sm:$0xff]  ;;  %v6585_v55 = vpack.c.bf16 %v4141_v10, %v4140_v28  ;;  %v4144_v54 = vld [vmem:[%s10121_s5 + $0x30] sm:$0xff]  ;;  %v4158_v10 = vld [vmem:[%s10121_s5 + $0xa0] sm:$0xff] }
 0x2da   : > { %v9221_v57 = vadd.f32 %v5807_v56, %v5806_v34  ;;  %v4142_v34 = vld [vmem:[%s10121_s5 + $0x20] sm:$0xff]  ;;  %v4143_v56 = vld [vmem:[%s10121_s5 + $0x28] sm:$0xff] }
 0x2db   : > { %3751 = vmatmul.mubr.f32.gmra.mrb[12].mxu1 %v8685_v61 }
 0x2dc   : > { %3756 = vmatprep.mubr.f32.mxu1 %v8650_v35  ;;  %5469 = vmatpush1.msk.msra.mxu1 %vm2618_vm4, %v5465_v12  ;;  %v5467_v35 = vld [vmem:[%s10119_s3 + $0xa60] sm:$0x3]  ;;  %v5484_v12 = vld [vmem:[%s10121_s5 + $0x110] sm:$0xff] }
 0x2dd   : > { %6574 = vmatprep.subr.bf16.mxu1 %v6573_v52 }
 0x2df   : > { %3757 = vmatmul.mubr.f32.gmra.mrb[14].mxu1 %v8669_v18 }
 0x2e0   : > { %3827 = vmatprep.mubr.f32.mxu1 %v7199_v7 }
 0x2e3   : > { %5470 = vmatmul.mubr.msk.f32.vlgmr.msra.gmra.mrb[8].mxu1 %vm2605_vm6, %v8490_v27 }
 0x2e4   : > { %6576 = vmatpush3.bf16.msra.mxu1 %v6573_v52  ;;  %3833 = vmatprep.mubr.f32.mxu1 %v7199_v7  ;;  %v5485_v52 = vld [vmem:[%s10121_s5 + $0x118] sm:$0xff] }
 0x2e5   : > { %6578 = vmatprep.subr.bf16.mxu1 %v6577_v62  ;;  %v6633_v11 = vpack.c.bf16 %v5485_v52, %v5484_v12  ;;  %v2486_v12 = vrot.slane %v9257_v13, %v392_v45 }
 0x2e7   : > { %5471 = vmatmul.mubr.msk.f32.gmra.mrb[10].mxu1 %vm2605_vm6, %v8501_v60 }
 0x2e8   : > { %3839 = vmatprep.mubr.f32.mxu1 %v7199_v7  ;;  %6580 = vmatpush3.bf16.msra.mxu1 %v6577_v62  ;;  %v4145_v62 = vld [vmem:[%s10121_s5 + $0x38] sm:$0xff] }
 0x2e9   : > { %6055 = vmatprep.subr.msk.mxu1 %vm2618_vm4, %v5467_v35 }
 0x2eb   : > { %5472 = vmatmul.mubr.msk.f32.gmra.mrb[12].mxu1 %vm2605_vm6, %v8505_v30 }
 0x2ec   : > { %v5850_v18 = vpop.f32.mrb[16].mxu0  ;;  %3845 = vmatprep.mubr.f32.mxu1 %v7199_v7  ;;  %6056 = vmatpush3.msk.msra.mxu1 %vm2618_vm4, %v5467_v35  ;;  %v5486_v35 = vld [vmem:[%s10121_s5 + $0x120] sm:$0xff] }
 0x2ed   : > { %v5851_v61 = vpop.f32.mrb[17].mxu0  ;;  %6581 = vmatprep.subr.bf16.mxu1 %v7201_v37 }
 0x2ee   : > { %v5852_v23 = vadd.f32 %v5851_v61, %v5850_v18  ;;  %v5487_v18 = vld [vmem:[%s10121_s5 + $0x128] sm:$0xff]  ;;  %v6591_v61 = vpack.c.bf16 %v4145_v62, %v4144_v54 }
 0x2ef   : > { %5473 = vmatmul.mubr.msk.f32.gmra.mrb[14].mxu1 %vm2605_vm6, %v8473_v14 }
 0x2f0   : > { %6057 = vmatprep.mubr.msk.f32.mxu1 %vm2605_vm6, %v8490_v27  ;;  %v5853_v63 = vpop.f32.mrb[18].mxu0  ;;  %v2490_v27 = vrot.slane %v9257_v13, %v396_v22 }
 0x2f1   : > { %v5854_v0 = vpop.f32.mrb[19].mxu0 }
 0x2f2   : > { %v5855_v41 = vadd.f32 %v5854_v0, %v5853_v63  ;;  %v4146_v63 = vld [vmem:[%s10121_s5 + $0x40] sm:$0xff]  ;;  %v4147_v0 = vld [vmem:[%s10121_s5 + $0x48] sm:$0xff] }
 0x2f3   : > { %6058 = vmatmul.mubr.msk.f32.vlgmr.msra.gmra.mrb[24].mxu1 %vm2605_vm6, %v8501_v60 }
 0x2f4   : > { %6060 = vmatprep.mubr.msk.f32.mxu1 %vm2605_vm6, %v8505_v30  ;;  %v5856_v53 = vpop.f32.mrb[20].mxu0  ;;  %6583 = vmatpush1.bf16.msra.mxu1 %v6582_v38  ;;  %v5499_v38 = vld [vmem:[%s10121_s5 + $0x188] sm:$0xff] }
 0x2f5   : > { %v5857_v6 = vpop.f32.mrb[21].mxu0  ;;  %6584 = vmatprep.subr.bf16.mxu1 %v7201_v37 }
 0x2f6   : > { %v5858_v16 = vadd.f32 %v5857_v6, %v5856_v53  ;;  %v5744_v46 = vpop.f32.mrb[16].mxu1  ;;  %v5489_v53 = vld [vmem:[%s10121_s5 + $0x138] sm:$0xff]  ;;  %v6594_v6 = vpack.c.bf16 %v4147_v0, %v4146_v63 }
 0x2f7   : > { %6061 = vmatmul.mubr.msk.f32.gmra.mrb[26].mxu1 %vm2605_vm6, %v8473_v14  ;;  %v5745_v60 = vpop.f32.mrb[17].mxu1 }
 0x2f8   : > { %v5746_v50 = vadd.f32 %v5745_v60, %v5744_v46  ;;  %v5859_v29 = vpop.f32.mrb[22].mxu0  ;;  %6586 = vmatpush1.bf16.msra.mxu1 %v6585_v55  ;;  %v4148_v46 = vld [vmem:[%s10121_s5 + $0x50] sm:$0xff]  ;;  %v5490_v60 = vld [vmem:[%s10121_s5 + $0x140] sm:$0xff] }
 0x2f9   : > { %v5860_v44 = vpop.f32.mrb[23].mxu0  ;;  %6587 = vmatprep.subr.bf16.mxu1 %v7201_v37  ;;  %v5500_v55 = vld [vmem:[%s10121_s5 + $0x190] sm:$0xff] }
 0x2fa   : > { %v6904_v1 = vadd.f32 %v5746_v50, %v2490_v27  ;;  %v5861_v49 = vadd.f32 %v5860_v44, %v5859_v29  ;;  %v5747_v4 = vpop.f32.mrb[18].mxu1  ;;  %v5491_v50 = vld [vmem:[%s10121_s5 + $0x148] sm:$0xff] }
 0x2fb   : > { %v5748_v3 = vpop.f32.mrb[19].mxu1  ;;  %v6642_v44 = vpack.c.bf16 %v5491_v50, %v5490_v60 }
 0x2fc   : > { %v5749_v30 = vadd.f32 %v5748_v3, %v5747_v4  ;;  %v6905_v48 = vadd.f32 %v6904_v1, %v9180_v51  ;;  %v4150_v1 = vld [vmem:[%s10121_s5 + $0x60] sm:$0xff]  ;;  %v5492_v4 = vld [vmem:[%s10121_s5 + $0x150] sm:$0xff]  ;;  %v5493_v3 = vld [vmem:[%s10121_s5 + $0x158] sm:$0xff] }
 0x2fe   : > { %v6900_v5 = vadd.f32 %v5749_v30, %v2490_v27  ;;  %v5750_v32 = vpop.f32.mrb[20].mxu1  ;;  %v9267_v58 = vadd.f32 %v6905_v48, %v5852_v23  ;;  %v6636_v23 = vpack.c.bf16 %v5487_v18, %v5486_v35  ;;  %v6645_v48 = vpack.c.bf16 %v5493_v3, %v5492_v4  ;;  %v5505_v4 = vld [vmem:[%s10121_s5 + $0x1b8] sm:$0xff] }
 0x2ff   : > { %v5751_v40 = vpop.f32.mrb[21].mxu1 }
 0x300   : > { %v5752_v22 = vadd.f32 %v5751_v40, %v5750_v32  ;;  %v6901_v8 = vadd.f32 %v6900_v5, %v9200_v33  ;;  %v5481_v33 = vld [vmem:[%s10121_s5 + $0xf8] sm:$0xff]  ;;  %v4152_v5 = vld [vmem:[%s10121_s5 + $0x70] sm:$0xff]  ;;  %v5494_v40 = vld [vmem:[%s10121_s5 + $0x160] sm:$0xff] }
 0x301   : > { %v6627_v26 = vpack.c.bf16 %v5481_v33, %v5480_v36  ;;  %v4153_v32 = vld [vmem:[%s10121_s5 + $0x78] sm:$0xff]  ;;  %v5498_v36 = vld [vmem:[%s10121_s5 + $0x180] sm:$0xff]  ;;  %v6609_v33 = vpack.c.bf16 %v4157_v31, %v4156_v20 }
 0x302   : > { %v6912_v14 = vadd.f32 %v5752_v22, %v2490_v27  ;;  %v5753_v42 = vpop.f32.mrb[22].mxu1  ;;  %v9270_v2 = vadd.f32 %v6901_v8, %v5855_v41  ;;  %v5488_v41 = vld [vmem:[%s10121_s5 + $0x130] sm:$0xff]  ;;  %v5495_v22 = vld [vmem:[%s10121_s5 + $0x168] sm:$0xff]  ;;  %v6603_v8 = vpack.c.bf16 %v4153_v32, %v4152_v5  ;;  %v6654_v28 = vpack.c.bf16 %v5499_v38, %v5498_v36  ;;  %v4165_v32 = vld [vmem:[%s10121_s5 + $0xd8] sm:$0xff] }
 0x303   : > { %v5754_v9 = vpop.f32.mrb[23].mxu1  ;;  %6628 = vmatpush1.bf16.msra.mxu0 %v6627_v26  ;;  %v4159_v26 = vld [vmem:[%s10121_s5 + $0xa8] sm:$0xff]  ;;  %v4164_v5 = vld [vmem:[%s10121_s5 + $0xd0] sm:$0xff] }
 0x304   : > { %v5755_v59 = vadd.f32 %v5754_v9, %v5753_v42  ;;  %v6913_v19 = vadd.f32 %v6912_v14, %v9204_v39  ;;  %v5482_v39 = vld [vmem:[%s10121_s5 + $0x100] sm:$0xff]  ;;  %6629 = vmatprep.subr.bf16.mxu0 %v7201_v37  ;;  %v6648_v14 = vpack.c.bf16 %v5495_v22, %v5494_v40  ;;  %v4155_v9 = vld [vmem:[%s10121_s5 + $0x88] sm:$0xff] }
 0x305   : > { %v6630_v15 = vpack.c.bf16 %v5483_v17, %v5482_v39  ;;  %v4154_v42 = vld [vmem:[%s10121_s5 + $0x80] sm:$0xff]  ;;  %v6612_v39 = vpack.c.bf16 %v4159_v26, %v4158_v10  ;;  %v2482_v17 = vrot.slane %v9257_v13, %v388_v43  ;;  %v4161_v43 = vld [vmem:[%s10121_s5 + $0xb8] sm:$0xff] }
 0x306   : > { %v6908_v24 = vadd.f32 %v5755_v59, %v2490_v27  ;;  %v9273_v25 = vadd.f32 %v6913_v19, %v5858_v16  ;;  %v6639_v16 = vpack.c.bf16 %v5489_v53, %v5488_v41  ;;  %v4149_v27 = vld [vmem:[%s10121_s5 + $0x58] sm:$0xff]  ;;  %v5496_v59 = vld [vmem:[%s10121_s5 + $0x170] sm:$0xff]  ;;  %v5506_v26 = vld [vmem:[%s10121_s5 + $0x1c0] sm:$0xff] }
 0x307   : > { %6631 = vmatpush1.bf16.msra.mxu0 %v6630_v15  ;;  %v6597_v29 = vpack.c.bf16 %v4149_v27, %v4148_v46  ;;  %v5497_v19 = vld [vmem:[%s10121_s5 + $0x178] sm:$0xff]  ;;  %v5503_v46 = vld [vmem:[%s10121_s5 + $0x1a8] sm:$0xff]  ;;  %v4162_v27 = vld [vmem:[%s10121_s5 + $0xc0] sm:$0xff] }
 0x308   : > { %v6909_v51 = vadd.f32 %v6908_v24, %v9221_v57  ;;  %v6588_v57 = vpack.c.bf16 %v4143_v56, %v4142_v34  ;;  %6632 = vmatprep.subr.bf16.mxu0 %v7201_v37  ;;  %v6606_v24 = vpack.c.bf16 %v4155_v9, %v4154_v42  ;;  %v5501_v15 = vld [vmem:[%s10121_s5 + $0x198] sm:$0xff]  ;;  %v4160_v34 = vld [vmem:[%s10121_s5 + $0xb0] sm:$0xff] }
 0x309   : > { %v6657_v52 = vpack.c.bf16 %v5501_v15, %v5500_v55 }
 0x30a   : > { %v9276_v47 = vadd.f32 %v6909_v51, %v5861_v49  ;;  %6589 = vmatpush1.bf16.msra.mxu1 %v6588_v57  ;;  %v4151_v49 = vld [vmem:[%s10121_s5 + $0x68] sm:$0xff]  ;;  %v6651_v51 = vpack.c.bf16 %v5497_v19, %v5496_v59  ;;  %v6621_v59 = vpack.c.bf16 %v4165_v32, %v4164_v5 }
 0x30b   : > { %6634 = vmatpush1.bf16.msra.mxu0 %v6633_v11  ;;  %6590 = vmatprep.subr.bf16.mxu1 %v7201_v37  ;;  %v6600_v30 = vpack.c.bf16 %v4151_v49, %v4150_v1  ;;  %v6615_v11 = vpack.c.bf16 %v4161_v43, %v4160_v34  ;;  %v4163_v1 = vld [vmem:[%s10121_s5 + $0xc8] sm:$0xff]  ;;  %v5504_v49 = vld [vmem:[%s10121_s5 + $0x1b0] sm:$0xff] }
 0x30c   : > { %6635 = vmatprep.subr.bf16.mxu0 %v7201_v37 }
 0x30e   : > { %6592 = vmatpush1.bf16.msra.mxu1 %v6591_v61 }
 0x30f   : > { %6637 = vmatpush1.bf16.msra.mxu0 %v6636_v23  ;;  %6593 = vmatprep.subr.bf16.mxu1 %v7201_v37 }
 0x310   : > { %6638 = vmatprep.subr.bf16.mxu0 %v7201_v37 }
 0x312   : > { %6595 = vmatpush1.bf16.msra.mxu1 %v6594_v6 }
 0x313   : > { %6640 = vmatpush1.bf16.msra.mxu0 %v6639_v16  ;;  %6596 = vmatprep.subr.bf16.mxu1 %v7201_v37  ;;  %v5502_v16 = vld [vmem:[%s10121_s5 + $0x1a0] sm:$0xff] }
 0x314   : > { %6641 = vmatprep.subr.bf16.mxu0 %v7201_v37 }
 0x316   : > { %6598 = vmatpush1.bf16.msra.mxu1 %v6597_v29 }
 0x317   : > { %6643 = vmatpush1.bf16.msra.mxu0 %v6642_v44  ;;  %6599 = vmatprep.subr.bf16.mxu1 %v7201_v37  ;;  %v6660_v44 = vpack.c.bf16 %v5503_v46, %v5502_v16 }
 0x318   : > { %6644 = vmatprep.subr.bf16.mxu0 %v7201_v37 }
 0x31a   : > { %6601 = vmatpush1.bf16.msra.mxu1 %v6600_v30 }
 0x31b   : > { %6646 = vmatpush1.bf16.msra.mxu0 %v6645_v48  ;;  %6602 = vmatprep.subr.bf16.mxu1 %v7201_v37  ;;  %v6618_v48 = vpack.c.bf16 %v4163_v1, %v4162_v27  ;;  %v5512_v1 = vld [vmem:[%s10121_s5 + $0x1e8] sm:$0xff] }
 0x31c   : > { %6647 = vmatprep.subr.bf16.mxu0 %v7201_v37 }
 0x31e   : > { %6604 = vmatpush1.bf16.msra.mxu1 %v6603_v8  ;;  %v6663_v8 = vpack.c.bf16 %v5505_v4, %v5504_v49 }
 0x31f   : > { %6649 = vmatpush1.bf16.msra.mxu0 %v6648_v14  ;;  %6605 = vmatprep.subr.bf16.mxu1 %v7201_v37 }
 0x320   : > { %6650 = vmatprep.subr.bf16.mxu0 %v7201_v37 }
 0x322   : > { %6607 = vmatpush1.bf16.msra.mxu1 %v6606_v24 }
 0x323   : > { %6652 = vmatpush1.bf16.msra.mxu0 %v6651_v51  ;;  %6608 = vmatprep.subr.bf16.mxu1 %v7201_v37 }
 0x324   : > { %6653 = vmatprep.subr.bf16.mxu0 %v7201_v37 }
 0x326   : > { %6610 = vmatpush1.bf16.msra.mxu1 %v6609_v33 }
 0x327   : > { %6655 = vmatpush1.bf16.msra.mxu0 %v6654_v28  ;;  %6611 = vmatprep.subr.bf16.mxu1 %v7201_v37 }
 0x328   : > { %6656 = vmatprep.subr.bf16.mxu0 %v7201_v37 }
 0x32a   : > { %6613 = vmatpush1.bf16.msra.mxu1 %v6612_v39  ;;  %v5507_v39 = vld [vmem:[%s10121_s5 + $0x1c8] sm:$0xff] }
 0x32b   : > { %6614 = vmatprep.subr.bf16.mxu1 %v7201_v37  ;;  %6658 = vmatpush1.bf16.msra.mxu0 %v6657_v52  ;;  %v6666_v34 = vpack.c.bf16 %v5507_v39, %v5506_v26  ;;  %v5523_v26 = vld [vmem:[%s10121_s5 + $0x240] sm:$0xff]  ;;  %v5524_v39 = vld [vmem:[%s10121_s5 + $0x248] sm:$0xff] }
 0x32c   : > { %6659 = vmatprep.subr.bf16.mxu0 %v7201_v37 }
 0x32e   : > { %6616 = vmatpush1.bf16.msra.mxu1 %v6615_v11 }
 0x32f   : > { %6617 = vmatprep.subr.bf16.mxu1 %v7201_v37  ;;  %6661 = vmatpush1.bf16.msra.mxu0 %v6660_v44  ;;  %v5511_v44 = vld [vmem:[%s10121_s5 + $0x1e0] sm:$0xff] }
 0x330   : > { %6662 = vmatprep.subr.bf16.mxu0 %v7201_v37  ;;  %v6672_v5 = vpack.c.bf16 %v5512_v1, %v5511_v44  ;;  %v5545_v1 = vld [vmem:[%s10121_s5 + $0x2e8] sm:$0xff] }
 0x332   : > { %6619 = vmatpush1.bf16.msra.mxu1 %v6618_v48 }
 0x333   : > { %6620 = vmatprep.subr.bf16.mxu1 %v7201_v37  ;;  %6664 = vmatpush1.bf16.msra.mxu0 %v6663_v8 }
 0x334   : > { %6665 = vmatprep.subr.bf16.mxu0 %v7201_v37 }
 0x336   : > { %6622 = vmatpush1.bf16.msra.mxu1 %v6621_v59 }
 0x337   : > { %6623 = vmatprep.subr.bf16.mxu1 %v7201_v37  ;;  %6667 = vmatpush1.bf16.msra.mxu0 %v6666_v34 }
 0x338   : > { %6668 = vmatprep.subr.bf16.mxu0 %v7201_v37 }
 0x3b6   : > { %v3829_v56 = vpop.f32.mrb[8].mxu1 }
 0x3b7   : > { %v3831_v57 = vpop.f32.mrb[9].mxu1  ;;  %v6892_v54 = vadd.f32 %v3829_v56, %v2482_v17  ;;  %v4167_v56 = vld [vmem:[%s10121_s5 + $0xe8] sm:$0xff] }
 0x3b8   : > { %v6893_v62 = vadd.f32 %v3831_v57, %v2486_v12 }
 0x3b9   : > { %v4046_v45 = vrot.slane %v6892_v54, 2 }
 0x3ba   : > { %v3835_v35 = vpop.f32.mrb[10].mxu1  ;;  %v4049_v23 = vrot.slane %v6893_v62, 2 }
 0x3bb   : > { %v6894_v18 = vadd.f32 %v3835_v35, %v2482_v17  ;;  %v3837_v21 = vpop.f32.mrb[11].mxu1  ;;  %v5509_v35 = vld [vmem:[%s10121_s5 + $0x1d8] sm:$0xff] }
 0x3bc   : > { %v6895_v61 = vadd.f32 %v3837_v21, %v2486_v12 }
 0x3bd   : > { %v4047_v13 = vrot.slane %v6894_v18, 2 }
 0x3be   : > { %v4050_v63 = vrot.slane %v6895_v61, 2  ;;  %v3841_v0 = vpop.f32.mrb[12].mxu1 }
 0x3bf   : > { %v6896_v41 = vadd.f32 %v3841_v0, %v2482_v17  ;;  %v3843_v53 = vpop.f32.mrb[13].mxu1  ;;  %v4048_v6 = vsel %vm3108_vm3, %v4046_v45, %v4047_v13 }
 0x3c0   : > { %v6897_v60 = vadd.f32 %v3843_v53, %v2486_v12  ;;  %v4051_v50 = vsel %vm3108_vm3, %v4049_v23, %v4050_v63  ;;  %v9458_v29 = vmax.f32 %v6892_v54, %v4048_v6 }
 0x3c1   : > { %v4055_v3 = vrot.slane %v6896_v41, 2  ;;  %v9469_v30 = vmax.f32 %v6893_v62, %v4051_v50  ;;  %v5508_v62 = vld [vmem:[%s10121_s5 + $0x1d0] sm:$0xff] }
 0x3c2   : > { %v4057_v40 = vrot.slane %v6897_v60, 2  ;;  %v3847_v22 = vpop.f32.mrb[14].mxu1 }
 0x3c3   : > { %v6898_v14 = vadd.f32 %v3847_v22, %v2482_v17  ;;  %4096 = vrot.lane.b32.xlu0 %v9469_v30, %s7202_s14  ;;  %v3849_v42 = vpop.f32.mrb[15].mxu1  ;;  %v4056_v9 = vsel %vm3108_vm3, %v4047_v13, %v4055_v3  ;;  %v4166_v17 = vld [vmem:[%s10121_s5 + $0xe0] sm:$0xff]  ;;  %v5514_v22 = vld [vmem:[%s10121_s5 + $0x1f8] sm:$0xff] }
 0x3c4   : > { %v6899_v19 = vadd.f32 %v3849_v42, %v2486_v12  ;;  %v4058_v24 = vsel %vm3108_vm3, %v4050_v63, %v4057_v40  ;;  %v9481_v51 = vmax.f32 %v6894_v18, %v4056_v9  ;;  %v6624_v43 = vpack.c.bf16 %v4167_v56, %v4166_v17  ;;  %v5515_v42 = vld [vmem:[%s10121_s5 + $0x200] sm:$0xff]  ;;  %v5516_v9 = vld [vmem:[%s10121_s5 + $0x208] sm:$0xff] }
 0x3c5   : > { %v4061_v20 = vrot.slane %v6898_v14, 2  ;;  %v9485_v31 = vmax.f32 %v6895_v61, %v4058_v24  ;;  %v6669_v61 = vpack.c.bf16 %v5509_v35, %v5508_v62  ;;  %v6678_v59 = vpack.c.bf16 %v5516_v9, %v5515_v42  ;;  %v5518_v24 = vld [vmem:[%s10121_s5 + $0x218] sm:$0xff]  ;;  %v5527_v56 = vld [vmem:[%s10121_s5 + $0x260] sm:$0xff]  ;;  %v5532_v62 = vld [vmem:[%s10121_s5 + $0x288] sm:$0xff] }
 0x3c6   : > { %v4063_v36 = vrot.slane %v6899_v19, 2  ;;  %v6059_v38 = vpop.f32.mrb[24].mxu1  ;;  %6625 = vmatpush1.bf16.msra.mxu1 %v6624_v43  ;;  %v5517_v19 = vld [vmem:[%s10121_s5 + $0x210] sm:$0xff]  ;;  %v6690_v17 = vpack.c.bf16 %v5524_v39, %v5523_v26  ;;  %v5553_v42 = vld [vmem:[%s10121_s5 + $0x328] sm:$0xff] }
 0x3c7   : > { %v6903_v33 = vadd.f32 %v9270_v2, %v6059_v38  ;;  %4094 = vrot.lane.b32.xlu0 %v9458_v29, %s7202_s14  ;;  %v4003_v28 = vpop.f32.mrb[25].mxu1  ;;  %v4062_v10 = vsel %vm3108_vm3, %v4055_v3, %v4061_v20  ;;  %6063 = vmatprep.subr.mxu1 %v7199_v7  ;;  %v6681_v20 = vpack.c.bf16 %v5518_v24, %v5517_v19  ;;  %v5555_v19 = vld [vmem:[%s10121_s5 + $0x338] sm:$0xff]  ;;  %v5561_v26 = vld [vmem:[%s10121_s5 + $0x368] sm:$0xff] }
 0x3c8   : > { %v6907_v2 = vadd.f32 %v9267_v58, %v4003_v28  ;;  %v4064_v55 = vsel %vm3108_vm3, %v4057_v40, %v4063_v36  ;;  %v9502_v15 = vmax.f32 %v6896_v41, %v4062_v10  ;;  %6670 = vmatpush1.bf16.msra.mxu0 %v6669_v61  ;;  %v5513_v40 = vld [vmem:[%s10121_s5 + $0x1f0] sm:$0xff]  ;;  %v5520_v36 = vld [vmem:[%s10121_s5 + $0x228] sm:$0xff]  ;;  %v5522_v28 = vld [vmem:[%s10121_s5 + $0x238] sm:$0xff] }
 0x3c9   : > { %v4053_v12 = vrot.slane %v6903_v33, 2  ;;  %v9508_v52 = vmax.f32 %v6897_v60, %v4064_v55  ;;  %6671 = vmatprep.subr.bf16.mxu0 %v7201_v37  ;;  %v6675_v14 = vpack.c.bf16 %v5514_v22, %v5513_v40  ;;  %v5526_v55 = vld [vmem:[%s10121_s5 + $0x258] sm:$0xff]  ;;  %v5550_v40 = vld [vmem:[%s10121_s5 + $0x310] sm:$0xff] }
 0x3ca   : > { %v4052_v57 = vrot.slane %v6907_v2, 2  ;;  %v6062_v11 = vpop.f32.mrb[26].mxu1  ;;  %v5551_v22 = vld [vmem:[%s10121_s5 + $0x318] sm:$0xff] }
 0x3cb   : > { %v6911_v58 = vadd.f32 %v9276_v47, %v6062_v11  ;;  %v4013_v54 = vpop.f32.mrb[27].mxu1  ;;  %v5530_v11 = vld [vmem:[%s10121_s5 + $0x278] sm:$0xff] }
 0x3cc   : > { %v4054_v18 = vsel %vm3108_vm3, %v4052_v57, %v4053_v12  ;;  %v6915_v21 = vadd.f32 %v9273_v25, %v4013_v54  ;;  %v5529_v57 = vld [vmem:[%s10121_s5 + $0x270] sm:$0xff]  ;;  %v5531_v54 = vld [vmem:[%s10121_s5 + $0x280] sm:$0xff] }
 0x3cd   : > { %v4078_v47 = vmax.f32 %v6907_v2, %v4054_v18  ;;  %v4065_v45 = vrot.slane %v6911_v58, 2  ;;  %v5525_v2 = vld [vmem:[%s10121_s5 + $0x250] sm:$0xff]  ;;  %v6699_v58 = vpack.c.bf16 %v5530_v11, %v5529_v57  ;;  %v6702_v35 = vpack.c.bf16 %v5532_v62, %v5531_v54  ;;  %v5567_v57 = vld [vmem:[%s10121_s5 + $0x398] sm:$0xff]  ;;  %v5569_v54 = vld [vmem:[%s10121_s5 + $0x3a8] sm:$0xff] }
 0x3ce   : > { %v4059_v13 = vrot.slane %v6915_v21, 2  ;;  %v6693_v34 = vpack.c.bf16 %v5526_v55, %v5525_v2  ;;  %v5533_v18 = vld [vmem:[%s10121_s5 + $0x290] sm:$0xff]  ;;  %v5563_v2 = vld [vmem:[%s10121_s5 + $0x378] sm:$0xff] }
 0x3cf   : > { %4098 = vrot.lane.b32.xlu1 %v4078_v47, %s7202_s14  ;;  %v5535_v47 = vld [vmem:[%s10121_s5 + $0x2a0] sm:$0xff] }
 0x3d0   : > { %v4066_v23 = vsel %vm3108_vm3, %v4059_v13, %v4065_v45  ;;  %v4060_v63 = vsel %vm3108_vm3, %v4053_v12, %v4059_v13  ;;  %v5528_v12 = vld [vmem:[%s10121_s5 + $0x268] sm:$0xff] }
 0x3d1   : > { %v4084_v0 = vmax.f32 %v6915_v21, %v4066_v23  ;;  %v4081_v41 = vmax.f32 %v6903_v33, %v4060_v63  ;;  %v5521_v33 = vld [vmem:[%s10121_s5 + $0x230] sm:$0xff]  ;;  %v6696_v43 = vpack.c.bf16 %v5528_v12, %v5527_v56  ;;  %v5534_v21 = vld [vmem:[%s10121_s5 + $0x298] sm:$0xff]  ;;  %v5536_v45 = vld [vmem:[%s10121_s5 + $0x2a8] sm:$0xff] }
 0x3d2   : > { %v6687_v10 = vpack.c.bf16 %v5522_v28, %v5521_v33  ;;  %v6705_v61 = vpack.c.bf16 %v5534_v21, %v5533_v18  ;;  %v6708_v13 = vpack.c.bf16 %v5536_v45, %v5535_v47  ;;  %v5537_v23 = vld [vmem:[%s10121_s5 + $0x2b0] sm:$0xff]  ;;  %v5538_v63 = vld [vmem:[%s10121_s5 + $0x2b8] sm:$0xff]  ;;  %v5565_v56 = vld [vmem:[%s10121_s5 + $0x388] sm:$0xff] }
 0x3d3   : > { %4104 = vrot.lane.b32.xlu0 %v4081_v41, %s7202_s14  ;;  %4102 = vrot.lane.b32.xlu1 %v9485_v31, %s7202_s14  ;;  %v6711_v41 = vpack.c.bf16 %v5538_v63, %v5537_v23  ;;  %v5559_v33 = vld [vmem:[%s10121_s5 + $0x358] sm:$0xff]  ;;  %v5570_v18 = vld [vmem:[%s10121_s5 + $0x3b0] sm:$0xff] }
 0x3d4   : > { %v5571_v21 = vld [vmem:[%s10121_s5 + $0x3b8] sm:$0xff]  ;;  %v5574_v23 = vld [vmem:[%s10121_s5 + $0x3c8] sm:$0xff] }
 0x3d5   : > { %v6759_v45 = vpack.c.bf16 %v5571_v21, %v5570_v18 }
 0x3d7   : > { %4108 = vrot.lane.b32.xlu0 %v9508_v52, %s7202_s14  ;;  %4100 = vrot.lane.b32.xlu1 %v9481_v51, %s7202_s14 }
 0x3db   : > { %4106 = vrot.lane.b32.xlu0 %v9502_v15, %s7202_s14  ;;  %4110 = vrot.lane.b32.xlu1 %v4084_v0, %s7202_s14  ;;  %s5637_s14 = sshll.u32 %s7286_s21, 4  ;;  %s7204_s21 = smov [#allocation2]  }
 0x3dc   : > { %s10073_s24 = scalar_lea.hbm %s10127_s11, %s5637_s14  ;;  %s7139_s26 = sshll.u32 %s7204_s21, 4  ;;  %s7140_s26 = int_to_ptr.vmem [resolvable:$false] %s7139_s26 }
 0x3dd   : > { %s7141_s29 = scalar_lea.vmem %s7140_s26, 32  ;;  %p7142_p0 = scmp.lt.s32.totalorder %s10075_s16, %s7140_s26 }
 0x3de   : > { %p7143_p1 = scmp.lt.s32.totalorder %s7141_s29, %s7135_s19 }
 0x3e0   : > { %p7144_p2 = por %p7143_p1, %p7142_p0 }
 0x3e2   : > { %p7145_p3 = pnand %p7144_p2, %p7138_p13 }
 0x435   : > { %v4097_v25 = vpop.permute.xlu0 %4096 }
 0x439   : > { %v4095_v53 = vpop.permute.xlu0 %4094 }
 0x43a   : > { %v4113_v6 = vsel %vm4112_vm7, %v4095_v53, %v4097_v25  ;;  %v5540_v53 = vld [vmem:[%s10121_s5 + $0x2c8] sm:$0xff] }
 0x43b   : > { %v4125_v16 = vmax.f32 %v9458_v29, %v4113_v6 }
 0x43d   : > { %v4131_v50 = vmax.f32 %v4125_v16, 0.0 }
 0x43f   : > { %v4275_v32 = vrot.slane %v4131_v50, 4 }
 0x441   : > { %v4099_v46 = vpop.permute.xlu1 %4098 }
 0x442   : > { %v4114_v27 = vsel %vm4112_vm7, %v4097_v25, %v4099_v46  ;;  %v5539_v25 = vld [vmem:[%s10121_s5 + $0x2c0] sm:$0xff] }
 0x443   : > { %v4126_v60 = vmax.f32 %v9469_v30, %v4114_v27  ;;  %v6714_v16 = vpack.c.bf16 %v5540_v53, %v5539_v25  ;;  %v5542_v27 = vld [vmem:[%s10121_s5 + $0x2d0] sm:$0xff]  ;;  %v5576_v53 = vld [vmem:[%s10121_s5 + $0x3d8] sm:$0xff] }
 0x444   : > { %v5575_v25 = vld [vmem:[%s10121_s5 + $0x3d0] sm:$0xff] }
 0x445   : > { %v4132_v49 = vmax.f32 %v4126_v60, 0.0  ;;  %v4105_v4 = vpop.permute.xlu0 %4104  ;;  %v9546_v3 = vpop.permute.xlu1 %4102  ;;  %v5543_v60 = vld [vmem:[%s10121_s5 + $0x2d8] sm:$0xff] }
 0x446   : > { %v4116_v29 = vsel %vm4112_vm7, %v9546_v3, %v4105_v4 }
 0x447   : > { %v4276_v48 = vrot.slane %v4132_v49, 4  ;;  %v4128_v30 = vmax.f32 %v9485_v31, %v4116_v29  ;;  %5479 = vmatprep.mubr.msk.f32.mxu1 %vm4168_vm8, %v4132_v49  ;;  %v5519_v31 = vld [vmem:[%s10121_s5 + $0x220] sm:$0xff]  ;;  %v5547_v29 = vld [vmem:[%s10121_s5 + $0x2f8] sm:$0xff] }
 0x448   : > { %4237 = vmatmul.mubr.f32.vlgmr.msra.gmra.mrb[28].mxu1 %v4131_v50  ;;  %v6684_v38 = vpack.c.bf16 %v5520_v36, %v5519_v31  ;;  %v6717_v50 = vpack.c.bf16 %v5543_v60, %v5542_v27  ;;  %v5557_v31 = vld [vmem:[%s10121_s5 + $0x348] sm:$0xff]  ;;  %v5579_v60 = vld [vmem:[%s10121_s5 + $0x3f0] sm:$0xff] }
 0x449   : > { %v9558_v8 = vmax.f32 %v4128_v30, 0.0  ;;  %5510 = vmatprep.mubr.msk.f32.mxu0 %vm4168_vm8, %v4276_v48  ;;  %v4101_v0 = vpop.permute.xlu1 %4100  ;;  %v5548_v30 = vld [vmem:[%s10121_s5 + $0x300] sm:$0xff]  ;;  %6065 = vmatprep.mubr.msk.f32.mxu1 %vm7203_vm9, %v7199_v7 }
 0x44a   : > { %4345 = vmatmul.mubr.f32.vlgmr.msra.gmra.mrb[24].mxu0 %v4275_v32  ;;  %v4115_v6 = vsel %vm4112_vm7, %v4101_v0, %v9546_v3  ;;  %v5546_v3 = vld [vmem:[%s10121_s5 + $0x2f0] sm:$0xff] }
 0x44b   : > { %6673 = vmatpush1.bf16.msra.mxu0 %v6672_v5  ;;  %5541 = vmatprep.mubr.msk.f32.mxu0 %vm4168_vm8, %v9558_v8  ;;  %v4127_v46 = vmax.f32 %v9481_v51, %v4115_v6  ;;  %v5544_v51 = vld [vmem:[%s10121_s5 + $0x2e0] sm:$0xff]  ;;  %v4489_v49 = vrot.slane %v9558_v8, 4  ;;  %v6723_v48 = vpack.c.bf16 %v5547_v29, %v5546_v3  ;;  %v5549_v5 = vld [vmem:[%s10121_s5 + $0x308] sm:$0xff]  ;;  %v6729_v8 = vpack.c.bf16 %v5551_v22, %v5550_v40  ;;  %v5584_v3 = vld [vmem:[%s10121_s5 + $0x418] sm:$0xff] }
 0x44c   : > { %6674 = vmatprep.subr.bf16.mxu0 %v7201_v37  ;;  %v6720_v4 = vpack.c.bf16 %v5545_v1, %v5544_v51  ;;  %v6726_v32 = vpack.c.bf16 %v5549_v5, %v5548_v30  ;;  %v5581_v51 = vld [vmem:[%s10121_s5 + $0x400] sm:$0xff]  ;;  %v5582_v1 = vld [vmem:[%s10121_s5 + $0x408] sm:$0xff]  ;;  %v5588_v40 = vld [vmem:[%s10121_s5 + $0x438] sm:$0xff] }
 0x44d   : > { %v9664_v44 = vmax.f32 %v4127_v46, 0.0  ;;  %v4111_v62 = vpop.permute.xlu1 %4110  ;;  %v5578_v46 = vld [vmem:[%s10121_s5 + $0x3e8] sm:$0xff] }
 0x44e   : > { %v5586_v30 = vld [vmem:[%s10121_s5 + $0x428] sm:$0xff] }
 0x44f   : > { %6676 = vmatpush1.bf16.msra.mxu0 %v6675_v14  ;;  %v5552_v14 = vld [vmem:[%s10121_s5 + $0x320] sm:$0xff] }
 0x450   : > { %6677 = vmatprep.subr.bf16.mxu0 %v7201_v37  ;;  %v6732_v9 = vpack.c.bf16 %v5553_v42, %v5552_v14  ;;  %v5590_v14 = vld [vmem:[%s10121_s5 + $0x448] sm:$0xff] }
 0x453   : > { %6679 = vmatpush1.bf16.msra.mxu0 %v6678_v59  ;;  %v5554_v59 = vld [vmem:[%s10121_s5 + $0x330] sm:$0xff] }
 0x454   : > { %6680 = vmatprep.subr.bf16.mxu0 %v7201_v37  ;;  %v6735_v24 = vpack.c.bf16 %v5555_v19, %v5554_v59  ;;  %v5592_v59 = vld [vmem:[%s10121_s5 + $0x458] sm:$0xff] }
 0x457   : > { %6682 = vmatpush1.bf16.msra.mxu0 %v6681_v20  ;;  %v5556_v20 = vld [vmem:[%s10121_s5 + $0x340] sm:$0xff] }
 0x458   : > { %6683 = vmatprep.subr.bf16.mxu0 %v7201_v37  ;;  %v6738_v36 = vpack.c.bf16 %v5557_v31, %v5556_v20  ;;  %v5594_v20 = vld [vmem:[%s10121_s5 + $0x468] sm:$0xff] }
 0x45b   : > { %6685 = vmatpush1.bf16.msra.mxu0 %v6684_v38  ;;  %v5558_v38 = vld [vmem:[%s10121_s5 + $0x350] sm:$0xff] }
 0x45c   : > { %6686 = vmatprep.subr.bf16.mxu0 %v7201_v37  ;;  %v6741_v28 = vpack.c.bf16 %v5559_v33, %v5558_v38  ;;  %v5596_v38 = vld [vmem:[%s10121_s5 + $0x478] sm:$0xff] }
 0x45f   : > { %6688 = vmatpush1.bf16.msra.mxu0 %v6687_v10  ;;  %v5560_v10 = vld [vmem:[%s10121_s5 + $0x360] sm:$0xff] }
 0x460   : > { %6689 = vmatprep.subr.bf16.mxu0 %v7201_v37  ;;  %v6744_v39 = vpack.c.bf16 %v5561_v26, %v5560_v10  ;;  %v5598_v10 = vld [vmem:[%s10121_s5 + $0x488] sm:$0xff] }
 0x463   : > { %6691 = vmatpush1.bf16.msra.mxu0 %v6690_v17  ;;  %v5562_v17 = vld [vmem:[%s10121_s5 + $0x370] sm:$0xff] }
 0x464   : > { %6692 = vmatprep.subr.bf16.mxu0 %v7201_v37  ;;  %v6747_v55 = vpack.c.bf16 %v5563_v2, %v5562_v17  ;;  %v5600_v17 = vld [vmem:[%s10121_s5 + $0x498] sm:$0xff] }
 0x467   : > { %6694 = vmatpush1.bf16.msra.mxu0 %v6693_v34  ;;  %v5564_v34 = vld [vmem:[%s10121_s5 + $0x380] sm:$0xff] }
 0x468   : > { %6695 = vmatprep.subr.bf16.mxu0 %v7201_v37  ;;  %v6750_v12 = vpack.c.bf16 %v5565_v56, %v5564_v34  ;;  %v5601_v34 = vld [vmem:[%s10121_s5 + $0x4a0] sm:$0xff]  ;;  %v5602_v56 = vld [vmem:[%s10121_s5 + $0x4a8] sm:$0xff] }
 0x46b   : > { %6697 = vmatpush1.bf16.msra.mxu0 %v6696_v43  ;;  %v5566_v43 = vld [vmem:[%s10121_s5 + $0x390] sm:$0xff] }
 0x46c   : > { %6698 = vmatprep.subr.bf16.mxu0 %v7201_v37  ;;  %v6753_v11 = vpack.c.bf16 %v5567_v57, %v5566_v43  ;;  %v6804_v43 = vpack.c.bf16 %v5602_v56, %v5601_v34 }
 0x46f   : > { %6700 = vmatpush1.bf16.msra.mxu0 %v6699_v58  ;;  %v5568_v58 = vld [vmem:[%s10121_s5 + $0x3a0] sm:$0xff] }
 0x470   : > { %6701 = vmatprep.subr.bf16.mxu0 %v7201_v37 }
 0x473   : > { %6703 = vmatpush1.bf16.msra.mxu0 %v6702_v35  ;;  %v6756_v35 = vpack.c.bf16 %v5569_v54, %v5568_v58  ;;  %v5605_v58 = vld [vmem:[%s10121_s5 + $0x4b8] sm:$0xff] }
 0x474   : > { %6704 = vmatprep.subr.bf16.mxu0 %v7201_v37 }
 0x477   : > { %6706 = vmatpush1.bf16.msra.mxu0 %v6705_v61  ;;  %v9767_v61 = vpop.permute.xlu0 %4108 }
 0x478   : > { %6707 = vmatprep.subr.bf16.mxu0 %v7201_v37  ;;  %v4118_v47 = vsel %vm4112_vm7, %v9767_v61, %v4111_v62 }
 0x479   : > { %v4130_v63 = vmax.f32 %v9508_v52, %v4118_v47  ;;  %v6765_v52 = vpack.c.bf16 %v5576_v53, %v5575_v25  ;;  %v5609_v47 = vld [vmem:[%s10121_s5 + $0x4d8] sm:$0xff]  ;;  %v5614_v53 = vld [vmem:[%s10121_s5 + $0x500] sm:$0xff] }
 0x47b   : > { %6709 = vmatpush1.bf16.msra.mxu0 %v6708_v13  ;;  %v5573_v13 = vld [vmem:[%s10121_s5 + $0x3c0] sm:$0xff]  ;;  %v9787_v6 = vmax.f32 %v4130_v63, 0.0  ;;  %v4107_v2 = vpop.permute.xlu0 %4106 }
 0x47c   : > { %6710 = vmatprep.subr.bf16.mxu0 %v7201_v37  ;;  %v6762_v0 = vpack.c.bf16 %v5574_v23, %v5573_v13  ;;  %v5610_v13 = vld [vmem:[%s10121_s5 + $0x4e0] sm:$0xff]  ;;  %v5611_v23 = vld [vmem:[%s10121_s5 + $0x4e8] sm:$0xff] }
 0x47d   : > { %v4702_v18 = vrot.slane %v9787_v6, 4  ;;  %v6816_v63 = vpack.c.bf16 %v5611_v23, %v5610_v13  ;;  %v4866_v13 = vld [vmem:[%s10125_s9 + $0x58] sm:$0xff] }
 0x47f   : > { %6712 = vmatpush1.bf16.msra.mxu0 %v6711_v41  ;;  %v4488_v41 = vrot.slane %v9664_v44, 4 }
 0x480   : > { %6713 = vmatprep.subr.bf16.mxu0 %v7201_v37 }
 0x483   : > { %6715 = vmatpush1.bf16.msra.mxu0 %v6714_v16  ;;  %v5577_v16 = vld [vmem:[%s10121_s5 + $0x3e0] sm:$0xff] }
 0x484   : > { %6716 = vmatprep.subr.bf16.mxu0 %v7201_v37  ;;  %v6768_v27 = vpack.c.bf16 %v5578_v46, %v5577_v16  ;;  %v5616_v16 = vld [vmem:[%s10121_s5 + $0x510] sm:$0xff]  ;;  %v5617_v46 = vld [vmem:[%s10121_s5 + $0x518] sm:$0xff] }
 0x486   : > { %4450 = vmatmul.mubr.f32.vlgmr.msra.gmra.mrb[24].mxu0 %v9664_v44 }
 0x487   : > { %6718 = vmatpush1.bf16.msra.mxu0 %v6717_v50  ;;  %5572 = vmatprep.mubr.msk.f32.mxu0 %vm4168_vm8, %v4489_v49  ;;  %v5580_v50 = vld [vmem:[%s10121_s5 + $0x3f8] sm:$0xff]  ;;  %v6774_v49 = vpack.c.bf16 %v5582_v1, %v5581_v51  ;;  %v5620_v51 = vld [vmem:[%s10121_s5 + $0x530] sm:$0xff] }
 0x488   : > { %6719 = vmatprep.subr.bf16.mxu0 %v7201_v37  ;;  %v6771_v44 = vpack.c.bf16 %v5580_v50, %v5579_v60  ;;  %v5618_v60 = vld [vmem:[%s10121_s5 + $0x520] sm:$0xff]  ;;  %v5619_v50 = vld [vmem:[%s10121_s5 + $0x528] sm:$0xff]  ;;  %v5621_v1 = vld [vmem:[%s10121_s5 + $0x538] sm:$0xff] }
 0x48b   : > { %6721 = vmatpush1.bf16.msra.mxu0 %v6720_v4  ;;  %v5583_v4 = vld [vmem:[%s10121_s5 + $0x410] sm:$0xff] }
 0x48c   : > { %6722 = vmatprep.subr.bf16.mxu0 %v7201_v37  ;;  %v6777_v29 = vpack.c.bf16 %v5584_v3, %v5583_v4  ;;  %v6831_v4 = vpack.c.bf16 %v5621_v1, %v5620_v51 }
 0x48f   : > { %6724 = vmatpush1.bf16.msra.mxu0 %v6723_v48  ;;  %v5585_v48 = vld [vmem:[%s10121_s5 + $0x420] sm:$0xff] }
 0x490   : > { %6725 = vmatprep.subr.bf16.mxu0 %v7201_v37  ;;  %v6780_v5 = vpack.c.bf16 %v5586_v30, %v5585_v48  ;;  %v5623_v48 = vld [vmem:[%s10121_s5 + $0x548] sm:$0xff] }
 0x493   : > { %6727 = vmatpush1.bf16.msra.mxu0 %v6726_v32  ;;  %v5587_v32 = vld [vmem:[%s10121_s5 + $0x430] sm:$0xff] }
 0x494   : > { %6728 = vmatprep.subr.bf16.mxu0 %v7201_v37  ;;  %v6783_v22 = vpack.c.bf16 %v5588_v40, %v5587_v32  ;;  %v5625_v32 = vld [vmem:[%s10121_s5 + $0x558] sm:$0xff] }
 0x497   : > { %6730 = vmatpush1.bf16.msra.mxu0 %v6729_v8  ;;  %v5589_v8 = vld [vmem:[%s10121_s5 + $0x440] sm:$0xff] }
 0x498   : > { %6731 = vmatprep.subr.bf16.mxu0 %v7201_v37  ;;  %v6786_v42 = vpack.c.bf16 %v5590_v14, %v5589_v8  ;;  %v5627_v8 = vld [vmem:[%s10121_s5 + $0x568] sm:$0xff] }
 0x49b   : > { %6733 = vmatpush1.bf16.msra.mxu0 %v6732_v9  ;;  %v5591_v9 = vld [vmem:[%s10121_s5 + $0x450] sm:$0xff] }
 0x49c   : > { %6734 = vmatprep.subr.bf16.mxu0 %v7201_v37  ;;  %v6789_v19 = vpack.c.bf16 %v5592_v59, %v5591_v9  ;;  %v5629_v9 = vld [vmem:[%s10121_s5 + $0x578] sm:$0xff] }
 0x49f   : > { %6736 = vmatpush1.bf16.msra.mxu0 %v6735_v24  ;;  %v5593_v24 = vld [vmem:[%s10121_s5 + $0x460] sm:$0xff] }
 0x4a0   : > { %6737 = vmatprep.subr.bf16.mxu0 %v7201_v37  ;;  %v6792_v31 = vpack.c.bf16 %v5594_v20, %v5593_v24  ;;  %v5631_v24 = vld [vmem:[%s10121_s5 + $0x588] sm:$0xff] }
 0x4a3   : > { %6739 = vmatpush1.bf16.msra.mxu0 %v6738_v36  ;;  %v5595_v36 = vld [vmem:[%s10121_s5 + $0x470] sm:$0xff] }
 0x4a4   : > { %6740 = vmatprep.subr.bf16.mxu0 %v7201_v37  ;;  %v6795_v33 = vpack.c.bf16 %v5596_v38, %v5595_v36  ;;  %v5633_v36 = vld [vmem:[%s10121_s5 + $0x598] sm:$0xff] }
 0x4a7   : > { %6742 = vmatpush1.bf16.msra.mxu0 %v6741_v28  ;;  %v5597_v28 = vld [vmem:[%s10121_s5 + $0x480] sm:$0xff] }
 0x4a8   : > { %6743 = vmatprep.subr.bf16.mxu0 %v7201_v37  ;;  %v6798_v26 = vpack.c.bf16 %v5598_v10, %v5597_v28  ;;  %v4778_v28 = vld [vmem:[%s10123_s7] sm:$0xff] }
 0x4a9   : > { %6064 = vmatpush3.msra.mxu1 %v4778_v28  ;;  %v4137_v10 = vld [vmem:[%s10122_s6] sm:$0x1] }
 0x4aa   : > { %6851 = vmatprep.subr.bf16.mxu1 %v7201_v37 }
 0x4ab   : > { %6745 = vmatpush1.bf16.msra.mxu0 %v6744_v39  ;;  %v5599_v39 = vld [vmem:[%s10121_s5 + $0x490] sm:$0xff] }
 0x4ac   : > { %6746 = vmatprep.subr.bf16.mxu0 %v7201_v37 }
 0x4af   : > { %6748 = vmatpush1.bf16.msra.mxu0 %v6747_v55  ;;  %v6801_v55 = vpack.c.bf16 %v5600_v17, %v5599_v39  ;;  %v4855_v39 = vld [vmem:[%s10125_s9] sm:$0xff]  ;;  %v4856_v17 = vld [vmem:[%s10125_s9 + $0x8] sm:$0xff] }
 0x4b0   : > { %6749 = vmatprep.subr.bf16.mxu0 %v7201_v37  ;;  %v6852_v56 = vpack.c.bf16 %v4856_v17, %v4855_v39 }
 0x4b3   : > { %6751 = vmatpush1.bf16.msra.mxu0 %v6750_v12  ;;  %v4117_v12 = vsel %vm4112_vm7, %v4107_v2, %v9767_v61  ;;  %v5608_v61 = vld [vmem:[%s10121_s5 + $0x4d0] sm:$0xff] }
 0x4b4   : > { %6752 = vmatprep.subr.bf16.mxu0 %v7201_v37  ;;  %v4129_v57 = vmax.f32 %v9502_v15, %v4117_v12  ;;  %v5606_v15 = vld [vmem:[%s10121_s5 + $0x4c0] sm:$0xff] }
 0x4b6   : > { %v9892_v62 = vmax.f32 %v4129_v57, 0.0  ;;  %v4858_v57 = vld [vmem:[%s10125_s9 + $0x18] sm:$0xff] }
 0x4b7   : > { %6754 = vmatpush1.bf16.msra.mxu0 %v6753_v11  ;;  %v5604_v11 = vld [vmem:[%s10121_s5 + $0x4b0] sm:$0xff] }
 0x4b8   : > { %6755 = vmatprep.subr.bf16.mxu0 %v7201_v37  ;;  %v6807_v54 = vpack.c.bf16 %v5605_v58, %v5604_v11  ;;  %v4859_v58 = vld [vmem:[%s10125_s9 + $0x20] sm:$0xff] }
 0x4bb   : > { %6757 = vmatpush1.bf16.msra.mxu0 %v6756_v35  ;;  %v5607_v35 = vld [vmem:[%s10121_s5 + $0x4c8] sm:$0xff] }
 0x4bc   : > { %6758 = vmatprep.subr.bf16.mxu0 %v7201_v37  ;;  %v6810_v21 = vpack.c.bf16 %v5607_v35, %v5606_v15  ;;  %v4861_v15 = vld [vmem:[%s10125_s9 + $0x30] sm:$0xff]  ;;  %v4862_v35 = vld [vmem:[%s10125_s9 + $0x38] sm:$0xff] }
 0x4bf   : > { %6760 = vmatpush1.bf16.msra.mxu0 %v6759_v45  ;;  %v6813_v45 = vpack.c.bf16 %v5609_v47, %v5608_v61  ;;  %v4864_v61 = vld [vmem:[%s10125_s9 + $0x48] sm:$0xff] }
 0x4c0   : > { %6761 = vmatprep.subr.bf16.mxu0 %v7201_v37 }
 0x4c2   : > { %4558 = vmatmul.mubr.f32.vlgmr.msra.gmra.mrb[24].mxu0 %v4488_v41  ;;  %v5613_v41 = vld [vmem:[%s10121_s5 + $0x4f8] sm:$0xff] }
 0x4c3   : > { %6763 = vmatpush1.bf16.msra.mxu0 %v6762_v0  ;;  %5603 = vmatprep.mubr.msk.f32.mxu0 %vm4168_vm8, %v9787_v6  ;;  %v5612_v0 = vld [vmem:[%s10121_s5 + $0x4f0] sm:$0xff]  ;;  %v5615_v6 = vld [vmem:[%s10121_s5 + $0x508] sm:$0xff] }
 0x4c4   : > { %6764 = vmatprep.subr.bf16.mxu0 %v7201_v37  ;;  %v6819_v25 = vpack.c.bf16 %v5613_v41, %v5612_v0  ;;  %v4868_v0 = vld [vmem:[%s10125_s9 + $0x68] sm:$0xff] }
 0x4c7   : > { %6766 = vmatpush1.bf16.msra.mxu0 %v6765_v52  ;;  %v6822_v52 = vpack.c.bf16 %v5615_v6, %v5614_v53 }
 0x4c8   : > { %6767 = vmatprep.subr.bf16.mxu0 %v7201_v37 }
 0x4cb   : > { %6769 = vmatpush1.bf16.msra.mxu0 %v6768_v27  ;;  %v6825_v27 = vpack.c.bf16 %v5617_v46, %v5616_v16  ;;  %v4870_v46 = vld [vmem:[%s10126_s10] sm:$0x1] }
 0x4cc   : > { %6770 = vmatprep.subr.bf16.mxu0 %v7201_v37 }
 0x4cf   : > { %6772 = vmatpush1.bf16.msra.mxu0 %v6771_v44  ;;  %v6828_v44 = vpack.c.bf16 %v5619_v50, %v5618_v60 }
 0x4d0   : > { %6773 = vmatprep.subr.bf16.mxu0 %v7201_v37 }
 0x4d3   : > { %6775 = vmatpush1.bf16.msra.mxu0 %v6774_v49 }
 0x4d4   : > { %6776 = vmatprep.subr.bf16.mxu0 %v7201_v37 }
 0x4d7   : > { %6778 = vmatpush1.bf16.msra.mxu0 %v6777_v29  ;;  %v5622_v29 = vld [vmem:[%s10121_s5 + $0x540] sm:$0xff] }
 0x4d8   : > { %6779 = vmatprep.subr.bf16.mxu0 %v7201_v37  ;;  %v6834_v30 = vpack.c.bf16 %v5623_v48, %v5622_v29 }
 0x4db   : > { %6781 = vmatpush1.bf16.msra.mxu0 %v6780_v5  ;;  %v5624_v5 = vld [vmem:[%s10121_s5 + $0x550] sm:$0xff] }
 0x4dc   : > { %6782 = vmatprep.subr.bf16.mxu0 %v7201_v37  ;;  %v6837_v40 = vpack.c.bf16 %v5625_v32, %v5624_v5 }
 0x4df   : > { %6784 = vmatpush1.bf16.msra.mxu0 %v6783_v22  ;;  %v5626_v22 = vld [vmem:[%s10121_s5 + $0x560] sm:$0xff] }
 0x4e0   : > { %6785 = vmatprep.subr.bf16.mxu0 %v7201_v37  ;;  %v6840_v14 = vpack.c.bf16 %v5627_v8, %v5626_v22 }
 0x4e3   : > { %6787 = vmatpush1.bf16.msra.mxu0 %v6786_v42  ;;  %v5628_v42 = vld [vmem:[%s10121_s5 + $0x570] sm:$0xff] }
 0x4e4   : > { %6788 = vmatprep.subr.bf16.mxu0 %v7201_v37  ;;  %v6843_v59 = vpack.c.bf16 %v5629_v9, %v5628_v42 }
 0x4e7   : > { %6790 = vmatpush1.bf16.msra.mxu0 %v6789_v19  ;;  %v5630_v19 = vld [vmem:[%s10121_s5 + $0x580] sm:$0xff] }
 0x4e8   : > { %6791 = vmatprep.subr.bf16.mxu0 %v7201_v37  ;;  %v6846_v20 = vpack.c.bf16 %v5631_v24, %v5630_v19 }
 0x4eb   : > { %6793 = vmatpush1.bf16.msra.mxu0 %v6792_v31  ;;  %v5632_v31 = vld [vmem:[%s10121_s5 + $0x590] sm:$0xff] }
 0x4ec   : > { %6794 = vmatprep.subr.bf16.mxu0 %v7201_v37  ;;  %v6849_v38 = vpack.c.bf16 %v5633_v36, %v5632_v31 }
 0x4ef   : > { %6796 = vmatpush1.bf16.msra.mxu0 %v6795_v33  ;;  %v4701_v33 = vrot.slane %v9892_v62, 4 }
 0x4f0   : > { %6797 = vmatprep.subr.bf16.mxu0 %v7201_v37 }
 0x4f3   : > { %6799 = vmatpush1.bf16.msra.mxu0 %v6798_v26 }
 0x4f4   : > { %6800 = vmatprep.subr.bf16.mxu0 %v7201_v37 }
 0x4f7   : > { %6802 = vmatpush1.bf16.msra.mxu0 %v6801_v55 }
 0x4f8   : > { %6803 = vmatprep.subr.bf16.mxu0 %v7201_v37 }
 0x4fb   : > { %6805 = vmatpush1.bf16.msra.mxu0 %v6804_v43  ;;  %v4857_v43 = vld [vmem:[%s10125_s9 + $0x10] sm:$0xff] }
 0x4fc   : > { %6806 = vmatprep.subr.bf16.mxu0 %v7201_v37  ;;  %v6855_v11 = vpack.c.bf16 %v4858_v57, %v4857_v43 }
 0x4fe   : > { %4663 = vmatmul.mubr.f32.vlgmr.msra.gmra.mrb[24].mxu0 %v9892_v62 }
 0x4ff   : > { %6808 = vmatpush1.bf16.msra.mxu0 %v6807_v54  ;;  %5634 = vmatprep.mubr.msk.f32.mxu0 %vm4168_vm8, %v4702_v18  ;;  %v4860_v54 = vld [vmem:[%s10125_s9 + $0x28] sm:$0xff]  ;;  %v6861_v18 = vpack.c.bf16 %v4862_v35, %v4861_v15 }
 0x500   : > { %6809 = vmatprep.subr.bf16.mxu0 %v7201_v37  ;;  %v6858_v62 = vpack.c.bf16 %v4860_v54, %v4859_v58 }
 0x503   : > { %6811 = vmatpush1.bf16.msra.mxu0 %v6810_v21  ;;  %v4863_v21 = vld [vmem:[%s10125_s9 + $0x40] sm:$0xff] }
 0x504   : > { %6812 = vmatprep.subr.bf16.mxu0 %v7201_v37  ;;  %v6864_v47 = vpack.c.bf16 %v4864_v61, %v4863_v21 }
 0x507   : > { %6814 = vmatpush1.bf16.msra.mxu0 %v6813_v45  ;;  %v4865_v45 = vld [vmem:[%s10125_s9 + $0x50] sm:$0xff] }
 0x508   : > { %6815 = vmatprep.subr.bf16.mxu0 %v7201_v37  ;;  %v6867_v23 = vpack.c.bf16 %v4866_v13, %v4865_v45 }
 0x50b   : > { %6817 = vmatpush1.bf16.msra.mxu0 %v6816_v63  ;;  %v4867_v63 = vld [vmem:[%s10125_s9 + $0x60] sm:$0xff] }
 0x50c   : > { %6818 = vmatprep.subr.bf16.mxu0 %v7201_v37  ;;  %v6870_v41 = vpack.c.bf16 %v4868_v0, %v4867_v63 }
 0x50f   : > { %6820 = vmatpush1.bf16.msra.mxu0 %v6819_v25  ;;  %v4869_v25 = vld [vmem:[%s10125_s9 + $0x70] sm:$0xff] }
 0x510   : > { %6821 = vmatprep.subr.bf16.mxu0 %v7201_v37 }
 0x513   : > { %6823 = vmatpush1.bf16.msra.mxu0 %v6822_v52 }
 0x514   : > { %6824 = vmatprep.subr.bf16.mxu0 %v7201_v37 }
 0x517   : > { %6826 = vmatpush1.bf16.msra.mxu0 %v6825_v27 }
 0x518   : > { %6827 = vmatprep.subr.bf16.mxu0 %v7201_v37 }
 0x51b   : > { %6829 = vmatpush1.bf16.msra.mxu0 %v6828_v44  ;;  %v4238_v49 = vpop.f32.mrb[28].mxu1 }
 0x51c   : > { %v4240_v3 = vpop.f32.mrb[29].mxu1  ;;  %6830 = vmatprep.subr.bf16.mxu0 %v7201_v37  ;;  %v4242_v26 = vadd.f32 %v4238_v49, %v4137_v10 }
 0x51f   : > { %6832 = vmatpush1.bf16.msra.mxu0 %v6831_v4 }
 0x520   : > { %6833 = vmatprep.subr.bf16.mxu0 %v7201_v37 }
 0x523   : > { %6835 = vmatpush1.bf16.msra.mxu0 %v6834_v30 }
 0x524   : > { %6836 = vmatprep.subr.bf16.mxu0 %v7201_v37 }
 0x527   : > { %6838 = vmatpush1.bf16.msra.mxu0 %v6837_v40 }
 0x528   : > { %6839 = vmatprep.subr.bf16.mxu0 %v7201_v37 }
 0x52b   : > { %6841 = vmatpush1.bf16.msra.mxu0 %v6840_v14 }
 0x52c   : > { %6842 = vmatprep.subr.bf16.mxu0 %v7201_v37 }
 0x52f   : > { %6844 = vmatpush1.bf16.msra.mxu0 %v6843_v59 }
 0x530   : > { %6845 = vmatprep.subr.bf16.mxu0 %v7201_v37 }
 0x533   : > { %6847 = vmatpush1.bf16.msra.mxu0 %v6846_v20 }
 0x534   : > { %6848 = vmatprep.subr.bf16.mxu0 %v7201_v37 }
 0x537   : > { %6850 = vmatpush1.bf16.msra.mxu0 %v6849_v38 }
 0x53a   : > { %4771 = vmatmul.mubr.f32.vlgmr.msra.gmra.mrb[24].mxu0 %v4701_v33 }
 0x60d   : > { %v4772_v2 = vpop.f32.mrb[24].mxu0 }
 0x60e   : > { %v6917_v55 = vadd.f32 %v4772_v2, %v4242_v26  ;;  %v4774_v34 = vpop.f32.mrb[25].mxu0 }
 0x610   : > { %v4777_v12 = vmax.f32 %v6917_v55, 0.0 }
 0x612   : > { %6066 = vmatmul.mubr.msk.f32.vlgmr.msra.gmra.mrb[30].mxu1 %vm4780_vm10, %v4777_v12 }
 0x613   : > { %6853 = vmatpush3.bf16.msra.mxu1 %v6852_v56  ;;  %6098 = vmatprep.mubr.msk.f32.mxu1 %vm7203_vm9, %v7199_v7 }
 0x614   : > { %6854 = vmatprep.subr.bf16.mxu1 %v7201_v37 }
 0x617   : > { %6856 = vmatpush3.bf16.msra.mxu1 %v6855_v11 }
 0x618   : > { %6857 = vmatprep.subr.bf16.mxu1 %v7201_v37 }
 0x61b   : > { %6859 = vmatpush3.bf16.msra.mxu1 %v6858_v62 }
 0x61c   : > { %6860 = vmatprep.subr.bf16.mxu1 %v7201_v37 }
 0x61f   : > { %6862 = vmatpush3.bf16.msra.mxu1 %v6861_v18 }
 0x620   : > { %6863 = vmatprep.subr.bf16.mxu1 %v7201_v37 }
 0x623   : > { %6865 = vmatpush3.bf16.msra.mxu1 %v6864_v47 }
 0x624   : > { %6866 = vmatprep.subr.bf16.mxu1 %v7201_v37 }
 0x627   : > { %6868 = vmatpush3.bf16.msra.mxu1 %v6867_v23 }
 0x628   : > { %6869 = vmatprep.subr.bf16.mxu1 %v7201_v37  ;;  %v4779_v37 = vld [vmem:[%s10124_s8] sm:$0x1] }
 0x62b   : > { %6871 = vmatpush3.bf16.msra.mxu1 %v6870_v41 }
 0x62c   : > { %6096 = vmatprep.subr.mxu1 %v7199_v7 }
 0x62f   : > { %6097 = vmatpush3.msra.mxu1 %v4869_v25 }
 0x6e5   : > { %v4850_v53 = vpop.f32.mrb[30].mxu1 }
 0x6e6   : > { %v4851_v6 = vadd.f32 %v4850_v53, %v4779_v37  ;;  %v6067_v52 = vpop.f32.mrb[31].mxu1 }
 0x6e8   : > { %v4854_v16 = vmax.f32 %v4851_v6, 0.0 }
 0x6ea   : > { %6099 = vmatmul.mubr.msk.f32.vlgmr.msra.gmra.mrb[32].mxu1 %vm4871_vm11, %v4854_v16 }
 0x7bd   : > { %v4941_v7 = vpop.f32.mrb[32].mxu1 }
 0x7be   : > { %v4942_v27 = vadd.f32 %v4941_v7, %v4870_v46  ;;  %v6100_v60 = vpop.f32.mrb[33].mxu1 }
 0x7c0   : > { %v4945_v50 = vmax.f32 %v4942_v27, 0.0 }
 0x7c2   : > { %v4947_v44 = vsel %vm4946_vm12, %v4945_v50, -inf }
 0x7c3   : > { %4948 = vmax.xlane.f32.xlu1 %v4947_v44 }
 0x850   : > { %v4949_v51 = vpop.xlane.xlu1 %4948 }
 0x851   : > { %v4950_v1 = vsub.f32 %v4945_v50, %v4949_v51 }
 0x853   : > { %v4951_v49 = vmul.f32 1.442695, %v4950_v1 }
 0x855   : > { %7131 = vpow2.f32 %v4951_v49 }
 0x85f   : > { %v7132_v4 = vpop.eup %7131 }
 0x860   : > { %v4953_v3 = vsel %vm4946_vm12, %v7132_v4, 0.0 }
 0x861   : > { %4954 = vadd.xlane.f32.xlu0 %v4953_v3 }
 0x8ee   : > { %v4955_v29 = vpop.xlane.xlu0 %4954 }
 0x8ef   : > { %7133 = vrcp.f32 %v4955_v29 }
 0x8f9   : > { %v7134_v48 = vpop.eup %7133 }
 0x8fa   : > { %v4957_v30 = vmul.f32 %v7134_v48, %v7132_v4 }
 0x8fc   : > { %4958 = vst.msk [vmem:[%s378_s13] sm:$0x1] %vm4946_vm12, %v4957_v30 }
 0x8fd   : > { %7148 = shalt.err (!%p7145_p3)
}
 0x8fe   : > { %s7149_s12 = scalar_lea.hbm %s10073_s24, 16  ;;  %s7153_s13 = scalar_lea.hbm %s10127_s11, 32 }
 0x8ff   : > { %p7150_p4 = scmp.ne.s32.totalorder %s10073_s24, %s7149_s12  ;;  %p7154_p9 = scmp.lt.u32.totalorder %s10073_s24, %s10127_s11 }
 0x900   : > { %p7155_p10 = scmp.lt.u32.totalorder %s7153_s13, %s7149_s12  ;;  %p7157_p12 = scmp.lt.u32.totalorder %s7149_s12, %s10073_s24 }
 0x901   : > { %p7151_p7 = pnand %p7150_p4, %p7303_p5 }
 0x902   : > { %p7156_p11 = por %p7155_p10, %p7154_p9 }
 0x903   : > { %p7152_p8 = pneg %p7151_p7 }
 0x904   : > { %p7158_p13 = por %p7157_p12, %p7156_p11 }
 0x906   : > { %p7159_p0 = pnand %p7158_p13, %p7152_p8 }
 0x908   : > { %7162 = shalt.err (!%p7159_p0)
}
 0x909   : > { %7067 = dma.vmem_to_hbm [thread:$0]  (%p7303_p5), %s10075_s16, 16, %s10073_s24, %s4960_s25  }
 0x90a PF: > { %p7073_p1 = scmp.ge.s32.totalorder %s7197_s20, 2  ;;  %s4984_s19 = sand.u32 1, %s7185_s17  }
 0x90b   : > { %s4985_s21 = scalar_lea.sflag [#allocation3], %s4984_s19 }
 0x90c   : > { %p7070_p2 = pnand %p7073_p1, %p7307_p6 }
 0x90e   : > { %7180 = dma.done.wait (!%p7070_p2), %s4985_s21, 16  }
 0x90f   : > { %7182 = vsyncadd (!%p7070_p2), %s4985_s21, 4294967280  ;;  %s10133_s26 = sld [smem:[#allocation5_spill]]  ;;  %s10134_s19 = sld [smem:[#allocation6_spill]] }
 0x910   : > { %p21_p3 = scmp.ge.s32.totalorder %s7290_s23, 4   ;;  %s10135_s17 = smov %s7189_s18 }
 0x911   : > { %s10137_s20 = smov %s7290_s23 }
 0x912   :  { %23 = sbr.rel (!%p21_p3) target bundleno = 3 (0x3), region = 116 }
 0x915   : > { %s10136_s18 = smov %s10133_s26 }
 0x919   :  { %4989 = vsyncpa [#allocation3], 1 }
 0x91a   :  { %4991 = vsyncpa [#allocation3 + $0x1], 1 }

</bundles_post_ra>
